<compile_context>
chip_gen: v6e
topology: v6e:2x2x1
jax: 0.10.0
libtpu: 0.0.40
codegen_flags: <defaults>
</compile_context>

<pallas_src>
import functools

import jax
import jax.numpy as jnp
from jax import lax
from jax.experimental import pallas as pl

# ---------------- synthetic-BERT config (small shapes) ----------------
VOCAB = 128
HIDDEN = 32
N_HEADS = 4
HEAD_DIM = HIDDEN // N_HEADS
FFN = 64
N_LAYERS = 2
MAX_POS = 64
OUT_DIM = 16          # output_dim of the fc head (384 in the real module)
LN_EPS = 1e-12        # BERT LayerNorm eps
HP = 128              # lane-padded width (one full lane tile)


# ---------------- fused encoder kernel ----------------
def _encoder_kernel(x_ref, mask_ref,
                    eg_ref, eb_ref,
                    qkvw_ref, qkvb_ref, ow_ref, ob_ref,
                    l1g_ref, l1b_ref, w1_ref, b1_ref, w2_ref, b2_ref,
                    l2g_ref, l2b_ref, fcw_ref, fcb_ref,
                    o_ref, *, batch, seq):
    """Whole BERT encoder + fc head; all activations stay in VMEM/registers.

    x_ref    : (B*S, 128)  embedding sum, zero-padded beyond HIDDEN lanes
    mask_ref : (B, 1, S)   additive mask bias, (1-mask)*-10000
    per-layer weights are stacked on a leading layer (or layer*head) axis,
    zero-padded to 128-lane tiles, stored bf16 (matmul operands only)
    o_ref    : (B*S, 128)  fc(last_hidden_state), valid in lanes [:OUT_DIM]
    """
    f32, bf16 = jnp.float32, jnp.bfloat16
    m = batch * seq
    scale = 1.0 / (HEAD_DIM ** 0.5)

    # Hidden-lane validity mask, built once and reused by every LayerNorm so
    # the zero-padded lanes never perturb mean / variance.
    lane = lax.broadcasted_iota(jnp.int32, (m, HP), 1)
    valid = (lane < HIDDEN).astype(f32)
    inv_h = 1.0 / HIDDEN

    def ln(x, g, b):                       # f32 math (v5e VPU has no bf16)
        xv = x * valid
        mean = jnp.sum(xv, axis=-1, keepdims=True) * inv_h
        cent = (x - mean) * valid
        var = jnp.sum(cent * cent, axis=-1, keepdims=True) * inv_h
        return cent * lax.rsqrt(var + LN_EPS) * g + b

    # Additive attention-mask bias: loaded once, reused across layers/heads.
    mask_bias = mask_ref[...]                                      # (B, 1, S)

    # ----- embeddings LayerNorm -----
    x = ln(x_ref[...], eg_ref[...], eb_ref[...])                   # (M, 128)

    for l in range(N_LAYERS):
        # Fused QKV projection: one (M,128) @ (128, 3*NH*128) matmul.  Every
        # head's q/k/v occupies its own 128-lane tile of the result, so all
        # later slices are tile-aligned (free) - no lane extracts.
        qkv = (jnp.dot(x.astype(bf16), qkvw_ref[l],
                       preferred_element_type=f32) + qkvb_ref[l])  # (M, 1536)

        attn = None
        for h in range(N_HEADS):
            qh = qkv[:, (0 * N_HEADS + h) * HP:(0 * N_HEADS + h + 1) * HP]
            kh = qkv[:, (1 * N_HEADS + h) * HP:(1 * N_HEADS + h + 1) * HP]
            vh = qkv[:, (2 * N_HEADS + h) * HP:(2 * N_HEADS + h + 1) * HP]
            q3 = qh.reshape(batch, seq, HP).astype(bf16)
            k3 = kh.reshape(batch, seq, HP).astype(bf16)
            v3 = vh.reshape(batch, seq, HP).astype(bf16)

            # Batched over the batch axis; contraction on the last (lane)
            # axis, so no explicit K transpose (no XLU transpose).
            s = jnp.einsum("bqd,bkd->bqk", q3, k3,
                           preferred_element_type=f32) * scale     # (B,S,S)
            s = s + mask_bias
            s = s - jnp.max(s, axis=-1, keepdims=True)
            p = jnp.exp(s)                                          # f32 EUP
            p = p / jnp.sum(p, axis=-1, keepdims=True)              # exact
            ctx = jnp.einsum("bqk,bkd->bqd", p.astype(bf16), v3,
                             preferred_element_type=f32)           # (B,S,128)

            # Per-head output projection accumulated in registers: identical
            # to concat(all heads) @ Wo, but needs no lane concatenation and
            # no VMEM scratch / masked partial stores.
            part = jnp.dot(ctx.reshape(m, HP).astype(bf16),
                           ow_ref[l * N_HEADS + h],
                           preferred_element_type=f32)              # (M,128)
            attn = part if attn is None else attn + part
        attn = attn + ob_ref[l]

        # attention output: fused residual + LayerNorm
        x = ln(attn + x, l1g_ref[l], l1b_ref[l])

        # ----- feed-forward (GELU) + fused residual + LayerNorm -----
        # TODO(synk): HF BERT uses exact (erf) GELU; tanh approximation used.
        h1 = jax.nn.gelu(jnp.dot(x.astype(bf16), w1_ref[l],
                                 preferred_element_type=f32) + b1_ref[l],
                         approximate=True)
        h2 = jnp.dot(h1.astype(bf16), w2_ref[l],
                     preferred_element_type=f32) + b2_ref[l]
        x = ln(h2 + x, l2g_ref[l], l2b_ref[l])

    # ----- fc head on the full last_hidden_state; lane-dense (M,128) store -----
    o_ref[...] = (jnp.dot(x.astype(bf16), fcw_ref[...],
                          preferred_element_type=f32)
                  + fcb_ref[...]).astype(o_ref.dtype)


# ---------------- parameter init (logical, unpadded, f32) ----------------
def init_params(key):
    ks = iter(jax.random.split(key, 128))

    def rnd(shape, scale=0.02):
        return jax.random.normal(next(ks), shape, jnp.float32) * scale

    def per_layer(shape):
        return jnp.stack([rnd(shape) for _ in range(N_LAYERS)])

    p = {
        "word_emb": rnd((VOCAB, HIDDEN)),
        "pos_emb": rnd((MAX_POS, HIDDEN)),
        "tok_emb": rnd((2, HIDDEN)),
        "emb_ln_g": 1.0 + rnd((HIDDEN,)),
        "emb_ln_b": rnd((HIDDEN,)),
        "fc_w": rnd((HIDDEN, OUT_DIM)),
        "fc_b": rnd((OUT_DIM,)),
        "q_w": per_layer((HIDDEN, HIDDEN)), "q_b": per_layer((HIDDEN,)),
        "k_w": per_layer((HIDDEN, HIDDEN)), "k_b": per_layer((HIDDEN,)),
        "v_w": per_layer((HIDDEN, HIDDEN)), "v_b": per_layer((HIDDEN,)),
        "o_w": per_layer((HIDDEN, HIDDEN)), "o_b": per_layer((HIDDEN,)),
        "ln1_g": 1.0 + per_layer((HIDDEN,)), "ln1_b": per_layer((HIDDEN,)),
        "w1": per_layer((HIDDEN, FFN)), "b1": per_layer((FFN,)),
        "w2": per_layer((FFN, HIDDEN)), "b2": per_layer((HIDDEN,)),
        "ln2_g": 1.0 + per_layer((HIDDEN,)), "ln2_b": per_layer((HIDDEN,)),
    }
    return p


# ---------------- pack logical params into lane-dense kernel operands ----------------
def pack_params(p):
    bf16 = jnp.bfloat16

    def pad2(x, rows=HP, cols=HP):
        return jnp.pad(x, ((0, rows - x.shape[0]), (0, cols - x.shape[1])))

    def pad_row(x, cols=HP):
        return jnp.pad(x[None, :], ((0, 0), (0, cols - x.shape[0])))

    qkv_w, qkv_b, o_w, o_b = [], [], [], []
    for l in range(N_LAYERS):
        wb, bb = [], []
        for w, b in ((p["q_w"][l], p["q_b"][l]),
                     (p["k_w"][l], p["k_b"][l]),
                     (p["v_w"][l], p["v_b"][l])):
            for h in range(N_HEADS):
                sl = slice(h * HEAD_DIM, (h + 1) * HEAD_DIM)
                wb.append(pad2(w[:, sl]))        # each head -> own 128-lane tile
                bb.append(pad_row(b[sl]))
        qkv_w.append(jnp.concatenate(wb, axis=1))      # (128, 3*NH*128)
        qkv_b.append(jnp.concatenate(bb, axis=1))      # (1,   3*NH*128)
        for h in range(N_HEADS):
            sl = slice(h * HEAD_DIM, (h + 1) * HEAD_DIM)
            o_w.append(pad2(p["o_w"][l][sl, :]))        # (128, 128) per head
        o_b.append(pad_row(p["o_b"][l]))

    def stack_rows(name):
        return jnp.stack([pad_row(p[name][l]) for l in range(N_LAYERS)])

    def stack_mats(name):
        return jnp.stack([pad2(p[name][l]) for l in range(N_LAYERS)])

    return {
        "emb_ln_g": pad_row(p["emb_ln_g"]),
        "emb_ln_b": pad_row(p["emb_ln_b"]),
        "qkv_w": jnp.stack(qkv_w).astype(bf16),         # (L, 128, 1536)
        "qkv_b": jnp.stack(qkv_b),                      # (L, 1, 1536)  f32
        "o_w": jnp.stack(o_w).astype(bf16),             # (L*NH, 128, 128)
        "o_b": jnp.stack(o_b),                          # (L, 1, 128)   f32
        "ln1_g": stack_rows("ln1_g"), "ln1_b": stack_rows("ln1_b"),
        "w1": stack_mats("w1").astype(bf16), "b1": stack_rows("b1"),
        "w2": stack_mats("w2").astype(bf16), "b2": stack_rows("b2"),
        "ln2_g": stack_rows("ln2_g"), "ln2_b": stack_rows("ln2_b"),
        "fc_w": pad2(p["fc_w"]).astype(bf16),           # (128, 128)
        "fc_b": pad_row(p["fc_b"]),                     # (1, 128)      f32
    }


# ---------------- host-side glue + wrapper ----------------
def _embed_and_mask(params, input_ids, attention_mask):
    """Embedding gather (XLA glue) and the precomputed additive mask bias."""
    # TODO(synk): token_type_ids hardcoded to 0 (matches the module's usage
    # where only input_ids/attention_mask are passed to BertModel).
    B, S = input_ids.shape
    x = (params["word_emb"][input_ids]
         + params["pos_emb"][:S][None, :, :]
         + params["tok_emb"][0][None, None, :]).reshape(B * S, HIDDEN)
    bias = ((1.0 - attention_mask.astype(jnp.float32)) * (-10000.0)
            ).reshape(B, 1, S)
    return x, bias


def radiology_notes_encoder(params, packed, input_ids, attention_mask):
    """Returns (v_rr, cls) matching the PyTorch module's forward()."""
    # TODO(synk): HF BertTokenizer (string -> ids) has no Pallas equivalent;
    # this function takes pre-tokenized ids/mask instead.
    B, S = input_ids.shape
    M = B * S
    x_emb, mask_bias = _embed_and_mask(params, input_ids, attention_mask)
    x_pad = jnp.pad(x_emb, ((0, 0), (0, HP - HIDDEN)))   # lane-dense input

    kernel = functools.partial(_encoder_kernel, batch=B, seq=S)
    out_pad = pl.pallas_call(
        kernel,
        out_shape=jax.ShapeDtypeStruct((M, HP), jnp.float32),
    )(x_pad, mask_bias,
      packed["emb_ln_g"], packed["emb_ln_b"],
      packed["qkv_w"], packed["qkv_b"], packed["o_w"], packed["o_b"],
      packed["ln1_g"], packed["ln1_b"], packed["w1"], packed["b1"],
      packed["w2"], packed["b2"], packed["ln2_g"], packed["ln2_b"],
      packed["fc_w"], packed["fc_b"])

    v_rr = out_pad[:, :OUT_DIM].reshape(B, S, OUT_DIM)
    # fc(last_hidden[:, 0, :]) == v_rr[:, 0, :] -> no second matmul needed.
    cls = v_rr[:, 0, :]
    return v_rr, cls


# ---------------- pure-JAX f32 reference (correctness check) ----------------
def _reference_forward(params, x_emb, mask_bias, B, S):
    hp = lax.Precision.HIGHEST

    def ln(x, g, b):
        mean = x.mean(-1, keepdims=True)
        var = ((x - mean) ** 2).mean(-1, keepdims=True)
        return (x - mean) / jnp.sqrt(var + LN_EPS) * g + b

    x = ln(x_emb, params["emb_ln_g"], params["emb_ln_b"])
    bias4 = mask_bias.reshape(B, 1, 1, S)
    scale = 1.0 / (HEAD_DIM ** 0.5)
    for l in range(N_LAYERS):
        q = jnp.dot(x, params["q_w"][l], precision=hp) + params["q_b"][l]
        k = jnp.dot(x, params["k_w"][l], precision=hp) + params["k_b"][l]
        v = jnp.dot(x, params["v_w"][l], precision=hp) + params["v_b"][l]

        def heads(t):
            return t.reshape(B, S, N_HEADS, HEAD_DIM).transpose(0, 2, 1, 3)

        qh, kh, vh = heads(q), heads(k), heads(v)
        s = jnp.einsum("bhqd,bhkd->bhqk", qh, kh, precision=hp) * scale + bias4
        p = jax.nn.softmax(s, axis=-1)
        ctx = jnp.einsum("bhqk,bhkd->bhqd", p, vh, precision=hp)
        ctx = ctx.transpose(0, 2, 1, 3).reshape(B * S, HIDDEN)
        attn = jnp.dot(ctx, params["o_w"][l], precision=hp) + params["o_b"][l]
        x = ln(attn + x, params["ln1_g"][l], params["ln1_b"][l])
        h1 = jax.nn.gelu(jnp.dot(x, params["w1"][l], precision=hp) + params["b1"][l],
                         approximate=True)
        h2 = jnp.dot(h1, params["w2"][l], precision=hp) + params["b2"][l]
        x = ln(h2 + x, params["ln2_g"][l], params["ln2_b"][l])
    out = jnp.dot(x, params["fc_w"], precision=hp) + params["fc_b"]
    return out.reshape(B, S, OUT_DIM)


# ---------------- main ----------------
if __name__ == "__main__":
    key = jax.random.PRNGKey(0)
    k_param, k_ids = jax.random.split(key)

    B, S = 2, 8
    params = init_params(k_param)
    packed = pack_params(params)
    input_ids = jax.random.randint(k_ids, (B, S), 0, VOCAB, dtype=jnp.int32)
    # second sequence has two padding tokens at the end
    attention_mask = jnp.array([[1, 1, 1, 1, 1, 1, 1, 1],
                                [1, 1, 1, 1, 1, 1, 0, 0]], dtype=jnp.int32)

    v_rr, cls = radiology_notes_encoder(params, packed, input_ids, attention_mask)
    jax.block_until_ready((v_rr, cls))

    assert v_rr.shape == (B, S, OUT_DIM)
    assert cls.shape == (B, OUT_DIM)
    # cls must equal fc(last_hidden_state[:, 0, :]) == v_rr[:, 0, :]
    assert bool(jnp.allclose(cls, v_rr[:, 0, :], atol=1e-6))

    # correctness check of the fused kernel against a pure-f32 JAX reference
    # (kernel uses bf16 MXU operands with f32 accumulation -> <~1e-3 deviation)
    x_emb, mask_bias = _embed_and_mask(params, input_ids, attention_mask)
    v_ref = _reference_forward(params, x_emb, mask_bias, B, S)
    max_err = float(jnp.max(jnp.abs(v_rr - v_ref)))
    assert bool(jnp.allclose(v_rr, v_ref, atol=1e-2, rtol=1e-2)), max_err

    print("KERNEL_OK")
</pallas_src>

<mosaic_0001>
module attributes {stable_mosaic.version = 11 : i64} {
  func.func @_encoder_kernel(%arg0: memref<16x128xf32, #tpu.memory_space<vmem>>, %arg1: memref<2x1x8xf32, #tpu.memory_space<vmem>>, %arg2: memref<1x128xf32, #tpu.memory_space<vmem>>, %arg3: memref<1x128xf32, #tpu.memory_space<vmem>>, %arg4: memref<2x128x1536xbf16, #tpu.memory_space<vmem>>, %arg5: memref<2x1x1536xf32, #tpu.memory_space<vmem>>, %arg6: memref<8x128x128xbf16, #tpu.memory_space<vmem>>, %arg7: memref<2x1x128xf32, #tpu.memory_space<vmem>>, %arg8: memref<2x1x128xf32, #tpu.memory_space<vmem>>, %arg9: memref<2x1x128xf32, #tpu.memory_space<vmem>>, %arg10: memref<2x128x128xbf16, #tpu.memory_space<vmem>>, %arg11: memref<2x1x128xf32, #tpu.memory_space<vmem>>, %arg12: memref<2x128x128xbf16, #tpu.memory_space<vmem>>, %arg13: memref<2x1x128xf32, #tpu.memory_space<vmem>>, %arg14: memref<2x1x128xf32, #tpu.memory_space<vmem>>, %arg15: memref<2x1x128xf32, #tpu.memory_space<vmem>>, %arg16: memref<128x128xbf16, #tpu.memory_space<vmem>>, %arg17: memref<1x128xf32, #tpu.memory_space<vmem>>, %arg18: memref<16x128xf32, #tpu.memory_space<vmem>>) attributes {dimension_semantics = [], scalar_prefetch = 0 : i64, scratch_operands = 0 : i64, tpu.core_type = #tpu.core_type<tc>} {
    %0 = tpu.iota {dimensions = array<i32: 1>} : vector<16x128xi32>
    %c32_i32 = arith.constant 32 : i32
    %1 = vector.broadcast %c32_i32 : i32 to vector<16x128xi32>
    %2 = arith.cmpi slt, %0, %1 : vector<16x128xi32>
    %3 = arith.extui %2 : vector<16x128xi1> to vector<16x128xi32>
    %4 = arith.sitofp %3 : vector<16x128xi32> to vector<16x128xf32>
    %c0 = arith.constant 0 : index
    %c0_0 = arith.constant 0 : index
    %c0_1 = arith.constant 0 : index
    %5 = vector.load %arg1[%c0, %c0_0, %c0_1] : memref<2x1x8xf32, #tpu.memory_space<vmem>>, vector<2x1x8xf32>
    %c0_2 = arith.constant 0 : index
    %c0_3 = arith.constant 0 : index
    %6 = vector.load %arg0[%c0_2, %c0_3] : memref<16x128xf32, #tpu.memory_space<vmem>>, vector<16x128xf32>
    %c0_4 = arith.constant 0 : index
    %c0_5 = arith.constant 0 : index
    %7 = vector.load %arg2[%c0_4, %c0_5] : memref<1x128xf32, #tpu.memory_space<vmem>>, vector<1x128xf32>
    %c0_6 = arith.constant 0 : index
    %c0_7 = arith.constant 0 : index
    %8 = vector.load %arg3[%c0_6, %c0_7] : memref<1x128xf32, #tpu.memory_space<vmem>>, vector<1x128xf32>
    %9 = arith.mulf %6, %4 : vector<16x128xf32>
    %cst = arith.constant dense<0.000000e+00> : vector<16xf32>
    %10 = vector.multi_reduction <add>, %9, %cst [1] : vector<16x128xf32> to vector<16xf32>
    %11 = vector.shape_cast %10 : vector<16xf32> to vector<16x1xf32>
    %cst_8 = arith.constant 3.125000e-02 : f32
    %12 = vector.broadcast %cst_8 : f32 to vector<16x1xf32>
    %13 = arith.mulf %11, %12 : vector<16x1xf32>
    %14 = vector.broadcast %13 : vector<16x1xf32> to vector<16x128xf32>
    %15 = arith.subf %6, %14 : vector<16x128xf32>
    %16 = arith.mulf %15, %4 : vector<16x128xf32>
    %17 = arith.mulf %16, %16 : vector<16x128xf32>
    %cst_9 = arith.constant dense<0.000000e+00> : vector<16xf32>
    %18 = vector.multi_reduction <add>, %17, %cst_9 [1] : vector<16x128xf32> to vector<16xf32>
    %19 = vector.shape_cast %18 : vector<16xf32> to vector<16x1xf32>
    %cst_10 = arith.constant 3.125000e-02 : f32
    %20 = vector.broadcast %cst_10 : f32 to vector<16x1xf32>
    %21 = arith.mulf %19, %20 : vector<16x1xf32>
    %cst_11 = arith.constant 9.99999996E-13 : f32
    %22 = vector.broadcast %cst_11 : f32 to vector<16x1xf32>
    %23 = arith.addf %21, %22 : vector<16x1xf32>
    %24 = math.rsqrt %23 : vector<16x1xf32>
    %25 = vector.broadcast %24 : vector<16x1xf32> to vector<16x128xf32>
    %26 = arith.mulf %16, %25 : vector<16x128xf32>
    %27 = vector.broadcast %7 : vector<1x128xf32> to vector<16x128xf32>
    %28 = arith.mulf %26, %27 : vector<16x128xf32>
    %29 = vector.broadcast %8 : vector<1x128xf32> to vector<16x128xf32>
    %30 = arith.addf %28, %29 : vector<16x128xf32>
    %31 = arith.truncf %30 : vector<16x128xf32> to vector<16x128xbf16>
    %c0_12 = arith.constant 0 : index
    %c0_13 = arith.constant 0 : index
    %c0_14 = arith.constant 0 : index
    %32 = vector.load %arg4[%c0_12, %c0_13, %c0_14] : memref<2x128x1536xbf16, #tpu.memory_space<vmem>>, vector<1x128x1536xbf16>
    %33 = vector.shape_cast %32 : vector<1x128x1536xbf16> to vector<128x1536xbf16>
    %cst_15 = arith.constant dense<0.000000e+00> : vector<16x1536xf32>
    %34 = tpu.matmul %31, %33, %cst_15 {dimension_numbers = #tpu.dot_dimension_numbers<[1], [0], [0], [1], [0, 0, 1, 1], [], []>} : vector<16x128xbf16>, vector<128x1536xbf16>, vector<16x1536xf32> -> vector<16x1536xf32>
    %c0_16 = arith.constant 0 : index
    %c0_17 = arith.constant 0 : index
    %c0_18 = arith.constant 0 : index
    %35 = vector.load %arg5[%c0_16, %c0_17, %c0_18] : memref<2x1x1536xf32, #tpu.memory_space<vmem>>, vector<1x1x1536xf32>
    %36 = vector.shape_cast %35 : vector<1x1x1536xf32> to vector<1x1536xf32>
    %37 = vector.broadcast %36 : vector<1x1536xf32> to vector<16x1536xf32>
    %38 = arith.addf %34, %37 : vector<16x1536xf32>
    %39 = vector.extract_strided_slice %38 {offsets = [0, 0], sizes = [16, 128], strides = [1, 1]} : vector<16x1536xf32> to vector<16x128xf32>
    %40 = vector.extract_strided_slice %38 {offsets = [0, 512], sizes = [16, 128], strides = [1, 1]} : vector<16x1536xf32> to vector<16x128xf32>
    %41 = vector.extract_strided_slice %38 {offsets = [0, 1024], sizes = [16, 128], strides = [1, 1]} : vector<16x1536xf32> to vector<16x128xf32>
    %42 = vector.shape_cast %39 : vector<16x128xf32> to vector<2x8x128xf32>
    %43 = arith.truncf %42 : vector<2x8x128xf32> to vector<2x8x128xbf16>
    %44 = vector.shape_cast %40 : vector<16x128xf32> to vector<2x8x128xf32>
    %45 = arith.truncf %44 : vector<2x8x128xf32> to vector<2x8x128xbf16>
    %46 = vector.shape_cast %41 : vector<16x128xf32> to vector<2x8x128xf32>
    %47 = arith.truncf %46 : vector<2x8x128xf32> to vector<2x8x128xbf16>
    "tpu.trace_start"() <{level = 10 : i32, message = "bqd,bkd->bqk"}> : () -> ()
    %cst_19 = arith.constant dense<0.000000e+00> : vector<2x8x8xf32>
    %48 = tpu.matmul %43, %45, %cst_19 {dimension_numbers = #tpu.dot_dimension_numbers<[2], [2], [1], [1], [0, 0, 0, 1, 1, 1], [0], [0]>} : vector<2x8x128xbf16>, vector<2x8x128xbf16>, vector<2x8x8xf32> -> vector<2x8x8xf32>
    "tpu.trace_stop"() : () -> ()
    %cst_20 = arith.constant 0.353553385 : f32
    %49 = vector.broadcast %cst_20 : f32 to vector<2x8x8xf32>
    %50 = arith.mulf %48, %49 : vector<2x8x8xf32>
    %51 = vector.broadcast %5 : vector<2x1x8xf32> to vector<2x8x8xf32>
    %52 = arith.addf %50, %51 : vector<2x8x8xf32>
    %cst_21 = arith.constant dense<0xFF800000> : vector<2x8xf32>
    %53 = vector.multi_reduction <maximumf>, %52, %cst_21 [2] : vector<2x8x8xf32> to vector<2x8xf32>
    %54 = vector.shape_cast %53 : vector<2x8xf32> to vector<2x8x1xf32>
    %55 = vector.broadcast %54 : vector<2x8x1xf32> to vector<2x8x8xf32>
    %56 = arith.subf %52, %55 : vector<2x8x8xf32>
    %57 = math.exp %56 : vector<2x8x8xf32>
    %cst_22 = arith.constant dense<0.000000e+00> : vector<2x8xf32>
    %58 = vector.multi_reduction <add>, %57, %cst_22 [2] : vector<2x8x8xf32> to vector<2x8xf32>
    %59 = vector.shape_cast %58 : vector<2x8xf32> to vector<2x8x1xf32>
    %60 = vector.broadcast %59 : vector<2x8x1xf32> to vector<2x8x8xf32>
    %61 = arith.divf %57, %60 : vector<2x8x8xf32>
    %62 = arith.truncf %61 : vector<2x8x8xf32> to vector<2x8x8xbf16>
    "tpu.trace_start"() <{level = 10 : i32, message = "bqk,bkd->bqd"}> : () -> ()
    %cst_23 = arith.constant dense<0.000000e+00> : vector<2x8x128xf32>
    %63 = tpu.matmul %62, %47, %cst_23 {dimension_numbers = #tpu.dot_dimension_numbers<[2], [1], [1], [2], [0, 0, 0, 1, 1, 2], [0], [0]>} : vector<2x8x8xbf16>, vector<2x8x128xbf16>, vector<2x8x128xf32> -> vector<2x8x128xf32>
    "tpu.trace_stop"() : () -> ()
    %64 = vector.shape_cast %63 : vector<2x8x128xf32> to vector<16x128xf32>
    %65 = arith.truncf %64 : vector<16x128xf32> to vector<16x128xbf16>
    %c0_24 = arith.constant 0 : index
    %c0_25 = arith.constant 0 : index
    %c0_26 = arith.constant 0 : index
    %66 = vector.load %arg6[%c0_24, %c0_25, %c0_26] : memref<8x128x128xbf16, #tpu.memory_space<vmem>>, vector<1x128x128xbf16>
    %67 = vector.shape_cast %66 : vector<1x128x128xbf16> to vector<128x128xbf16>
    %cst_27 = arith.constant dense<0.000000e+00> : vector<16x128xf32>
    %68 = tpu.matmul %65, %67, %cst_27 {dimension_numbers = #tpu.dot_dimension_numbers<[1], [0], [0], [1], [0, 0, 1, 1], [], []>} : vector<16x128xbf16>, vector<128x128xbf16>, vector<16x128xf32> -> vector<16x128xf32>
    %69 = vector.extract_strided_slice %38 {offsets = [0, 128], sizes = [16, 128], strides = [1, 1]} : vector<16x1536xf32> to vector<16x128xf32>
    %70 = vector.extract_strided_slice %38 {offsets = [0, 640], sizes = [16, 128], strides = [1, 1]} : vector<16x1536xf32> to vector<16x128xf32>
    %71 = vector.extract_strided_slice %38 {offsets = [0, 1152], sizes = [16, 128], strides = [1, 1]} : vector<16x1536xf32> to vector<16x128xf32>
    %72 = vector.shape_cast %69 : vector<16x128xf32> to vector<2x8x128xf32>
    %73 = arith.truncf %72 : vector<2x8x128xf32> to vector<2x8x128xbf16>
    %74 = vector.shape_cast %70 : vector<16x128xf32> to vector<2x8x128xf32>
    %75 = arith.truncf %74 : vector<2x8x128xf32> to vector<2x8x128xbf16>
    %76 = vector.shape_cast %71 : vector<16x128xf32> to vector<2x8x128xf32>
    %77 = arith.truncf %76 : vector<2x8x128xf32> to vector<2x8x128xbf16>
    "tpu.trace_start"() <{level = 10 : i32, message = "bqd,bkd->bqk"}> : () -> ()
    %cst_28 = arith.constant dense<0.000000e+00> : vector<2x8x8xf32>
    %78 = tpu.matmul %73, %75, %cst_28 {dimension_numbers = #tpu.dot_dimension_numbers<[2], [2], [1], [1], [0, 0, 0, 1, 1, 1], [0], [0]>} : vector<2x8x128xbf16>, vector<2x8x128xbf16>, vector<2x8x8xf32> -> vector<2x8x8xf32>
    "tpu.trace_stop"() : () -> ()
    %cst_29 = arith.constant 0.353553385 : f32
    %79 = vector.broadcast %cst_29 : f32 to vector<2x8x8xf32>
    %80 = arith.mulf %78, %79 : vector<2x8x8xf32>
    %81 = vector.broadcast %5 : vector<2x1x8xf32> to vector<2x8x8xf32>
    %82 = arith.addf %80, %81 : vector<2x8x8xf32>
    %cst_30 = arith.constant dense<0xFF800000> : vector<2x8xf32>
    %83 = vector.multi_reduction <maximumf>, %82, %cst_30 [2] : vector<2x8x8xf32> to vector<2x8xf32>
    %84 = vector.shape_cast %83 : vector<2x8xf32> to vector<2x8x1xf32>
    %85 = vector.broadcast %84 : vector<2x8x1xf32> to vector<2x8x8xf32>
    %86 = arith.subf %82, %85 : vector<2x8x8xf32>
    %87 = math.exp %86 : vector<2x8x8xf32>
    %cst_31 = arith.constant dense<0.000000e+00> : vector<2x8xf32>
    %88 = vector.multi_reduction <add>, %87, %cst_31 [2] : vector<2x8x8xf32> to vector<2x8xf32>
    %89 = vector.shape_cast %88 : vector<2x8xf32> to vector<2x8x1xf32>
    %90 = vector.broadcast %89 : vector<2x8x1xf32> to vector<2x8x8xf32>
    %91 = arith.divf %87, %90 : vector<2x8x8xf32>
    %92 = arith.truncf %91 : vector<2x8x8xf32> to vector<2x8x8xbf16>
    "tpu.trace_start"() <{level = 10 : i32, message = "bqk,bkd->bqd"}> : () -> ()
    %cst_32 = arith.constant dense<0.000000e+00> : vector<2x8x128xf32>
    %93 = tpu.matmul %92, %77, %cst_32 {dimension_numbers = #tpu.dot_dimension_numbers<[2], [1], [1], [2], [0, 0, 0, 1, 1, 2], [0], [0]>} : vector<2x8x8xbf16>, vector<2x8x128xbf16>, vector<2x8x128xf32> -> vector<2x8x128xf32>
    "tpu.trace_stop"() : () -> ()
    %94 = vector.shape_cast %93 : vector<2x8x128xf32> to vector<16x128xf32>
    %95 = arith.truncf %94 : vector<16x128xf32> to vector<16x128xbf16>
    %c1 = arith.constant 1 : index
    %c0_33 = arith.constant 0 : index
    %c0_34 = arith.constant 0 : index
    %96 = vector.load %arg6[%c1, %c0_33, %c0_34] : memref<8x128x128xbf16, #tpu.memory_space<vmem>>, vector<1x128x128xbf16>
    %97 = vector.shape_cast %96 : vector<1x128x128xbf16> to vector<128x128xbf16>
    %cst_35 = arith.constant dense<0.000000e+00> : vector<16x128xf32>
    %98 = tpu.matmul %95, %97, %cst_35 {dimension_numbers = #tpu.dot_dimension_numbers<[1], [0], [0], [1], [0, 0, 1, 1], [], []>} : vector<16x128xbf16>, vector<128x128xbf16>, vector<16x128xf32> -> vector<16x128xf32>
    %99 = arith.addf %68, %98 : vector<16x128xf32>
    %100 = vector.extract_strided_slice %38 {offsets = [0, 256], sizes = [16, 128], strides = [1, 1]} : vector<16x1536xf32> to vector<16x128xf32>
    %101 = vector.extract_strided_slice %38 {offsets = [0, 768], sizes = [16, 128], strides = [1, 1]} : vector<16x1536xf32> to vector<16x128xf32>
    %102 = vector.extract_strided_slice %38 {offsets = [0, 1280], sizes = [16, 128], strides = [1, 1]} : vector<16x1536xf32> to vector<16x128xf32>
    %103 = vector.shape_cast %100 : vector<16x128xf32> to vector<2x8x128xf32>
    %104 = arith.truncf %103 : vector<2x8x128xf32> to vector<2x8x128xbf16>
    %105 = vector.shape_cast %101 : vector<16x128xf32> to vector<2x8x128xf32>
    %106 = arith.truncf %105 : vector<2x8x128xf32> to vector<2x8x128xbf16>
    %107 = vector.shape_cast %102 : vector<16x128xf32> to vector<2x8x128xf32>
    %108 = arith.truncf %107 : vector<2x8x128xf32> to vector<2x8x128xbf16>
    "tpu.trace_start"() <{level = 10 : i32, message = "bqd,bkd->bqk"}> : () -> ()
    %cst_36 = arith.constant dense<0.000000e+00> : vector<2x8x8xf32>
    %109 = tpu.matmul %104, %106, %cst_36 {dimension_numbers = #tpu.dot_dimension_numbers<[2], [2], [1], [1], [0, 0, 0, 1, 1, 1], [0], [0]>} : vector<2x8x128xbf16>, vector<2x8x128xbf16>, vector<2x8x8xf32> -> vector<2x8x8xf32>
    "tpu.trace_stop"() : () -> ()
    %cst_37 = arith.constant 0.353553385 : f32
    %110 = vector.broadcast %cst_37 : f32 to vector<2x8x8xf32>
    %111 = arith.mulf %109, %110 : vector<2x8x8xf32>
    %112 = vector.broadcast %5 : vector<2x1x8xf32> to vector<2x8x8xf32>
    %113 = arith.addf %111, %112 : vector<2x8x8xf32>
    %cst_38 = arith.constant dense<0xFF800000> : vector<2x8xf32>
    %114 = vector.multi_reduction <maximumf>, %113, %cst_38 [2] : vector<2x8x8xf32> to vector<2x8xf32>
    %115 = vector.shape_cast %114 : vector<2x8xf32> to vector<2x8x1xf32>
    %116 = vector.broadcast %115 : vector<2x8x1xf32> to vector<2x8x8xf32>
    %117 = arith.subf %113, %116 : vector<2x8x8xf32>
    %118 = math.exp %117 : vector<2x8x8xf32>
    %cst_39 = arith.constant dense<0.000000e+00> : vector<2x8xf32>
    %119 = vector.multi_reduction <add>, %118, %cst_39 [2] : vector<2x8x8xf32> to vector<2x8xf32>
    %120 = vector.shape_cast %119 : vector<2x8xf32> to vector<2x8x1xf32>
    %121 = vector.broadcast %120 : vector<2x8x1xf32> to vector<2x8x8xf32>
    %122 = arith.divf %118, %121 : vector<2x8x8xf32>
    %123 = arith.truncf %122 : vector<2x8x8xf32> to vector<2x8x8xbf16>
    "tpu.trace_start"() <{level = 10 : i32, message = "bqk,bkd->bqd"}> : () -> ()
    %cst_40 = arith.constant dense<0.000000e+00> : vector<2x8x128xf32>
    %124 = tpu.matmul %123, %108, %cst_40 {dimension_numbers = #tpu.dot_dimension_numbers<[2], [1], [1], [2], [0, 0, 0, 1, 1, 2], [0], [0]>} : vector<2x8x8xbf16>, vector<2x8x128xbf16>, vector<2x8x128xf32> -> vector<2x8x128xf32>
    "tpu.trace_stop"() : () -> ()
    %125 = vector.shape_cast %124 : vector<2x8x128xf32> to vector<16x128xf32>
    %126 = arith.truncf %125 : vector<16x128xf32> to vector<16x128xbf16>
    %c2 = arith.constant 2 : index
    %c0_41 = arith.constant 0 : index
    %c0_42 = arith.constant 0 : index
    %127 = vector.load %arg6[%c2, %c0_41, %c0_42] : memref<8x128x128xbf16, #tpu.memory_space<vmem>>, vector<1x128x128xbf16>
    %128 = vector.shape_cast %127 : vector<1x128x128xbf16> to vector<128x128xbf16>
    %cst_43 = arith.constant dense<0.000000e+00> : vector<16x128xf32>
    %129 = tpu.matmul %126, %128, %cst_43 {dimension_numbers = #tpu.dot_dimension_numbers<[1], [0], [0], [1], [0, 0, 1, 1], [], []>} : vector<16x128xbf16>, vector<128x128xbf16>, vector<16x128xf32> -> vector<16x128xf32>
    %130 = arith.addf %99, %129 : vector<16x128xf32>
    %131 = vector.extract_strided_slice %38 {offsets = [0, 384], sizes = [16, 128], strides = [1, 1]} : vector<16x1536xf32> to vector<16x128xf32>
    %132 = vector.extract_strided_slice %38 {offsets = [0, 896], sizes = [16, 128], strides = [1, 1]} : vector<16x1536xf32> to vector<16x128xf32>
    %133 = vector.extract_strided_slice %38 {offsets = [0, 1408], sizes = [16, 128], strides = [1, 1]} : vector<16x1536xf32> to vector<16x128xf32>
    %134 = vector.shape_cast %131 : vector<16x128xf32> to vector<2x8x128xf32>
    %135 = arith.truncf %134 : vector<2x8x128xf32> to vector<2x8x128xbf16>
    %136 = vector.shape_cast %132 : vector<16x128xf32> to vector<2x8x128xf32>
    %137 = arith.truncf %136 : vector<2x8x128xf32> to vector<2x8x128xbf16>
    %138 = vector.shape_cast %133 : vector<16x128xf32> to vector<2x8x128xf32>
    %139 = arith.truncf %138 : vector<2x8x128xf32> to vector<2x8x128xbf16>
    "tpu.trace_start"() <{level = 10 : i32, message = "bqd,bkd->bqk"}> : () -> ()
    %cst_44 = arith.constant dense<0.000000e+00> : vector<2x8x8xf32>
    %140 = tpu.matmul %135, %137, %cst_44 {dimension_numbers = #tpu.dot_dimension_numbers<[2], [2], [1], [1], [0, 0, 0, 1, 1, 1], [0], [0]>} : vector<2x8x128xbf16>, vector<2x8x128xbf16>, vector<2x8x8xf32> -> vector<2x8x8xf32>
    "tpu.trace_stop"() : () -> ()
    %cst_45 = arith.constant 0.353553385 : f32
    %141 = vector.broadcast %cst_45 : f32 to vector<2x8x8xf32>
    %142 = arith.mulf %140, %141 : vector<2x8x8xf32>
    %143 = vector.broadcast %5 : vector<2x1x8xf32> to vector<2x8x8xf32>
    %144 = arith.addf %142, %143 : vector<2x8x8xf32>
    %cst_46 = arith.constant dense<0xFF800000> : vector<2x8xf32>
    %145 = vector.multi_reduction <maximumf>, %144, %cst_46 [2] : vector<2x8x8xf32> to vector<2x8xf32>
    %146 = vector.shape_cast %145 : vector<2x8xf32> to vector<2x8x1xf32>
    %147 = vector.broadcast %146 : vector<2x8x1xf32> to vector<2x8x8xf32>
    %148 = arith.subf %144, %147 : vector<2x8x8xf32>
    %149 = math.exp %148 : vector<2x8x8xf32>
    %cst_47 = arith.constant dense<0.000000e+00> : vector<2x8xf32>
    %150 = vector.multi_reduction <add>, %149, %cst_47 [2] : vector<2x8x8xf32> to vector<2x8xf32>
    %151 = vector.shape_cast %150 : vector<2x8xf32> to vector<2x8x1xf32>
    %152 = vector.broadcast %151 : vector<2x8x1xf32> to vector<2x8x8xf32>
    %153 = arith.divf %149, %152 : vector<2x8x8xf32>
    %154 = arith.truncf %153 : vector<2x8x8xf32> to vector<2x8x8xbf16>
    "tpu.trace_start"() <{level = 10 : i32, message = "bqk,bkd->bqd"}> : () -> ()
    %cst_48 = arith.constant dense<0.000000e+00> : vector<2x8x128xf32>
    %155 = tpu.matmul %154, %139, %cst_48 {dimension_numbers = #tpu.dot_dimension_numbers<[2], [1], [1], [2], [0, 0, 0, 1, 1, 2], [0], [0]>} : vector<2x8x8xbf16>, vector<2x8x128xbf16>, vector<2x8x128xf32> -> vector<2x8x128xf32>
    "tpu.trace_stop"() : () -> ()
    %156 = vector.shape_cast %155 : vector<2x8x128xf32> to vector<16x128xf32>
    %157 = arith.truncf %156 : vector<16x128xf32> to vector<16x128xbf16>
    %c3 = arith.constant 3 : index
    %c0_49 = arith.constant 0 : index
    %c0_50 = arith.constant 0 : index
    %158 = vector.load %arg6[%c3, %c0_49, %c0_50] : memref<8x128x128xbf16, #tpu.memory_space<vmem>>, vector<1x128x128xbf16>
    %159 = vector.shape_cast %158 : vector<1x128x128xbf16> to vector<128x128xbf16>
    %cst_51 = arith.constant dense<0.000000e+00> : vector<16x128xf32>
    %160 = tpu.matmul %157, %159, %cst_51 {dimension_numbers = #tpu.dot_dimension_numbers<[1], [0], [0], [1], [0, 0, 1, 1], [], []>} : vector<16x128xbf16>, vector<128x128xbf16>, vector<16x128xf32> -> vector<16x128xf32>
    %161 = arith.addf %130, %160 : vector<16x128xf32>
    %c0_52 = arith.constant 0 : index
    %c0_53 = arith.constant 0 : index
    %c0_54 = arith.constant 0 : index
    %162 = vector.load %arg7[%c0_52, %c0_53, %c0_54] : memref<2x1x128xf32, #tpu.memory_space<vmem>>, vector<1x1x128xf32>
    %163 = vector.shape_cast %162 : vector<1x1x128xf32> to vector<1x128xf32>
    %164 = vector.broadcast %163 : vector<1x128xf32> to vector<16x128xf32>
    %165 = arith.addf %161, %164 : vector<16x128xf32>
    %166 = arith.addf %165, %30 : vector<16x128xf32>
    %c0_55 = arith.constant 0 : index
    %c0_56 = arith.constant 0 : index
    %c0_57 = arith.constant 0 : index
    %167 = vector.load %arg8[%c0_55, %c0_56, %c0_57] : memref<2x1x128xf32, #tpu.memory_space<vmem>>, vector<1x1x128xf32>
    %168 = vector.shape_cast %167 : vector<1x1x128xf32> to vector<1x128xf32>
    %c0_58 = arith.constant 0 : index
    %c0_59 = arith.constant 0 : index
    %c0_60 = arith.constant 0 : index
    %169 = vector.load %arg9[%c0_58, %c0_59, %c0_60] : memref<2x1x128xf32, #tpu.memory_space<vmem>>, vector<1x1x128xf32>
    %170 = vector.shape_cast %169 : vector<1x1x128xf32> to vector<1x128xf32>
    %171 = arith.mulf %166, %4 : vector<16x128xf32>
    %cst_61 = arith.constant dense<0.000000e+00> : vector<16xf32>
    %172 = vector.multi_reduction <add>, %171, %cst_61 [1] : vector<16x128xf32> to vector<16xf32>
    %173 = vector.shape_cast %172 : vector<16xf32> to vector<16x1xf32>
    %cst_62 = arith.constant 3.125000e-02 : f32
    %174 = vector.broadcast %cst_62 : f32 to vector<16x1xf32>
    %175 = arith.mulf %173, %174 : vector<16x1xf32>
    %176 = vector.broadcast %175 : vector<16x1xf32> to vector<16x128xf32>
    %177 = arith.subf %166, %176 : vector<16x128xf32>
    %178 = arith.mulf %177, %4 : vector<16x128xf32>
    %179 = arith.mulf %178, %178 : vector<16x128xf32>
    %cst_63 = arith.constant dense<0.000000e+00> : vector<16xf32>
    %180 = vector.multi_reduction <add>, %179, %cst_63 [1] : vector<16x128xf32> to vector<16xf32>
    %181 = vector.shape_cast %180 : vector<16xf32> to vector<16x1xf32>
    %cst_64 = arith.constant 3.125000e-02 : f32
    %182 = vector.broadcast %cst_64 : f32 to vector<16x1xf32>
    %183 = arith.mulf %181, %182 : vector<16x1xf32>
    %cst_65 = arith.constant 9.99999996E-13 : f32
    %184 = vector.broadcast %cst_65 : f32 to vector<16x1xf32>
    %185 = arith.addf %183, %184 : vector<16x1xf32>
    %186 = math.rsqrt %185 : vector<16x1xf32>
    %187 = vector.broadcast %186 : vector<16x1xf32> to vector<16x128xf32>
    %188 = arith.mulf %178, %187 : vector<16x128xf32>
    %189 = vector.broadcast %168 : vector<1x128xf32> to vector<16x128xf32>
    %190 = arith.mulf %188, %189 : vector<16x128xf32>
    %191 = vector.broadcast %170 : vector<1x128xf32> to vector<16x128xf32>
    %192 = arith.addf %190, %191 : vector<16x128xf32>
    %193 = arith.truncf %192 : vector<16x128xf32> to vector<16x128xbf16>
    %c0_66 = arith.constant 0 : index
    %c0_67 = arith.constant 0 : index
    %c0_68 = arith.constant 0 : index
    %194 = vector.load %arg10[%c0_66, %c0_67, %c0_68] : memref<2x128x128xbf16, #tpu.memory_space<vmem>>, vector<1x128x128xbf16>
    %195 = vector.shape_cast %194 : vector<1x128x128xbf16> to vector<128x128xbf16>
    %cst_69 = arith.constant dense<0.000000e+00> : vector<16x128xf32>
    %196 = tpu.matmul %193, %195, %cst_69 {dimension_numbers = #tpu.dot_dimension_numbers<[1], [0], [0], [1], [0, 0, 1, 1], [], []>} : vector<16x128xbf16>, vector<128x128xbf16>, vector<16x128xf32> -> vector<16x128xf32>
    %c0_70 = arith.constant 0 : index
    %c0_71 = arith.constant 0 : index
    %c0_72 = arith.constant 0 : index
    %197 = vector.load %arg11[%c0_70, %c0_71, %c0_72] : memref<2x1x128xf32, #tpu.memory_space<vmem>>, vector<1x1x128xf32>
    %198 = vector.shape_cast %197 : vector<1x1x128xf32> to vector<1x128xf32>
    %199 = vector.broadcast %198 : vector<1x128xf32> to vector<16x128xf32>
    %200 = arith.addf %196, %199 : vector<16x128xf32>
    %201 = arith.mulf %200, %200 : vector<16x128xf32>
    %202 = arith.mulf %200, %201 : vector<16x128xf32>
    %cst_73 = arith.constant 4.471500e-02 : f32
    %203 = vector.broadcast %cst_73 : f32 to vector<16x128xf32>
    %204 = arith.mulf %203, %202 : vector<16x128xf32>
    %205 = arith.addf %200, %204 : vector<16x128xf32>
    %cst_74 = arith.constant 0.797884583 : f32
    %206 = vector.broadcast %cst_74 : f32 to vector<16x128xf32>
    %207 = arith.mulf %206, %205 : vector<16x128xf32>
    %208 = math.tanh %207 : vector<16x128xf32>
    %cst_75 = arith.constant 1.000000e+00 : f32
    %209 = vector.broadcast %cst_75 : f32 to vector<16x128xf32>
    %210 = arith.addf %209, %208 : vector<16x128xf32>
    %cst_76 = arith.constant 5.000000e-01 : f32
    %211 = vector.broadcast %cst_76 : f32 to vector<16x128xf32>
    %212 = arith.mulf %211, %210 : vector<16x128xf32>
    %213 = arith.mulf %200, %212 : vector<16x128xf32>
    %214 = arith.truncf %213 : vector<16x128xf32> to vector<16x128xbf16>
    %c0_77 = arith.constant 0 : index
    %c0_78 = arith.constant 0 : index
    %c0_79 = arith.constant 0 : index
    %215 = vector.load %arg12[%c0_77, %c0_78, %c0_79] : memref<2x128x128xbf16, #tpu.memory_space<vmem>>, vector<1x128x128xbf16>
    %216 = vector.shape_cast %215 : vector<1x128x128xbf16> to vector<128x128xbf16>
    %cst_80 = arith.constant dense<0.000000e+00> : vector<16x128xf32>
    %217 = tpu.matmul %214, %216, %cst_80 {dimension_numbers = #tpu.dot_dimension_numbers<[1], [0], [0], [1], [0, 0, 1, 1], [], []>} : vector<16x128xbf16>, vector<128x128xbf16>, vector<16x128xf32> -> vector<16x128xf32>
    %c0_81 = arith.constant 0 : index
    %c0_82 = arith.constant 0 : index
    %c0_83 = arith.constant 0 : index
    %218 = vector.load %arg13[%c0_81, %c0_82, %c0_83] : memref<2x1x128xf32, #tpu.memory_space<vmem>>, vector<1x1x128xf32>
    %219 = vector.shape_cast %218 : vector<1x1x128xf32> to vector<1x128xf32>
    %220 = vector.broadcast %219 : vector<1x128xf32> to vector<16x128xf32>
    %221 = arith.addf %217, %220 : vector<16x128xf32>
    %222 = arith.addf %221, %192 : vector<16x128xf32>
    %c0_84 = arith.constant 0 : index
    %c0_85 = arith.constant 0 : index
    %c0_86 = arith.constant 0 : index
    %223 = vector.load %arg14[%c0_84, %c0_85, %c0_86] : memref<2x1x128xf32, #tpu.memory_space<vmem>>, vector<1x1x128xf32>
    %224 = vector.shape_cast %223 : vector<1x1x128xf32> to vector<1x128xf32>
    %c0_87 = arith.constant 0 : index
    %c0_88 = arith.constant 0 : index
    %c0_89 = arith.constant 0 : index
    %225 = vector.load %arg15[%c0_87, %c0_88, %c0_89] : memref<2x1x128xf32, #tpu.memory_space<vmem>>, vector<1x1x128xf32>
    %226 = vector.shape_cast %225 : vector<1x1x128xf32> to vector<1x128xf32>
    %227 = arith.mulf %222, %4 : vector<16x128xf32>
    %cst_90 = arith.constant dense<0.000000e+00> : vector<16xf32>
    %228 = vector.multi_reduction <add>, %227, %cst_90 [1] : vector<16x128xf32> to vector<16xf32>
    %229 = vector.shape_cast %228 : vector<16xf32> to vector<16x1xf32>
    %cst_91 = arith.constant 3.125000e-02 : f32
    %230 = vector.broadcast %cst_91 : f32 to vector<16x1xf32>
    %231 = arith.mulf %229, %230 : vector<16x1xf32>
    %232 = vector.broadcast %231 : vector<16x1xf32> to vector<16x128xf32>
    %233 = arith.subf %222, %232 : vector<16x128xf32>
    %234 = arith.mulf %233, %4 : vector<16x128xf32>
    %235 = arith.mulf %234, %234 : vector<16x128xf32>
    %cst_92 = arith.constant dense<0.000000e+00> : vector<16xf32>
    %236 = vector.multi_reduction <add>, %235, %cst_92 [1] : vector<16x128xf32> to vector<16xf32>
    %237 = vector.shape_cast %236 : vector<16xf32> to vector<16x1xf32>
    %cst_93 = arith.constant 3.125000e-02 : f32
    %238 = vector.broadcast %cst_93 : f32 to vector<16x1xf32>
    %239 = arith.mulf %237, %238 : vector<16x1xf32>
    %cst_94 = arith.constant 9.99999996E-13 : f32
    %240 = vector.broadcast %cst_94 : f32 to vector<16x1xf32>
    %241 = arith.addf %239, %240 : vector<16x1xf32>
    %242 = math.rsqrt %241 : vector<16x1xf32>
    %243 = vector.broadcast %242 : vector<16x1xf32> to vector<16x128xf32>
    %244 = arith.mulf %234, %243 : vector<16x128xf32>
    %245 = vector.broadcast %224 : vector<1x128xf32> to vector<16x128xf32>
    %246 = arith.mulf %244, %245 : vector<16x128xf32>
    %247 = vector.broadcast %226 : vector<1x128xf32> to vector<16x128xf32>
    %248 = arith.addf %246, %247 : vector<16x128xf32>
    %249 = arith.truncf %248 : vector<16x128xf32> to vector<16x128xbf16>
    %c1_95 = arith.constant 1 : index
    %c0_96 = arith.constant 0 : index
    %c0_97 = arith.constant 0 : index
    %250 = vector.load %arg4[%c1_95, %c0_96, %c0_97] : memref<2x128x1536xbf16, #tpu.memory_space<vmem>>, vector<1x128x1536xbf16>
    %251 = vector.shape_cast %250 : vector<1x128x1536xbf16> to vector<128x1536xbf16>
    %cst_98 = arith.constant dense<0.000000e+00> : vector<16x1536xf32>
    %252 = tpu.matmul %249, %251, %cst_98 {dimension_numbers = #tpu.dot_dimension_numbers<[1], [0], [0], [1], [0, 0, 1, 1], [], []>} : vector<16x128xbf16>, vector<128x1536xbf16>, vector<16x1536xf32> -> vector<16x1536xf32>
    %c1_99 = arith.constant 1 : index
    %c0_100 = arith.constant 0 : index
    %c0_101 = arith.constant 0 : index
    %253 = vector.load %arg5[%c1_99, %c0_100, %c0_101] : memref<2x1x1536xf32, #tpu.memory_space<vmem>>, vector<1x1x1536xf32>
    %254 = vector.shape_cast %253 : vector<1x1x1536xf32> to vector<1x1536xf32>
    %255 = vector.broadcast %254 : vector<1x1536xf32> to vector<16x1536xf32>
    %256 = arith.addf %252, %255 : vector<16x1536xf32>
    %257 = vector.extract_strided_slice %256 {offsets = [0, 0], sizes = [16, 128], strides = [1, 1]} : vector<16x1536xf32> to vector<16x128xf32>
    %258 = vector.extract_strided_slice %256 {offsets = [0, 512], sizes = [16, 128], strides = [1, 1]} : vector<16x1536xf32> to vector<16x128xf32>
    %259 = vector.extract_strided_slice %256 {offsets = [0, 1024], sizes = [16, 128], strides = [1, 1]} : vector<16x1536xf32> to vector<16x128xf32>
    %260 = vector.shape_cast %257 : vector<16x128xf32> to vector<2x8x128xf32>
    %261 = arith.truncf %260 : vector<2x8x128xf32> to vector<2x8x128xbf16>
    %262 = vector.shape_cast %258 : vector<16x128xf32> to vector<2x8x128xf32>
    %263 = arith.truncf %262 : vector<2x8x128xf32> to vector<2x8x128xbf16>
    %264 = vector.shape_cast %259 : vector<16x128xf32> to vector<2x8x128xf32>
    %265 = arith.truncf %264 : vector<2x8x128xf32> to vector<2x8x128xbf16>
    "tpu.trace_start"() <{level = 10 : i32, message = "bqd,bkd->bqk"}> : () -> ()
    %cst_102 = arith.constant dense<0.000000e+00> : vector<2x8x8xf32>
    %266 = tpu.matmul %261, %263, %cst_102 {dimension_numbers = #tpu.dot_dimension_numbers<[2], [2], [1], [1], [0, 0, 0, 1, 1, 1], [0], [0]>} : vector<2x8x128xbf16>, vector<2x8x128xbf16>, vector<2x8x8xf32> -> vector<2x8x8xf32>
    "tpu.trace_stop"() : () -> ()
    %cst_103 = arith.constant 0.353553385 : f32
    %267 = vector.broadcast %cst_103 : f32 to vector<2x8x8xf32>
    %268 = arith.mulf %266, %267 : vector<2x8x8xf32>
    %269 = vector.broadcast %5 : vector<2x1x8xf32> to vector<2x8x8xf32>
    %270 = arith.addf %268, %269 : vector<2x8x8xf32>
    %cst_104 = arith.constant dense<0xFF800000> : vector<2x8xf32>
    %271 = vector.multi_reduction <maximumf>, %270, %cst_104 [2] : vector<2x8x8xf32> to vector<2x8xf32>
    %272 = vector.shape_cast %271 : vector<2x8xf32> to vector<2x8x1xf32>
    %273 = vector.broadcast %272 : vector<2x8x1xf32> to vector<2x8x8xf32>
    %274 = arith.subf %270, %273 : vector<2x8x8xf32>
    %275 = math.exp %274 : vector<2x8x8xf32>
    %cst_105 = arith.constant dense<0.000000e+00> : vector<2x8xf32>
    %276 = vector.multi_reduction <add>, %275, %cst_105 [2] : vector<2x8x8xf32> to vector<2x8xf32>
    %277 = vector.shape_cast %276 : vector<2x8xf32> to vector<2x8x1xf32>
    %278 = vector.broadcast %277 : vector<2x8x1xf32> to vector<2x8x8xf32>
    %279 = arith.divf %275, %278 : vector<2x8x8xf32>
    %280 = arith.truncf %279 : vector<2x8x8xf32> to vector<2x8x8xbf16>
    "tpu.trace_start"() <{level = 10 : i32, message = "bqk,bkd->bqd"}> : () -> ()
    %cst_106 = arith.constant dense<0.000000e+00> : vector<2x8x128xf32>
    %281 = tpu.matmul %280, %265, %cst_106 {dimension_numbers = #tpu.dot_dimension_numbers<[2], [1], [1], [2], [0, 0, 0, 1, 1, 2], [0], [0]>} : vector<2x8x8xbf16>, vector<2x8x128xbf16>, vector<2x8x128xf32> -> vector<2x8x128xf32>
    "tpu.trace_stop"() : () -> ()
    %282 = vector.shape_cast %281 : vector<2x8x128xf32> to vector<16x128xf32>
    %283 = arith.truncf %282 : vector<16x128xf32> to vector<16x128xbf16>
    %c4 = arith.constant 4 : index
    %c0_107 = arith.constant 0 : index
    %c0_108 = arith.constant 0 : index
    %284 = vector.load %arg6[%c4, %c0_107, %c0_108] : memref<8x128x128xbf16, #tpu.memory_space<vmem>>, vector<1x128x128xbf16>
    %285 = vector.shape_cast %284 : vector<1x128x128xbf16> to vector<128x128xbf16>
    %cst_109 = arith.constant dense<0.000000e+00> : vector<16x128xf32>
    %286 = tpu.matmul %283, %285, %cst_109 {dimension_numbers = #tpu.dot_dimension_numbers<[1], [0], [0], [1], [0, 0, 1, 1], [], []>} : vector<16x128xbf16>, vector<128x128xbf16>, vector<16x128xf32> -> vector<16x128xf32>
    %287 = vector.extract_strided_slice %256 {offsets = [0, 128], sizes = [16, 128], strides = [1, 1]} : vector<16x1536xf32> to vector<16x128xf32>
    %288 = vector.extract_strided_slice %256 {offsets = [0, 640], sizes = [16, 128], strides = [1, 1]} : vector<16x1536xf32> to vector<16x128xf32>
    %289 = vector.extract_strided_slice %256 {offsets = [0, 1152], sizes = [16, 128], strides = [1, 1]} : vector<16x1536xf32> to vector<16x128xf32>
    %290 = vector.shape_cast %287 : vector<16x128xf32> to vector<2x8x128xf32>
    %291 = arith.truncf %290 : vector<2x8x128xf32> to vector<2x8x128xbf16>
    %292 = vector.shape_cast %288 : vector<16x128xf32> to vector<2x8x128xf32>
    %293 = arith.truncf %292 : vector<2x8x128xf32> to vector<2x8x128xbf16>
    %294 = vector.shape_cast %289 : vector<16x128xf32> to vector<2x8x128xf32>
    %295 = arith.truncf %294 : vector<2x8x128xf32> to vector<2x8x128xbf16>
    "tpu.trace_start"() <{level = 10 : i32, message = "bqd,bkd->bqk"}> : () -> ()
    %cst_110 = arith.constant dense<0.000000e+00> : vector<2x8x8xf32>
    %296 = tpu.matmul %291, %293, %cst_110 {dimension_numbers = #tpu.dot_dimension_numbers<[2], [2], [1], [1], [0, 0, 0, 1, 1, 1], [0], [0]>} : vector<2x8x128xbf16>, vector<2x8x128xbf16>, vector<2x8x8xf32> -> vector<2x8x8xf32>
    "tpu.trace_stop"() : () -> ()
    %cst_111 = arith.constant 0.353553385 : f32
    %297 = vector.broadcast %cst_111 : f32 to vector<2x8x8xf32>
    %298 = arith.mulf %296, %297 : vector<2x8x8xf32>
    %299 = vector.broadcast %5 : vector<2x1x8xf32> to vector<2x8x8xf32>
    %300 = arith.addf %298, %299 : vector<2x8x8xf32>
    %cst_112 = arith.constant dense<0xFF800000> : vector<2x8xf32>
    %301 = vector.multi_reduction <maximumf>, %300, %cst_112 [2] : vector<2x8x8xf32> to vector<2x8xf32>
    %302 = vector.shape_cast %301 : vector<2x8xf32> to vector<2x8x1xf32>
    %303 = vector.broadcast %302 : vector<2x8x1xf32> to vector<2x8x8xf32>
    %304 = arith.subf %300, %303 : vector<2x8x8xf32>
    %305 = math.exp %304 : vector<2x8x8xf32>
    %cst_113 = arith.constant dense<0.000000e+00> : vector<2x8xf32>
    %306 = vector.multi_reduction <add>, %305, %cst_113 [2] : vector<2x8x8xf32> to vector<2x8xf32>
    %307 = vector.shape_cast %306 : vector<2x8xf32> to vector<2x8x1xf32>
    %308 = vector.broadcast %307 : vector<2x8x1xf32> to vector<2x8x8xf32>
    %309 = arith.divf %305, %308 : vector<2x8x8xf32>
    %310 = arith.truncf %309 : vector<2x8x8xf32> to vector<2x8x8xbf16>
    "tpu.trace_start"() <{level = 10 : i32, message = "bqk,bkd->bqd"}> : () -> ()
    %cst_114 = arith.constant dense<0.000000e+00> : vector<2x8x128xf32>
    %311 = tpu.matmul %310, %295, %cst_114 {dimension_numbers = #tpu.dot_dimension_numbers<[2], [1], [1], [2], [0, 0, 0, 1, 1, 2], [0], [0]>} : vector<2x8x8xbf16>, vector<2x8x128xbf16>, vector<2x8x128xf32> -> vector<2x8x128xf32>
    "tpu.trace_stop"() : () -> ()
    %312 = vector.shape_cast %311 : vector<2x8x128xf32> to vector<16x128xf32>
    %313 = arith.truncf %312 : vector<16x128xf32> to vector<16x128xbf16>
    %c5 = arith.constant 5 : index
    %c0_115 = arith.constant 0 : index
    %c0_116 = arith.constant 0 : index
    %314 = vector.load %arg6[%c5, %c0_115, %c0_116] : memref<8x128x128xbf16, #tpu.memory_space<vmem>>, vector<1x128x128xbf16>
    %315 = vector.shape_cast %314 : vector<1x128x128xbf16> to vector<128x128xbf16>
    %cst_117 = arith.constant dense<0.000000e+00> : vector<16x128xf32>
    %316 = tpu.matmul %313, %315, %cst_117 {dimension_numbers = #tpu.dot_dimension_numbers<[1], [0], [0], [1], [0, 0, 1, 1], [], []>} : vector<16x128xbf16>, vector<128x128xbf16>, vector<16x128xf32> -> vector<16x128xf32>
    %317 = arith.addf %286, %316 : vector<16x128xf32>
    %318 = vector.extract_strided_slice %256 {offsets = [0, 256], sizes = [16, 128], strides = [1, 1]} : vector<16x1536xf32> to vector<16x128xf32>
    %319 = vector.extract_strided_slice %256 {offsets = [0, 768], sizes = [16, 128], strides = [1, 1]} : vector<16x1536xf32> to vector<16x128xf32>
    %320 = vector.extract_strided_slice %256 {offsets = [0, 1280], sizes = [16, 128], strides = [1, 1]} : vector<16x1536xf32> to vector<16x128xf32>
    %321 = vector.shape_cast %318 : vector<16x128xf32> to vector<2x8x128xf32>
    %322 = arith.truncf %321 : vector<2x8x128xf32> to vector<2x8x128xbf16>
    %323 = vector.shape_cast %319 : vector<16x128xf32> to vector<2x8x128xf32>
    %324 = arith.truncf %323 : vector<2x8x128xf32> to vector<2x8x128xbf16>
    %325 = vector.shape_cast %320 : vector<16x128xf32> to vector<2x8x128xf32>
    %326 = arith.truncf %325 : vector<2x8x128xf32> to vector<2x8x128xbf16>
    "tpu.trace_start"() <{level = 10 : i32, message = "bqd,bkd->bqk"}> : () -> ()
    %cst_118 = arith.constant dense<0.000000e+00> : vector<2x8x8xf32>
    %327 = tpu.matmul %322, %324, %cst_118 {dimension_numbers = #tpu.dot_dimension_numbers<[2], [2], [1], [1], [0, 0, 0, 1, 1, 1], [0], [0]>} : vector<2x8x128xbf16>, vector<2x8x128xbf16>, vector<2x8x8xf32> -> vector<2x8x8xf32>
    "tpu.trace_stop"() : () -> ()
    %cst_119 = arith.constant 0.353553385 : f32
    %328 = vector.broadcast %cst_119 : f32 to vector<2x8x8xf32>
    %329 = arith.mulf %327, %328 : vector<2x8x8xf32>
    %330 = vector.broadcast %5 : vector<2x1x8xf32> to vector<2x8x8xf32>
    %331 = arith.addf %329, %330 : vector<2x8x8xf32>
    %cst_120 = arith.constant dense<0xFF800000> : vector<2x8xf32>
    %332 = vector.multi_reduction <maximumf>, %331, %cst_120 [2] : vector<2x8x8xf32> to vector<2x8xf32>
    %333 = vector.shape_cast %332 : vector<2x8xf32> to vector<2x8x1xf32>
    %334 = vector.broadcast %333 : vector<2x8x1xf32> to vector<2x8x8xf32>
    %335 = arith.subf %331, %334 : vector<2x8x8xf32>
    %336 = math.exp %335 : vector<2x8x8xf32>
    %cst_121 = arith.constant dense<0.000000e+00> : vector<2x8xf32>
    %337 = vector.multi_reduction <add>, %336, %cst_121 [2] : vector<2x8x8xf32> to vector<2x8xf32>
    %338 = vector.shape_cast %337 : vector<2x8xf32> to vector<2x8x1xf32>
    %339 = vector.broadcast %338 : vector<2x8x1xf32> to vector<2x8x8xf32>
    %340 = arith.divf %336, %339 : vector<2x8x8xf32>
    %341 = arith.truncf %340 : vector<2x8x8xf32> to vector<2x8x8xbf16>
    "tpu.trace_start"() <{level = 10 : i32, message = "bqk,bkd->bqd"}> : () -> ()
    %cst_122 = arith.constant dense<0.000000e+00> : vector<2x8x128xf32>
    %342 = tpu.matmul %341, %326, %cst_122 {dimension_numbers = #tpu.dot_dimension_numbers<[2], [1], [1], [2], [0, 0, 0, 1, 1, 2], [0], [0]>} : vector<2x8x8xbf16>, vector<2x8x128xbf16>, vector<2x8x128xf32> -> vector<2x8x128xf32>
    "tpu.trace_stop"() : () -> ()
    %343 = vector.shape_cast %342 : vector<2x8x128xf32> to vector<16x128xf32>
    %344 = arith.truncf %343 : vector<16x128xf32> to vector<16x128xbf16>
    %c6 = arith.constant 6 : index
    %c0_123 = arith.constant 0 : index
    %c0_124 = arith.constant 0 : index
    %345 = vector.load %arg6[%c6, %c0_123, %c0_124] : memref<8x128x128xbf16, #tpu.memory_space<vmem>>, vector<1x128x128xbf16>
    %346 = vector.shape_cast %345 : vector<1x128x128xbf16> to vector<128x128xbf16>
    %cst_125 = arith.constant dense<0.000000e+00> : vector<16x128xf32>
    %347 = tpu.matmul %344, %346, %cst_125 {dimension_numbers = #tpu.dot_dimension_numbers<[1], [0], [0], [1], [0, 0, 1, 1], [], []>} : vector<16x128xbf16>, vector<128x128xbf16>, vector<16x128xf32> -> vector<16x128xf32>
    %348 = arith.addf %317, %347 : vector<16x128xf32>
    %349 = vector.extract_strided_slice %256 {offsets = [0, 384], sizes = [16, 128], strides = [1, 1]} : vector<16x1536xf32> to vector<16x128xf32>
    %350 = vector.extract_strided_slice %256 {offsets = [0, 896], sizes = [16, 128], strides = [1, 1]} : vector<16x1536xf32> to vector<16x128xf32>
    %351 = vector.extract_strided_slice %256 {offsets = [0, 1408], sizes = [16, 128], strides = [1, 1]} : vector<16x1536xf32> to vector<16x128xf32>
    %352 = vector.shape_cast %349 : vector<16x128xf32> to vector<2x8x128xf32>
    %353 = arith.truncf %352 : vector<2x8x128xf32> to vector<2x8x128xbf16>
    %354 = vector.shape_cast %350 : vector<16x128xf32> to vector<2x8x128xf32>
    %355 = arith.truncf %354 : vector<2x8x128xf32> to vector<2x8x128xbf16>
    %356 = vector.shape_cast %351 : vector<16x128xf32> to vector<2x8x128xf32>
    %357 = arith.truncf %356 : vector<2x8x128xf32> to vector<2x8x128xbf16>
    "tpu.trace_start"() <{level = 10 : i32, message = "bqd,bkd->bqk"}> : () -> ()
    %cst_126 = arith.constant dense<0.000000e+00> : vector<2x8x8xf32>
    %358 = tpu.matmul %353, %355, %cst_126 {dimension_numbers = #tpu.dot_dimension_numbers<[2], [2], [1], [1], [0, 0, 0, 1, 1, 1], [0], [0]>} : vector<2x8x128xbf16>, vector<2x8x128xbf16>, vector<2x8x8xf32> -> vector<2x8x8xf32>
    "tpu.trace_stop"() : () -> ()
    %cst_127 = arith.constant 0.353553385 : f32
    %359 = vector.broadcast %cst_127 : f32 to vector<2x8x8xf32>
    %360 = arith.mulf %358, %359 : vector<2x8x8xf32>
    %361 = vector.broadcast %5 : vector<2x1x8xf32> to vector<2x8x8xf32>
    %362 = arith.addf %360, %361 : vector<2x8x8xf32>
    %cst_128 = arith.constant dense<0xFF800000> : vector<2x8xf32>
    %363 = vector.multi_reduction <maximumf>, %362, %cst_128 [2] : vector<2x8x8xf32> to vector<2x8xf32>
    %364 = vector.shape_cast %363 : vector<2x8xf32> to vector<2x8x1xf32>
    %365 = vector.broadcast %364 : vector<2x8x1xf32> to vector<2x8x8xf32>
    %366 = arith.subf %362, %365 : vector<2x8x8xf32>
    %367 = math.exp %366 : vector<2x8x8xf32>
    %cst_129 = arith.constant dense<0.000000e+00> : vector<2x8xf32>
    %368 = vector.multi_reduction <add>, %367, %cst_129 [2] : vector<2x8x8xf32> to vector<2x8xf32>
    %369 = vector.shape_cast %368 : vector<2x8xf32> to vector<2x8x1xf32>
    %370 = vector.broadcast %369 : vector<2x8x1xf32> to vector<2x8x8xf32>
    %371 = arith.divf %367, %370 : vector<2x8x8xf32>
    %372 = arith.truncf %371 : vector<2x8x8xf32> to vector<2x8x8xbf16>
    "tpu.trace_start"() <{level = 10 : i32, message = "bqk,bkd->bqd"}> : () -> ()
    %cst_130 = arith.constant dense<0.000000e+00> : vector<2x8x128xf32>
    %373 = tpu.matmul %372, %357, %cst_130 {dimension_numbers = #tpu.dot_dimension_numbers<[2], [1], [1], [2], [0, 0, 0, 1, 1, 2], [0], [0]>} : vector<2x8x8xbf16>, vector<2x8x128xbf16>, vector<2x8x128xf32> -> vector<2x8x128xf32>
    "tpu.trace_stop"() : () -> ()
    %374 = vector.shape_cast %373 : vector<2x8x128xf32> to vector<16x128xf32>
    %375 = arith.truncf %374 : vector<16x128xf32> to vector<16x128xbf16>
    %c7 = arith.constant 7 : index
    %c0_131 = arith.constant 0 : index
    %c0_132 = arith.constant 0 : index
    %376 = vector.load %arg6[%c7, %c0_131, %c0_132] : memref<8x128x128xbf16, #tpu.memory_space<vmem>>, vector<1x128x128xbf16>
    %377 = vector.shape_cast %376 : vector<1x128x128xbf16> to vector<128x128xbf16>
    %cst_133 = arith.constant dense<0.000000e+00> : vector<16x128xf32>
    %378 = tpu.matmul %375, %377, %cst_133 {dimension_numbers = #tpu.dot_dimension_numbers<[1], [0], [0], [1], [0, 0, 1, 1], [], []>} : vector<16x128xbf16>, vector<128x128xbf16>, vector<16x128xf32> -> vector<16x128xf32>
    %379 = arith.addf %348, %378 : vector<16x128xf32>
    %c1_134 = arith.constant 1 : index
    %c0_135 = arith.constant 0 : index
    %c0_136 = arith.constant 0 : index
    %380 = vector.load %arg7[%c1_134, %c0_135, %c0_136] : memref<2x1x128xf32, #tpu.memory_space<vmem>>, vector<1x1x128xf32>
    %381 = vector.shape_cast %380 : vector<1x1x128xf32> to vector<1x128xf32>
    %382 = vector.broadcast %381 : vector<1x128xf32> to vector<16x128xf32>
    %383 = arith.addf %379, %382 : vector<16x128xf32>
    %384 = arith.addf %383, %248 : vector<16x128xf32>
    %c1_137 = arith.constant 1 : index
    %c0_138 = arith.constant 0 : index
    %c0_139 = arith.constant 0 : index
    %385 = vector.load %arg8[%c1_137, %c0_138, %c0_139] : memref<2x1x128xf32, #tpu.memory_space<vmem>>, vector<1x1x128xf32>
    %386 = vector.shape_cast %385 : vector<1x1x128xf32> to vector<1x128xf32>
    %c1_140 = arith.constant 1 : index
    %c0_141 = arith.constant 0 : index
    %c0_142 = arith.constant 0 : index
    %387 = vector.load %arg9[%c1_140, %c0_141, %c0_142] : memref<2x1x128xf32, #tpu.memory_space<vmem>>, vector<1x1x128xf32>
    %388 = vector.shape_cast %387 : vector<1x1x128xf32> to vector<1x128xf32>
    %389 = arith.mulf %384, %4 : vector<16x128xf32>
    %cst_143 = arith.constant dense<0.000000e+00> : vector<16xf32>
    %390 = vector.multi_reduction <add>, %389, %cst_143 [1] : vector<16x128xf32> to vector<16xf32>
    %391 = vector.shape_cast %390 : vector<16xf32> to vector<16x1xf32>
    %cst_144 = arith.constant 3.125000e-02 : f32
    %392 = vector.broadcast %cst_144 : f32 to vector<16x1xf32>
    %393 = arith.mulf %391, %392 : vector<16x1xf32>
    %394 = vector.broadcast %393 : vector<16x1xf32> to vector<16x128xf32>
    %395 = arith.subf %384, %394 : vector<16x128xf32>
    %396 = arith.mulf %395, %4 : vector<16x128xf32>
    %397 = arith.mulf %396, %396 : vector<16x128xf32>
    %cst_145 = arith.constant dense<0.000000e+00> : vector<16xf32>
    %398 = vector.multi_reduction <add>, %397, %cst_145 [1] : vector<16x128xf32> to vector<16xf32>
    %399 = vector.shape_cast %398 : vector<16xf32> to vector<16x1xf32>
    %cst_146 = arith.constant 3.125000e-02 : f32
    %400 = vector.broadcast %cst_146 : f32 to vector<16x1xf32>
    %401 = arith.mulf %399, %400 : vector<16x1xf32>
    %cst_147 = arith.constant 9.99999996E-13 : f32
    %402 = vector.broadcast %cst_147 : f32 to vector<16x1xf32>
    %403 = arith.addf %401, %402 : vector<16x1xf32>
    %404 = math.rsqrt %403 : vector<16x1xf32>
    %405 = vector.broadcast %404 : vector<16x1xf32> to vector<16x128xf32>
    %406 = arith.mulf %396, %405 : vector<16x128xf32>
    %407 = vector.broadcast %386 : vector<1x128xf32> to vector<16x128xf32>
    %408 = arith.mulf %406, %407 : vector<16x128xf32>
    %409 = vector.broadcast %388 : vector<1x128xf32> to vector<16x128xf32>
    %410 = arith.addf %408, %409 : vector<16x128xf32>
    %411 = arith.truncf %410 : vector<16x128xf32> to vector<16x128xbf16>
    %c1_148 = arith.constant 1 : index
    %c0_149 = arith.constant 0 : index
    %c0_150 = arith.constant 0 : index
    %412 = vector.load %arg10[%c1_148, %c0_149, %c0_150] : memref<2x128x128xbf16, #tpu.memory_space<vmem>>, vector<1x128x128xbf16>
    %413 = vector.shape_cast %412 : vector<1x128x128xbf16> to vector<128x128xbf16>
    %cst_151 = arith.constant dense<0.000000e+00> : vector<16x128xf32>
    %414 = tpu.matmul %411, %413, %cst_151 {dimension_numbers = #tpu.dot_dimension_numbers<[1], [0], [0], [1], [0, 0, 1, 1], [], []>} : vector<16x128xbf16>, vector<128x128xbf16>, vector<16x128xf32> -> vector<16x128xf32>
    %c1_152 = arith.constant 1 : index
    %c0_153 = arith.constant 0 : index
    %c0_154 = arith.constant 0 : index
    %415 = vector.load %arg11[%c1_152, %c0_153, %c0_154] : memref<2x1x128xf32, #tpu.memory_space<vmem>>, vector<1x1x128xf32>
    %416 = vector.shape_cast %415 : vector<1x1x128xf32> to vector<1x128xf32>
    %417 = vector.broadcast %416 : vector<1x128xf32> to vector<16x128xf32>
    %418 = arith.addf %414, %417 : vector<16x128xf32>
    %419 = arith.mulf %418, %418 : vector<16x128xf32>
    %420 = arith.mulf %418, %419 : vector<16x128xf32>
    %cst_155 = arith.constant 4.471500e-02 : f32
    %421 = vector.broadcast %cst_155 : f32 to vector<16x128xf32>
    %422 = arith.mulf %421, %420 : vector<16x128xf32>
    %423 = arith.addf %418, %422 : vector<16x128xf32>
    %cst_156 = arith.constant 0.797884583 : f32
    %424 = vector.broadcast %cst_156 : f32 to vector<16x128xf32>
    %425 = arith.mulf %424, %423 : vector<16x128xf32>
    %426 = math.tanh %425 : vector<16x128xf32>
    %cst_157 = arith.constant 1.000000e+00 : f32
    %427 = vector.broadcast %cst_157 : f32 to vector<16x128xf32>
    %428 = arith.addf %427, %426 : vector<16x128xf32>
    %cst_158 = arith.constant 5.000000e-01 : f32
    %429 = vector.broadcast %cst_158 : f32 to vector<16x128xf32>
    %430 = arith.mulf %429, %428 : vector<16x128xf32>
    %431 = arith.mulf %418, %430 : vector<16x128xf32>
    %432 = arith.truncf %431 : vector<16x128xf32> to vector<16x128xbf16>
    %c1_159 = arith.constant 1 : index
    %c0_160 = arith.constant 0 : index
    %c0_161 = arith.constant 0 : index
    %433 = vector.load %arg12[%c1_159, %c0_160, %c0_161] : memref<2x128x128xbf16, #tpu.memory_space<vmem>>, vector<1x128x128xbf16>
    %434 = vector.shape_cast %433 : vector<1x128x128xbf16> to vector<128x128xbf16>
    %cst_162 = arith.constant dense<0.000000e+00> : vector<16x128xf32>
    %435 = tpu.matmul %432, %434, %cst_162 {dimension_numbers = #tpu.dot_dimension_numbers<[1], [0], [0], [1], [0, 0, 1, 1], [], []>} : vector<16x128xbf16>, vector<128x128xbf16>, vector<16x128xf32> -> vector<16x128xf32>
    %c1_163 = arith.constant 1 : index
    %c0_164 = arith.constant 0 : index
    %c0_165 = arith.constant 0 : index
    %436 = vector.load %arg13[%c1_163, %c0_164, %c0_165] : memref<2x1x128xf32, #tpu.memory_space<vmem>>, vector<1x1x128xf32>
    %437 = vector.shape_cast %436 : vector<1x1x128xf32> to vector<1x128xf32>
    %438 = vector.broadcast %437 : vector<1x128xf32> to vector<16x128xf32>
    %439 = arith.addf %435, %438 : vector<16x128xf32>
    %440 = arith.addf %439, %410 : vector<16x128xf32>
    %c1_166 = arith.constant 1 : index
    %c0_167 = arith.constant 0 : index
    %c0_168 = arith.constant 0 : index
    %441 = vector.load %arg14[%c1_166, %c0_167, %c0_168] : memref<2x1x128xf32, #tpu.memory_space<vmem>>, vector<1x1x128xf32>
    %442 = vector.shape_cast %441 : vector<1x1x128xf32> to vector<1x128xf32>
    %c1_169 = arith.constant 1 : index
    %c0_170 = arith.constant 0 : index
    %c0_171 = arith.constant 0 : index
    %443 = vector.load %arg15[%c1_169, %c0_170, %c0_171] : memref<2x1x128xf32, #tpu.memory_space<vmem>>, vector<1x1x128xf32>
    %444 = vector.shape_cast %443 : vector<1x1x128xf32> to vector<1x128xf32>
    %445 = arith.mulf %440, %4 : vector<16x128xf32>
    %cst_172 = arith.constant dense<0.000000e+00> : vector<16xf32>
    %446 = vector.multi_reduction <add>, %445, %cst_172 [1] : vector<16x128xf32> to vector<16xf32>
    %447 = vector.shape_cast %446 : vector<16xf32> to vector<16x1xf32>
    %cst_173 = arith.constant 3.125000e-02 : f32
    %448 = vector.broadcast %cst_173 : f32 to vector<16x1xf32>
    %449 = arith.mulf %447, %448 : vector<16x1xf32>
    %450 = vector.broadcast %449 : vector<16x1xf32> to vector<16x128xf32>
    %451 = arith.subf %440, %450 : vector<16x128xf32>
    %452 = arith.mulf %451, %4 : vector<16x128xf32>
    %453 = arith.mulf %452, %452 : vector<16x128xf32>
    %cst_174 = arith.constant dense<0.000000e+00> : vector<16xf32>
    %454 = vector.multi_reduction <add>, %453, %cst_174 [1] : vector<16x128xf32> to vector<16xf32>
    %455 = vector.shape_cast %454 : vector<16xf32> to vector<16x1xf32>
    %cst_175 = arith.constant 3.125000e-02 : f32
    %456 = vector.broadcast %cst_175 : f32 to vector<16x1xf32>
    %457 = arith.mulf %455, %456 : vector<16x1xf32>
    %cst_176 = arith.constant 9.99999996E-13 : f32
    %458 = vector.broadcast %cst_176 : f32 to vector<16x1xf32>
    %459 = arith.addf %457, %458 : vector<16x1xf32>
    %460 = math.rsqrt %459 : vector<16x1xf32>
    %461 = vector.broadcast %460 : vector<16x1xf32> to vector<16x128xf32>
    %462 = arith.mulf %452, %461 : vector<16x128xf32>
    %463 = vector.broadcast %442 : vector<1x128xf32> to vector<16x128xf32>
    %464 = arith.mulf %462, %463 : vector<16x128xf32>
    %465 = vector.broadcast %444 : vector<1x128xf32> to vector<16x128xf32>
    %466 = arith.addf %464, %465 : vector<16x128xf32>
    %467 = arith.truncf %466 : vector<16x128xf32> to vector<16x128xbf16>
    %c0_177 = arith.constant 0 : index
    %c0_178 = arith.constant 0 : index
    %468 = vector.load %arg16[%c0_177, %c0_178] : memref<128x128xbf16, #tpu.memory_space<vmem>>, vector<128x128xbf16>
    %cst_179 = arith.constant dense<0.000000e+00> : vector<16x128xf32>
    %469 = tpu.matmul %467, %468, %cst_179 {dimension_numbers = #tpu.dot_dimension_numbers<[1], [0], [0], [1], [0, 0, 1, 1], [], []>} : vector<16x128xbf16>, vector<128x128xbf16>, vector<16x128xf32> -> vector<16x128xf32>
    %c0_180 = arith.constant 0 : index
    %c0_181 = arith.constant 0 : index
    %470 = vector.load %arg17[%c0_180, %c0_181] : memref<1x128xf32, #tpu.memory_space<vmem>>, vector<1x128xf32>
    %471 = vector.broadcast %470 : vector<1x128xf32> to vector<16x128xf32>
    %472 = arith.addf %469, %471 : vector<16x128xf32>
    %c0_182 = arith.constant 0 : index
    %c0_183 = arith.constant 0 : index
    %473 = vector.load %arg18[%c0_182, %c0_183] : memref<16x128xf32, #tpu.memory_space<vmem>>, vector<16x128xf32>
    tpu.vector_store %arg18[%c0_182, %c0_183], %472 {strides = array<i32>} : memref<16x128xf32, #tpu.memory_space<vmem>>, vector<16x128xf32>,
    return
  }
}

</mosaic_0001>

<bundles_post_ra>
// kernel: tpu_custom_call.1
= control target key start
LH: loop header
LB: loop body
LE: loop exit
PB: predicated region body
PF: predicated region fallthrough
CT: control target
= control target key end

     0   :  { %s8008_s0 = inlined_call_operand.hbm [shape: f32[16,128], index: 0, kind: input, shape index: {}]   ;;  %s8009_s1 = inlined_call_operand.hbm [shape: f32[2,1,8], index: 1, kind: input, shape index: {}]   ;;  %s8010_s2 = inlined_call_operand.hbm [shape: f32[1,128], index: 2, kind: input, shape index: {}]   ;;  %s8011_s3 = inlined_call_operand.hbm [shape: f32[1,128], index: 3, kind: input, shape index: {}]   ;;  %s8012_s4 = inlined_call_operand.hbm [shape: bf16[2,128,1536], index: 4, kind: input, shape index: {}]   ;;  %s8013_s5 = inlined_call_operand.hbm [shape: f32[2,1,1536], index: 5, kind: input, shape index: {}]   ;;  %s8014_s6 = inlined_call_operand.hbm [shape: bf16[8,128,128], index: 6, kind: input, shape index: {}]   ;;  %s8015_s7 = inlined_call_operand.vmem [shape: f32[2,1,128], index: 7, kind: input, shape index: {}]   ;;  %s8016_s8 = inlined_call_operand.vmem [shape: f32[2,1,128], index: 8, kind: input, shape index: {}]   ;;  %s8017_s9 = inlined_call_operand.vmem [shape: f32[2,1,128], index: 9, kind: input, shape index: {}]   ;;  %s8018_s10 = inlined_call_operand.hbm [shape: bf16[2,128,128], index: 10, kind: input, shape index: {}]   ;;  %s8019_s11 = inlined_call_operand.vmem [shape: f32[2,1,128], index: 11, kind: input, shape index: {}]   ;;  %s8020_s12 = inlined_call_operand.hbm [shape: bf16[2,128,128], index: 12, kind: input, shape index: {}]   ;;  %s8021_s13 = inlined_call_operand.vmem [shape: f32[2,1,128], index: 13, kind: input, shape index: {}]   ;;  %s8022_s14 = inlined_call_operand.vmem [shape: f32[2,1,128], index: 14, kind: input, shape index: {}]   ;;  %s8023_s15 = inlined_call_operand.vmem [shape: f32[2,1,128], index: 15, kind: input, shape index: {}]   ;;  %s8024_s16 = inlined_call_operand.hbm [shape: bf16[128,128], index: 16, kind: input, shape index: {}]   ;;  %s8025_s17 = inlined_call_operand.vmem [shape: f32[1,128], index: 17, kind: input, shape index: {}]   ;;  %s8026_s18 = inlined_call_operand.hbm [shape: f32[16,128], index: 18, kind: output, shape index: {}]  }
   0x1   :  { %8027 = sst [smem:[#allocation27_spill]] %s8008_s0 }
   0x2   :  { %8028 = sst [smem:[#allocation28_spill]] %s8009_s1 }
   0x3   :  { %8029 = sst [smem:[#allocation29_spill]] %s8010_s2 }
   0x4   :  { %23 = vsyncpa [#allocation3], 0 }
   0x5   :  { %24 = vsyncpa [#allocation6], 0 }
   0x6   :  { %25 = vsyncpa [#allocation9], 0 }
   0x7   :  { %26 = vsyncpa [#allocation12], 0 }
   0x8   :  { %27 = vsyncpa [#allocation15], 0 }
   0x9   :  { %28 = vsyncpa [#allocation18], 0 }
   0xa   :  { %29 = vsyncpa [#allocation4], 0  ;;  %s7123_s27 = smov [#allocation5]  }
   0xb   :  { %s47_s28 = sshll.u32 %s7123_s27, 4  ;;  %s48_s28 = int_to_ptr.vmem [resolvable:$true] %s47_s28 }
   0xc   :  { %s6897_s29 = scalar_lea.vmem %s48_s28, 32  ;;  %p6902_p1 = scmp.lt.s32.totalorder %s48_s28, %s48_s28 }
   0xd   :  { %p6898_p0 = scmp.ne.s32.totalorder %s48_s28, %s6897_s29  ;;  %p6903_p2 = scmp.lt.s32.totalorder %s6897_s29, %s6897_s29 }
   0xf   :  { %p6904_p3 = por %p6903_p2, %p6902_p1 }
  0x11   :  { %p6905_p4 = pnand %p6904_p3, %p6898_p0 }
  0x13   :  { %6908 = shalt.err (!%p6905_p4)
}
  0x14   :  { %s7124_s30 = smov 16   ;;  %s7125_s0 = smov 1  }
  0x15   :  { %s8030_s20 = sld [smem:[#allocation28_spill]]  ;;  %s7126_s21 = smov [#allocation8]  }
  0x16   :  { %s70_s22 = sshll.u32 %s7126_s21, 4  ;;  %s7127_s2 = smov [#allocation11]   ;;  %s71_s22 = int_to_ptr.vmem [resolvable:$true] %s70_s22 }
  0x17   :  { %s91_s23 = sshll.u32 %s7127_s2, 4  ;;  %s6917_s24 = scalar_lea.vmem %s71_s22, 16  ;;  %s92_s23 = int_to_ptr.vmem [resolvable:$true] %s91_s23 }
  0x18   :  { %p6918_p5 = scmp.ne.s32.totalorder %s71_s22, %s6917_s24  ;;  %s6921_s25 = scalar_lea.vmem %s71_s22, 32 }
  0x19   :  { %p6922_p6 = scmp.lt.s32.totalorder %s71_s22, %s71_s22  ;;  %p6923_p7 = scmp.lt.s32.totalorder %s6921_s25, %s6917_s24 }
  0x1b   :  { %53 = dma.hbm_to_vmem [thread:$0]  %s8030_s20, 32, %s48_s28, [#allocation6], %s7124_s30, %s7124_s30, %s7125_s0  }
  0x1c   :  { %p6924_p8 = por %p6923_p7, %p6922_p6 }
  0x1e   :  { %p6925_p9 = pnand %p6924_p8, %p6918_p5 }
  0x20   :  { %6928 = shalt.err (!%p6925_p9)
}
  0x21   :  { %73 = dma.hbm_to_vmem [thread:$0]  %s8011_s3, 16, %s71_s22, [#allocation9]  }
  0x22   :  { %s6937_s29 = scalar_lea.vmem %s92_s23, 384  ;;  %p6942_p11 = scmp.lt.s32.totalorder %s92_s23, %s92_s23 }
  0x23   :  { %p6938_p10 = scmp.ne.s32.totalorder %s92_s23, %s6937_s29  ;;  %p6943_p12 = scmp.lt.s32.totalorder %s6937_s29, %s6937_s29 }
  0x25   :  { %p6944_p13 = por %p6943_p12, %p6942_p11 }
  0x27   :  { %p6945_p0 = pnand %p6944_p13, %p6938_p10 }
  0x29   :  { %6948 = shalt.err (!%p6945_p0)
}
  0x2a   :  { %s7128_s28 = smov 192   ;;  %s7129_s30 = smov 12  }
  0x2b   :  { %97 = dma.hbm_to_vmem [thread:$0]  %s8013_s5, 384, %s92_s23, [#allocation12], %s7128_s28, %s7128_s28, %s7129_s30  }
  0x2c   :  { %s7130_s1 = smov [#allocation14]   ;;  %s7131_s21 = smov [#allocation2]  }
  0x2d   :  { %s121_s20 = sshll.u32 %s7130_s1, 4  ;;  %s35_s2 = sshll.u32 %s7131_s21, 4  ;;  %s122_s20 = int_to_ptr.vmem [resolvable:$true] %s121_s20  ;;  %s36_s2 = int_to_ptr.vmem [resolvable:$true] %s35_s2 }
  0x2e   :  { %s6957_s3 = scalar_lea.vmem %s122_s20, 2048  ;;  %p6962_p2 = scmp.lt.s32.totalorder %s122_s20, %s122_s20 }
  0x2f   :  { %p6958_p1 = scmp.ne.s32.totalorder %s122_s20, %s6957_s3  ;;  %p6963_p3 = scmp.lt.s32.totalorder %s6957_s3, %s6957_s3 }
  0x31   :  { %p6964_p4 = por %p6963_p3, %p6962_p2 }
  0x33   :  { %p6965_p5 = pnand %p6964_p4, %p6958_p1 }
  0x35   :  { %6968 = shalt.err (!%p6965_p5)
}
  0x36   :  { %s7132_s22 = smov 64   ;;  %s7133_s24 = smov 4  }
  0x37   :  { %127 = dma.hbm_to_vmem [thread:$0]  %s8018_s10, 2048, %s122_s20, [#allocation15], %s7132_s22, %s7132_s22, %s7133_s24  }
  0x38   :  { %s6977_s5 = scalar_lea.vmem %s36_s2, 256  ;;  %p6982_p7 = scmp.lt.s32.totalorder %s36_s2, %s36_s2 }
  0x39   :  { %p6978_p6 = scmp.ne.s32.totalorder %s36_s2, %s6977_s5  ;;  %p6983_p8 = scmp.lt.s32.totalorder %s6977_s5, %s6977_s5 }
  0x3b   :  { %p6984_p9 = por %p6983_p8, %p6982_p7 }
  0x3d   :  { %p6985_p10 = pnand %p6984_p9, %p6978_p6 }
  0x3f   :  { %6988 = shalt.err (!%p6985_p10)
}
  0x40   :  { %s7134_s23 = smov 128   ;;  %s7135_s27 = smov 8  }
  0x41   :  { %s8031_s30 = sld [smem:[#allocation27_spill]]  ;;  %s7136_s0 = smov [#allocation7]  }
  0x42   :  { %s60_s19 = sshll.u32 %s7136_s0, 4  ;;  %s7137_s10 = smov [#allocation10]   ;;  %s61_s19 = int_to_ptr.vmem [resolvable:$true] %s60_s19 }
  0x43   :  { %s79_s1 = sshll.u32 %s7137_s10, 4  ;;  %s6997_s20 = scalar_lea.vmem %s61_s19, 16  ;;  %s80_s1 = int_to_ptr.vmem [resolvable:$true] %s79_s1 }
  0x44   :  { %p6998_p11 = scmp.ne.s32.totalorder %s61_s19, %s6997_s20  ;;  %s7001_s21 = scalar_lea.vmem %s61_s19, 32 }
  0x45   :  { %p7002_p12 = scmp.lt.s32.totalorder %s61_s19, %s61_s19  ;;  %p7003_p13 = scmp.lt.s32.totalorder %s7001_s21, %s6997_s20 }
  0x47   :  { %41 = dma.hbm_to_vmem [thread:$0]  %s8031_s30, 256, %s36_s2, [#allocation3], %s7134_s23, %s7134_s23, %s7135_s27  }
  0x48   :  { %p7004_p0 = por %p7003_p13, %p7002_p12 }
  0x4a   :  { %p7005_p1 = pnand %p7004_p0, %p6998_p11 }
  0x4c   :  { %7008 = shalt.err (!%p7005_p1)
}
  0x4d   :  { %s8032_s26 = sld [smem:[#allocation29_spill]]  ;;  %s7017_s5 = scalar_lea.vmem %s80_s1, 24576 }
  0x4e   :  { %p7018_p2 = scmp.ne.s32.totalorder %s80_s1, %s7017_s5  ;;  %p7022_p3 = scmp.lt.s32.totalorder %s80_s1, %s80_s1 }
  0x4f   :  { %p7023_p4 = scmp.lt.s32.totalorder %s7017_s5, %s7017_s5 }
  0x51   :  { %p7024_p5 = por %p7023_p4, %p7022_p3 }
  0x53   :  { %63 = dma.hbm_to_vmem [thread:$0]  %s8032_s26, 16, %s61_s19, [#allocation6]  }
  0x54   :  { %p7025_p6 = pnand %p7024_p5, %p7018_p2 }
  0x56   :  { %7028 = shalt.err (!%p7025_p6)
}
  0x57   :  { %s7138_s2 = smov 768   ;;  %s7139_s29 = smov 48  }
  0x58   :  { %85 = dma.hbm_to_vmem [thread:$0]  %s8012_s4, 24576, %s80_s1, [#allocation9], %s7138_s2, %s7138_s2, %s7139_s29  }
  0x59   :  { %s7140_s0 = smov [#allocation13]   ;;  %s7141_s20 = smov [#allocation16]  }
  0x5a   :  { %s103_s10 = sshll.u32 %s7140_s0, 4  ;;  %s135_s21 = sshll.u32 %s7141_s20, 4  ;;  %s104_s10 = int_to_ptr.vmem [resolvable:$true] %s103_s10  ;;  %s136_s21 = int_to_ptr.vmem [resolvable:$true] %s135_s21 }
  0x5b   :  { %s7037_s19 = scalar_lea.vmem %s104_s10, 8192  ;;  %p7042_p8 = scmp.lt.s32.totalorder %s104_s10, %s104_s10 }
  0x5c   :  { %p7038_p7 = scmp.ne.s32.totalorder %s104_s10, %s7037_s19  ;;  %p7043_p9 = scmp.lt.s32.totalorder %s7037_s19, %s7037_s19 }
  0x5e   :  { %p7044_p10 = por %p7043_p9, %p7042_p8 }
  0x60   :  { %p7045_p11 = pnand %p7044_p10, %p7038_p7 }
  0x62   :  { %7048 = shalt.err (!%p7045_p11)
}
  0x63   :  { %109 = dma.hbm_to_vmem [thread:$0]  %s8014_s6, 8192, %s104_s10, [#allocation12], %s7132_s22, %s7132_s22, %s7133_s24  }
  0x64   :  { %s7057_s4 = scalar_lea.vmem %s136_s21, 2048  ;;  %p7062_p13 = scmp.lt.s32.totalorder %s136_s21, %s136_s21 }
  0x65   :  { %p7058_p12 = scmp.ne.s32.totalorder %s136_s21, %s7057_s4  ;;  %p7063_p0 = scmp.lt.s32.totalorder %s7057_s4, %s7057_s4 }
  0x67   :  { %p7064_p1 = por %p7063_p0, %p7062_p13 }
  0x69   :  { %p7065_p2 = pnand %p7064_p1, %p7058_p12 }
  0x6b   :  { %7068 = shalt.err (!%p7065_p2)
}
  0x6c   :  { %141 = dma.hbm_to_vmem [thread:$0]  %s8020_s12, 2048, %s136_s21, [#allocation15], %s7132_s22, %s7132_s22, %s7133_s24  }
  0x6d   :  { %s7142_s5 = smov [#allocation17]  }
  0x6e   :  { %s153_s2 = sshll.u32 %s7142_s5, 4  ;;  %s154_s2 = int_to_ptr.vmem [resolvable:$true] %s153_s2 }
  0x6f   :  { %s7077_s29 = scalar_lea.vmem %s154_s2, 1024  ;;  %p7082_p4 = scmp.lt.s32.totalorder %s154_s2, %s154_s2 }
  0x70   :  { %p7078_p3 = scmp.ne.s32.totalorder %s154_s2, %s7077_s29  ;;  %p7083_p5 = scmp.lt.s32.totalorder %s7077_s29, %s7077_s29 }
  0x72   :  { %p7084_p6 = por %p7083_p5, %p7082_p4 }
  0x74   :  { %p7085_p7 = pnand %p7084_p6, %p7078_p3 }
  0x76   :  { %7088 = shalt.err (!%p7085_p7)
}
  0x77   :  { %159 = dma.hbm_to_vmem [thread:$0]  %s8024_s16, 1024, %s154_s2, [#allocation18], %s7132_s22, %s7132_s22, %s7133_s24  }
  0x78   :  { %7109 = dma.done.wait [#allocation3], 256  }
  0x79   :  { %7110 = vsyncadd [#allocation3], 4294967040 }
  0x7a   :  { %7111 = dma.done.wait [#allocation6], 48  }
  0x7b   :  { %7112 = vsyncadd [#allocation6], 4294967248 }
  0x7c   :  { %7113 = dma.done.wait [#allocation9], 24592  }
  0x7d   :  { %7114 = vsyncadd [#allocation9], 4294942704 }
  0x7e   :  { %7115 = dma.done.wait [#allocation12], 8576  }
  0x7f   :  { %7116 = vsyncadd [#allocation12], 4294958720 }
  0x80   :  { %7117 = dma.done.wait [#allocation15], 4096  }
  0x81   :  { %7118 = vsyncadd [#allocation15], 4294963200 }
  0x82   :  { %7119 = dma.done.wait [#allocation18], 1024  }
  0x83   :  { %7120 = vsyncadd [#allocation18], 4294966272  ;;  %v193_v0 = vlaneseq  ;;  %v7143_v2 = vmov 0.0   ;;  %v200_v4 = vld [vmem:[#allocation2] sm:$0xff]  ;;  %v201_v5 = vld [vmem:[#allocation2 + $0x8] sm:$0xff]  ;;  %v7144_v52 = vmov 0  }
  0x84   :  { %v6403_v8 = vld [vmem:[#allocation10 + $0x2a4] ss:$48 sps:$4 sm:$0xff]   ;;  %v6405_v9 = vld [vmem:[#allocation10 + $0x2ac] ss:$48 sps:$4 sm:$0xff]   ;;  %v6407_v10 = vld [vmem:[#allocation10 + $0x2a0] ss:$48 sps:$4 sm:$0xff]   ;;  %919 = vmatprep.mubr.bf16.mxu0 %v7144_v52  ;;  %962 = vmatprep.mubr.bf16.mxu1 %v7144_v52 }
  0x85   :  { %v194_v1 = vand.u32 127, %v193_v0  ;;  %v6408_v11 = vld [vmem:[#allocation10 + $0x2a8] ss:$48 sps:$4 sm:$0xff]   ;;  %887 = vmatprep.subr.bf16.mxu0 %v6403_v8  ;;  %930 = vmatprep.subr.bf16.mxu1 %v6405_v9  ;;  %v6409_v22 = vld [vmem:[#allocation10 + $0x244] ss:$48 sps:$4 sm:$0xff]   ;;  %vm7145_vm1 = vmmov 0  }
  0x86   :  { %888 = vmatpush1.bf16.msra.mxu0 %v6407_v10  ;;  %931 = vmatpush1.bf16.msra.mxu1 %v6408_v11  ;;  %v6411_v23 = vld [vmem:[#allocation10 + $0x24c] ss:$48 sps:$4 sm:$0xff]   ;;  %v6413_v24 = vld [vmem:[#allocation10 + $0x240] ss:$48 sps:$4 sm:$0xff]   ;;  %v6414_v25 = vld [vmem:[#allocation10 + $0x248] ss:$48 sps:$4 sm:$0xff]  }
  0x87   :  { %vm195_vm0 = vcmp.lt.s32.totalorder %v194_v1, 32  ;;  %889 = vmatprep.subr.bf16.mxu0 %v6409_v22  ;;  %932 = vmatprep.subr.bf16.mxu1 %v6411_v23  ;;  %v6415_v26 = vld [vmem:[#allocation10 + $0x1e4] ss:$48 sps:$4 sm:$0xff]   ;;  %v6417_v27 = vld [vmem:[#allocation10 + $0x1ec] ss:$48 sps:$4 sm:$0xff]   ;;  %vm1275_vm2 = vcmask 1043456  }
  0x88   :  { %v7289_v3 = vsel %vm195_vm0, 1.0, %v7143_v2  ;;  %v6419_v28 = vld [vmem:[#allocation10 + $0x1e0] ss:$48 sps:$4 sm:$0xff]   ;;  %v6420_v29 = vld [vmem:[#allocation10 + $0x1e8] ss:$48 sps:$4 sm:$0xff]   ;;  %vm1247_vm3 = vcmask 64512  }
  0x89   :  { %v204_v6 = vmul.f32 %v7289_v3, %v200_v4  ;;  %v205_v7 = vmul.f32 %v7289_v3, %v201_v5  ;;  %v6421_v30 = vld [vmem:[#allocation10 + $0x184] ss:$48 sps:$4 sm:$0xff]   ;;  %v6423_v31 = vld [vmem:[#allocation10 + $0x18c] ss:$48 sps:$4 sm:$0xff]   ;;  %v6425_v32 = vld [vmem:[#allocation10 + $0x180] ss:$48 sps:$4 sm:$0xff]  }
  0x8a   :  { %890 = vmatpush1.bf16.msra.mxu0 %v6413_v24  ;;  %933 = vmatpush1.bf16.msra.mxu1 %v6414_v25  ;;  %v6426_v33 = vld [vmem:[#allocation10 + $0x188] ss:$48 sps:$4 sm:$0xff]   ;;  %v6427_v34 = vld [vmem:[#allocation10 + $0x124] ss:$48 sps:$4 sm:$0xff]   ;;  %v6429_v35 = vld [vmem:[#allocation10 + $0x12c] ss:$48 sps:$4 sm:$0xff]  }
  0x8b   :  { %206 = vadd.xlane.f32.xlu0 %v204_v6  ;;  %891 = vmatprep.subr.bf16.mxu0 %v6415_v26  ;;  %v6431_v36 = vld [vmem:[#allocation10 + $0x120] ss:$48 sps:$4 sm:$0xff]   ;;  %v6432_v37 = vld [vmem:[#allocation10 + $0x128] ss:$48 sps:$4 sm:$0xff]   ;;  %v6433_v38 = vld [vmem:[#allocation10 + $0xc4] ss:$48 sps:$4 sm:$0xff]  }
  0x8c   :  { %934 = vmatprep.subr.bf16.mxu1 %v6417_v27  ;;  %v6435_v39 = vld [vmem:[#allocation10 + $0xcc] ss:$48 sps:$4 sm:$0xff]   ;;  %v6437_v40 = vld [vmem:[#allocation10 + $0xc0] ss:$48 sps:$4 sm:$0xff]   ;;  %v6438_v41 = vld [vmem:[#allocation10 + $0xc8] ss:$48 sps:$4 sm:$0xff]  }
  0x8d   :  { %v6439_v42 = vld [vmem:[#allocation10 + $0x64] ss:$48 sps:$4 sm:$0xff]   ;;  %v6441_v43 = vld [vmem:[#allocation10 + $0x6c] ss:$48 sps:$4 sm:$0xff]   ;;  %v6443_v44 = vld [vmem:[#allocation10 + $0x60] ss:$48 sps:$4 sm:$0xff]  }
  0x8e   :  { %892 = vmatpush1.bf16.msra.mxu0 %v6419_v28  ;;  %935 = vmatpush1.bf16.msra.mxu1 %v6420_v29  ;;  %v6444_v45 = vld [vmem:[#allocation10 + $0x68] ss:$48 sps:$4 sm:$0xff]   ;;  %v6445_v46 = vld [vmem:[#allocation10 + $0x4] ss:$48 sps:$4 sm:$0xff]   ;;  %v6447_v47 = vld [vmem:[#allocation10 + $0xc] ss:$48 sps:$4 sm:$0xff]  }
  0x8f   :  { %208 = vadd.xlane.f32.xlu0 %v205_v7  ;;  %893 = vmatprep.subr.bf16.mxu0 %v6421_v30  ;;  %v6449_v48 = vld [vmem:[#allocation10] ss:$48 sps:$4 sm:$0xff]   ;;  %v6450_v49 = vld [vmem:[#allocation10 + $0x8] ss:$48 sps:$4 sm:$0xff]   ;;  %v6453_v50 = vld [vmem:[#allocation10 + $0x2b4] ss:$48 sps:$4 sm:$0xff]  }
  0x90   :  { %936 = vmatprep.subr.bf16.mxu1 %v6423_v31  ;;  %v6456_v51 = vld [vmem:[#allocation10 + $0x2bc] ss:$48 sps:$4 sm:$0xff]   ;;  %v6451_v8 = vld [vmem:[#allocation10 + $0x2b0] ss:$48 sps:$4 sm:$0xff]   ;;  %v6454_v9 = vld [vmem:[#allocation10 + $0x2b8] ss:$48 sps:$4 sm:$0xff]  }
  0x91   :  { %v5408_v61 = vld [vmem:[#allocation7] ss:$0 sm:$0xff]  ;;  %v6459_v11 = vld [vmem:[#allocation10 + $0x254] ss:$48 sps:$4 sm:$0xff]   ;;  %v6472_v22 = vld [vmem:[#allocation10 + $0x198] ss:$48 sps:$4 sm:$0xff]  }
  0x92   :  { %894 = vmatpush1.bf16.msra.mxu0 %v6425_v32  ;;  %937 = vmatpush1.bf16.msra.mxu1 %v6426_v33  ;;  %v6477_v23 = vld [vmem:[#allocation10 + $0x134] ss:$48 sps:$4 sm:$0xff]   ;;  %v6480_v24 = vld [vmem:[#allocation10 + $0x13c] ss:$48 sps:$4 sm:$0xff]   ;;  %v6475_v25 = vld [vmem:[#allocation10 + $0x130] ss:$48 sps:$4 sm:$0xff]  }
  0x93   :  { %895 = vmatprep.subr.bf16.mxu0 %v6427_v34  ;;  %938 = vmatprep.subr.bf16.mxu1 %v6429_v35  ;;  %v6478_v26 = vld [vmem:[#allocation10 + $0x138] ss:$48 sps:$4 sm:$0xff]   ;;  %v6483_v27 = vld [vmem:[#allocation10 + $0xd4] ss:$48 sps:$4 sm:$0xff]   ;;  %v6486_v28 = vld [vmem:[#allocation10 + $0xdc] ss:$48 sps:$4 sm:$0xff]  }
  0x94   :  { %v6481_v29 = vld [vmem:[#allocation10 + $0xd0] ss:$48 sps:$4 sm:$0xff]   ;;  %v6484_v30 = vld [vmem:[#allocation10 + $0xd8] ss:$48 sps:$4 sm:$0xff]   ;;  %v6489_v31 = vld [vmem:[#allocation10 + $0x74] ss:$48 sps:$4 sm:$0xff]  }
  0x95   :  { %v6492_v32 = vld [vmem:[#allocation10 + $0x7c] ss:$48 sps:$4 sm:$0xff]   ;;  %v6487_v33 = vld [vmem:[#allocation10 + $0x70] ss:$48 sps:$4 sm:$0xff]   ;;  %v6490_v34 = vld [vmem:[#allocation10 + $0x78] ss:$48 sps:$4 sm:$0xff]  }
  0x96   :  { %896 = vmatpush1.bf16.msra.mxu0 %v6431_v36  ;;  %939 = vmatpush1.bf16.msra.mxu1 %v6432_v37  ;;  %v6495_v35 = vld [vmem:[#allocation10 + $0x14] ss:$48 sps:$4 sm:$0xff]   ;;  %v6498_v36 = vld [vmem:[#allocation10 + $0x1c] ss:$48 sps:$4 sm:$0xff]   ;;  %v6493_v37 = vld [vmem:[#allocation10 + $0x10] ss:$48 sps:$4 sm:$0xff]  }
  0x97   :  { %897 = vmatprep.subr.bf16.mxu0 %v6433_v38  ;;  %940 = vmatprep.subr.bf16.mxu1 %v6435_v39  ;;  %v6496_v38 = vld [vmem:[#allocation10 + $0x18] ss:$48 sps:$4 sm:$0xff]   ;;  %v6501_v39 = vld [vmem:[#allocation10 + $0x2c4] ss:$48 sps:$4 sm:$0xff]  }
  0x9a   :  { %898 = vmatpush1.bf16.msra.mxu0 %v6437_v40  ;;  %941 = vmatpush1.bf16.msra.mxu1 %v6438_v41  ;;  %v6504_v40 = vld [vmem:[#allocation10 + $0x2cc] ss:$48 sps:$4 sm:$0xff]   ;;  %v6499_v41 = vld [vmem:[#allocation10 + $0x2c0] ss:$48 sps:$4 sm:$0xff]  }
  0x9b   :  { %899 = vmatprep.subr.bf16.mxu0 %v6439_v42  ;;  %942 = vmatprep.subr.bf16.mxu1 %v6441_v43  ;;  %v6502_v42 = vld [vmem:[#allocation10 + $0x2c8] ss:$48 sps:$4 sm:$0xff]   ;;  %v6507_v43 = vld [vmem:[#allocation10 + $0x264] ss:$48 sps:$4 sm:$0xff]  }
  0x9e   :  { %900 = vmatpush1.bf16.msra.mxu0 %v6443_v44  ;;  %943 = vmatpush1.bf16.msra.mxu1 %v6444_v45  ;;  %v6510_v44 = vld [vmem:[#allocation10 + $0x26c] ss:$48 sps:$4 sm:$0xff]   ;;  %v6505_v45 = vld [vmem:[#allocation10 + $0x260] ss:$48 sps:$4 sm:$0xff]  }
  0x9f   :  { %901 = vmatprep.subr.bf16.mxu0 %v6445_v46  ;;  %944 = vmatprep.subr.bf16.mxu1 %v6447_v47  ;;  %v6508_v46 = vld [vmem:[#allocation10 + $0x268] ss:$48 sps:$4 sm:$0xff]   ;;  %v6513_v47 = vld [vmem:[#allocation10 + $0x204] ss:$48 sps:$4 sm:$0xff]  }
  0xa2   :  { %902 = vmatpush1.bf16.msra.mxu0 %v6449_v48  ;;  %945 = vmatpush1.bf16.msra.mxu1 %v6450_v49  ;;  %v6516_v48 = vld [vmem:[#allocation10 + $0x20c] ss:$48 sps:$4 sm:$0xff]   ;;  %v6511_v49 = vld [vmem:[#allocation10 + $0x200] ss:$48 sps:$4 sm:$0xff]  }
  0xa3   :  { %973 = vmatprep.subr.bf16.mxu0 %v6453_v50  ;;  %1016 = vmatprep.subr.bf16.mxu1 %v6456_v51  ;;  %v6514_v50 = vld [vmem:[#allocation10 + $0x208] ss:$48 sps:$4 sm:$0xff]   ;;  %v6519_v51 = vld [vmem:[#allocation10 + $0x1a4] ss:$48 sps:$4 sm:$0xff]  }
 0x114   :  { %v207_v12 = vpop.xlane.xlu0 %206 }
 0x115   :  { %v210_v13 = vmul.f32 0.03125, %v207_v12  ;;  %v6462_v12 = vld [vmem:[#allocation10 + $0x25c] ss:$48 sps:$4 sm:$0xff]  }
 0x117   :  { %v212_v14 = vsub.f32 %v200_v4, %v210_v13  ;;  %v5409_v4 = vld [vmem:[#allocation8] ss:$0 sm:$0xff]  ;;  %v6457_v13 = vld [vmem:[#allocation10 + $0x250] ss:$48 sps:$4 sm:$0xff]  }
 0x118   :  { %v209_v15 = vpop.xlane.xlu0 %208 }
 0x119   :  { %v211_v16 = vmul.f32 0.03125, %v209_v15  ;;  %v7294_v17 = vmul.f32 %v7289_v3, %v212_v14  ;;  %v6460_v14 = vld [vmem:[#allocation10 + $0x258] ss:$48 sps:$4 sm:$0xff]   ;;  %v6465_v15 = vld [vmem:[#allocation10 + $0x1f4] ss:$48 sps:$4 sm:$0xff]  }
 0x11b   :  { %v213_v18 = vsub.f32 %v201_v5, %v211_v16  ;;  %v216_v19 = vmul.f32 %v7294_v17, %v7294_v17  ;;  %v6468_v16 = vld [vmem:[#allocation10 + $0x1fc] ss:$48 sps:$4 sm:$0xff]  }
 0x11d   :  { %218 = vadd.xlane.f32.xlu1 %v216_v19  ;;  %v7299_v20 = vmul.f32 %v7289_v3, %v213_v18  ;;  %v6466_v18 = vld [vmem:[#allocation10 + $0x1f8] ss:$48 sps:$4 sm:$0xff]   ;;  %v6471_v19 = vld [vmem:[#allocation10 + $0x194] ss:$48 sps:$4 sm:$0xff]  }
 0x11f   :  { %v217_v21 = vmul.f32 %v7299_v20, %v7299_v20 }
 0x121   :  { %220 = vadd.xlane.f32.xlu1 %v217_v21  ;;  %v6469_v21 = vld [vmem:[#allocation10 + $0x190] ss:$48 sps:$4 sm:$0xff]  }
 0x1a6   :  { %v219_v53 = vpop.xlane.xlu1 %218 }
 0x1a7   :  { %v222_v54 = vmul.f32 0.03125, %v219_v53  ;;  %v6522_v53 = vld [vmem:[#allocation10 + $0x1ac] ss:$48 sps:$4 sm:$0xff]  }
 0x1a9   :  { %v224_v55 = vadd.f32 1e-12, %v222_v54  ;;  %v6517_v54 = vld [vmem:[#allocation10 + $0x1a0] ss:$48 sps:$4 sm:$0xff]  }
 0x1aa   :  { %v221_v56 = vpop.xlane.xlu1 %220 }
 0x1ab   :  { %6795 = vrsqrt.f32 %v224_v55  ;;  %v223_v57 = vmul.f32 0.03125, %v221_v56  ;;  %v6520_v55 = vld [vmem:[#allocation10 + $0x1a8] ss:$48 sps:$4 sm:$0xff]   ;;  %v6525_v56 = vld [vmem:[#allocation10 + $0x144] ss:$48 sps:$4 sm:$0xff]  }
 0x1ad   :  { %v225_v58 = vadd.f32 1e-12, %v223_v57  ;;  %v6528_v57 = vld [vmem:[#allocation10 + $0x14c] ss:$48 sps:$4 sm:$0xff]  }
 0x1af   :  { %6797 = vrsqrt.f32 %v225_v58  ;;  %v6523_v58 = vld [vmem:[#allocation10 + $0x140] ss:$48 sps:$4 sm:$0xff]  }
 0x1b8   :  { %v6796_v59 = vpop.eup %6795 }
 0x1b9   :  { %v228_v60 = vmul.f32 %v6796_v59, %v7294_v17  ;;  %v6463_v17 = vld [vmem:[#allocation10 + $0x1f0] ss:$48 sps:$4 sm:$0xff]   ;;  %v6526_v59 = vld [vmem:[#allocation10 + $0x148] ss:$48 sps:$4 sm:$0xff]  }
 0x1bb   :  { %v236_v63 = vmul.f32 %v5408_v61, %v228_v60  ;;  %v6531_v60 = vld [vmem:[#allocation10 + $0xe4] ss:$48 sps:$4 sm:$0xff]  }
 0x1bc   :  { %v6798_v62 = vpop.eup %6797 }
 0x1bd   :  { %v229_v1 = vmul.f32 %v6798_v62, %v7299_v20  ;;  %v7307_v6 = vadd.f32 %v5409_v4, %v236_v63  ;;  %v6474_v20 = vld [vmem:[#allocation10 + $0x19c] ss:$48 sps:$4 sm:$0xff]   ;;  %v6529_v62 = vld [vmem:[#allocation10 + $0xe0] ss:$48 sps:$4 sm:$0xff]   ;;  %v6532_v63 = vld [vmem:[#allocation10 + $0xe8] ss:$48 sps:$4 sm:$0xff]  }
 0x1bf   :  { %v237_v5 = vmul.f32 %v5408_v61, %v229_v1  ;;  %v6534_v61 = vld [vmem:[#allocation10 + $0xec] ss:$48 sps:$4 sm:$0xff]   ;;  %v6537_v1 = vld [vmem:[#allocation10 + $0x84] ss:$48 sps:$4 sm:$0xff]  }
 0x1c1   :  { %v7309_v7 = vadd.f32 %v5409_v4, %v237_v5  ;;  %v6540_v4 = vld [vmem:[#allocation10 + $0x8c] ss:$48 sps:$4 sm:$0xff]   ;;  %v6535_v5 = vld [vmem:[#allocation10 + $0x80] ss:$48 sps:$4 sm:$0xff]  }
 0x1c3   :  { %v7313_v10 = vpack.c.bf16 %v7309_v7, %v7307_v6 }
 0x1c5   :  { %920 = vmatmul.mubr.bf16.vlgmr.msra.gmra.mxu0 %v7313_v10  ;;  %963 = vmatmul.mubr.bf16.vlgmr.msra.gmra.mxu1 %v7313_v10 }
 0x1c6   :  { %974 = vmatpush1.bf16.msra.mxu0 %v6451_v8  ;;  %1017 = vmatpush1.bf16.msra.mxu1 %v6454_v9  ;;  %v6538_v8 = vld [vmem:[#allocation10 + $0x88] ss:$48 sps:$4 sm:$0xff]   ;;  %v6543_v9 = vld [vmem:[#allocation10 + $0x24] ss:$48 sps:$4 sm:$0xff]  }
 0x1c7   :  { %975 = vmatprep.subr.bf16.mxu0 %v6459_v11  ;;  %1018 = vmatprep.subr.bf16.mxu1 %v6462_v12  ;;  %v6546_v11 = vld [vmem:[#allocation10 + $0x2c] ss:$48 sps:$4 sm:$0xff]   ;;  %v6541_v12 = vld [vmem:[#allocation10 + $0x20] ss:$48 sps:$4 sm:$0xff]  }
 0x1c8   :  { %1005 = vmatprep.mubr.bf16.mxu0 %v7144_v52  ;;  %1048 = vmatprep.mubr.bf16.mxu1 %v7144_v52 }
 0x1ca   :  { %976 = vmatpush1.bf16.msra.mxu0 %v6457_v13  ;;  %1019 = vmatpush1.bf16.msra.mxu1 %v6460_v14  ;;  %v6544_v13 = vld [vmem:[#allocation10 + $0x28] ss:$48 sps:$4 sm:$0xff]   ;;  %v7332_v14 = vshrl.u32 %v193_v0, 7 }
 0x1cb   :  { %977 = vmatprep.subr.bf16.mxu0 %v6465_v15  ;;  %1020 = vmatprep.subr.bf16.mxu1 %v6468_v16  ;;  %v7337_v16 = vld [vmem:[#allocation11] sm:$0xff] }
 0x1cc   :  { %v7335_v15 = vsub.s32 2, %v7332_v14  ;;  %v365_v0 = vsub.s32 4, %v7332_v14 }
 0x1ce   :  { %978 = vmatpush1.bf16.msra.mxu0 %v6463_v17  ;;  %1021 = vmatpush1.bf16.msra.mxu1 %v6466_v18  ;;  %v7341_v17 = vrot.slane %v7337_v16, %v7335_v15 }
 0x1cf   :  { %979 = vmatprep.subr.bf16.mxu0 %v6471_v19  ;;  %1022 = vmatprep.subr.bf16.mxu1 %v6474_v20 }
 0x1d2   :  { %980 = vmatpush1.bf16.msra.mxu0 %v6469_v21  ;;  %1023 = vmatpush1.bf16.msra.mxu1 %v6472_v22  ;;  %v373_v22 = vsub.s32 6, %v7332_v14 }
 0x1d3   :  { %981 = vmatprep.subr.bf16.mxu0 %v6477_v23  ;;  %1024 = vmatprep.subr.bf16.mxu1 %v6480_v24 }
 0x1d6   :  { %982 = vmatpush1.bf16.msra.mxu0 %v6475_v25  ;;  %1025 = vmatpush1.bf16.msra.mxu1 %v6478_v26  ;;  %v366_v25 = vrot.slane %v7337_v16, %v365_v0  ;;  %v7360_v26 = vrot.slane %v7337_v16, %v373_v22 }
 0x1d7   :  { %983 = vmatprep.subr.bf16.mxu0 %v6483_v27  ;;  %1026 = vmatprep.subr.bf16.mxu1 %v6486_v28  ;;  %v7363_v27 = vsub.s32 0, %v7332_v14 }
 0x1da   :  { %984 = vmatpush1.bf16.msra.mxu0 %v6481_v29  ;;  %1027 = vmatpush1.bf16.msra.mxu1 %v6484_v30 }
 0x1db   :  { %985 = vmatprep.subr.bf16.mxu0 %v6489_v31  ;;  %1028 = vmatprep.subr.bf16.mxu1 %v6492_v32 }
 0x1de   :  { %986 = vmatpush1.bf16.msra.mxu0 %v6487_v33  ;;  %1029 = vmatpush1.bf16.msra.mxu1 %v6490_v34  ;;  %v350_v34 = vrot.slane %v7337_v16, %v7363_v27 }
 0x1df   :  { %987 = vmatprep.subr.bf16.mxu0 %v6495_v35  ;;  %1030 = vmatprep.subr.bf16.mxu1 %v6498_v36 }
 0x1e2   :  { %988 = vmatpush1.bf16.msra.mxu0 %v6493_v37  ;;  %1031 = vmatpush1.bf16.msra.mxu1 %v6496_v38 }
 0x1e3   :  { %1059 = vmatprep.subr.bf16.mxu0 %v6501_v39  ;;  %1102 = vmatprep.subr.bf16.mxu1 %v6504_v40 }
 0x1e5   :  { %1006 = vmatmul.mubr.bf16.vlgmr.msra.gmra.mxu0 %v7313_v10  ;;  %1049 = vmatmul.mubr.bf16.vlgmr.msra.gmra.mxu1 %v7313_v10 }
 0x1e6   :  { %1060 = vmatpush1.bf16.msra.mxu0 %v6499_v41  ;;  %1103 = vmatpush1.bf16.msra.mxu1 %v6502_v42 }
 0x1e7   :  { %1061 = vmatprep.subr.bf16.mxu0 %v6507_v43  ;;  %1104 = vmatprep.subr.bf16.mxu1 %v6510_v44 }
 0x1e8   :  { %1091 = vmatprep.mubr.bf16.mxu0 %v7144_v52  ;;  %1134 = vmatprep.mubr.bf16.mxu1 %v7144_v52 }
 0x1ea   :  { %1062 = vmatpush1.bf16.msra.mxu0 %v6505_v45  ;;  %1105 = vmatpush1.bf16.msra.mxu1 %v6508_v46  ;;  %v344_v46 = vld [vmem:[#allocation11 + $0x8] sm:$0xf] }
 0x1eb   :  { %1063 = vmatprep.subr.bf16.mxu0 %v6513_v47  ;;  %1106 = vmatprep.subr.bf16.mxu1 %v6516_v48  ;;  %v7387_v47 = vsub.s32 1, %v7332_v14  ;;  %v7390_v48 = vsub.s32 3, %v7332_v14 }
 0x1ee   :  { %1064 = vmatpush1.bf16.msra.mxu0 %v6511_v49  ;;  %1107 = vmatpush1.bf16.msra.mxu1 %v6514_v50  ;;  %v382_v49 = vrot.slane %v344_v46, %v7363_v27  ;;  %v390_v50 = vrot.slane %v344_v46, %v7335_v15 }
 0x1ef   :  { %1065 = vmatprep.subr.bf16.mxu0 %v6519_v51  ;;  %1108 = vmatprep.subr.bf16.mxu1 %v6522_v53 }
 0x1f2   :  { %1066 = vmatpush1.bf16.msra.mxu0 %v6517_v54  ;;  %1109 = vmatpush1.bf16.msra.mxu1 %v6520_v55  ;;  %v7399_v54 = vrot.slane %v344_v46, %v7387_v47  ;;  %v7402_v55 = vrot.slane %v344_v46, %v7390_v48 }
 0x1f3   :  { %1067 = vmatprep.subr.bf16.mxu0 %v6525_v56  ;;  %1110 = vmatprep.subr.bf16.mxu1 %v6528_v57 }
 0x1f6   :  { %1068 = vmatpush1.bf16.msra.mxu0 %v6523_v58  ;;  %1111 = vmatpush1.bf16.msra.mxu1 %v6526_v59 }
 0x1f7   :  { %1069 = vmatprep.subr.bf16.mxu0 %v6531_v60  ;;  %1112 = vmatprep.subr.bf16.mxu1 %v6534_v61 }
 0x1fa   :  { %1070 = vmatpush1.bf16.msra.mxu0 %v6529_v62  ;;  %1113 = vmatpush1.bf16.msra.mxu1 %v6532_v63 }
 0x1fb   :  { %1071 = vmatprep.subr.bf16.mxu0 %v6537_v1  ;;  %1114 = vmatprep.subr.bf16.mxu1 %v6540_v4 }
 0x1fe   :  { %1072 = vmatpush1.bf16.msra.mxu0 %v6535_v5  ;;  %1115 = vmatpush1.bf16.msra.mxu1 %v6538_v8 }
 0x1ff   :  { %1073 = vmatprep.subr.bf16.mxu0 %v6543_v9  ;;  %1116 = vmatprep.subr.bf16.mxu1 %v6546_v11 }
 0x202   :  { %1074 = vmatpush1.bf16.msra.mxu0 %v6541_v12  ;;  %1117 = vmatpush1.bf16.msra.mxu1 %v6544_v13 }
 0x203   :  { %5927 = vmatprep.subr.bf16.mxu0 %v7143_v2  ;;  %5933 = vmatprep.subr.bf16.mxu1 %v7143_v2 }
 0x205   :  { %1092 = vmatmul.mubr.bf16.vlgmr.msra.gmra.mxu0 %v7313_v10  ;;  %1135 = vmatmul.mubr.bf16.vlgmr.msra.gmra.mxu1 %v7313_v10 }
 0x206   :  { %5929 = vmatprep.mubr.msk.bf16.mxu0 %vm7145_vm1, %v7143_v2  ;;  %5935 = vmatprep.mubr.msk.bf16.mxu1 %vm7145_vm1, %v7143_v2 }
 0x285   :  { %v964_v10 = vpop.f32.mrf.mxu1  ;;  %v921_v19 = vpop.f32.mrf.mxu0 }
 0x286   :  { %v7344_v18 = vadd.f32 %v964_v10, %v7341_v17  ;;  %v922_v39 = vadd.f32 %v921_v19, %v350_v34 }
 0x287   :  { %v7346_v20 = vpop.f32.mrf.mxu0  ;;  %v7348_v21 = vpop.f32.mrf.mxu1 }
 0x288   :  { %v1145_v41 = vpack.c.bf16 %v922_v39, %v922_v39  ;;  %v7422_v39 = vld [vmem:[#allocation5] ss:$0 sm:$0xff] }
 0x289   :  { %v925_v23 = vpop.f32.mrf.mxu0  ;;  %v7352_v24 = vpop.f32.mrf.mxu1 }
 0x28a   :  { %v926_v42 = vadd.f32 %v925_v23, %v350_v34 }
 0x28b   :  { %v7365_v28 = vpop.f32.mrf.mxu0  ;;  %v7367_v29 = vpop.f32.mrf.mxu1 }
 0x28c   :  { %v1146_v43 = vpack.c.bf16 %v926_v42, %v926_v42 }
 0x2a5   :  { %v1007_v30 = vpop.f32.mrf.mxu0  ;;  %v1050_v31 = vpop.f32.mrf.mxu1 }
 0x2a6   :  { %v1008_v32 = vadd.f32 %v1007_v30, %v366_v25  ;;  %v7370_v33 = vadd.f32 %v1050_v31, %v7360_v26 }
 0x2a7   :  { %v7374_v35 = vpop.f32.mrf.mxu0  ;;  %v7382_v44 = vpop.f32.mrf.mxu1 }
 0x2a8   :  { %v1147_v36 = vpack.c.bf16 %v1008_v32, %v1008_v32  ;;  %v7420_v32 = vld [vmem:[#allocation5 + $0x1] ss:$0 sm:$0xff] }
 0x2a9   :  { %v1011_v37 = vpop.f32.mrf.mxu0  ;;  %v7384_v45 = vpop.f32.mrf.mxu1 }
 0x2aa   :  { %v1012_v38 = vadd.f32 %v1011_v37, %v366_v25  ;;  %5928 = vmatpush3.bf16.xpose.msra.mxu0 %v1147_v36 }
 0x2ab   :  { %5939 = vmatprep.subr.bf16.mxu0 %v7143_v2  ;;  %v7394_v51 = vpop.f32.mrf.mxu0  ;;  %v7396_v53 = vpop.f32.mrf.mxu1 }
 0x2ac   :  { %v1148_v40 = vpack.c.bf16 %v1012_v38, %v1012_v38 }
 0x2ae   :  { %5934 = vmatpush3.bf16.xpose.msra.mxu1 %v1148_v40 }
 0x2af   :  { %5945 = vmatprep.subr.bf16.mxu1 %v7143_v2 }
 0x2b1   :  { %5930 = vmatmul.mubr.bf16.vlgmr.msra.gmra.mxu0 %v1145_v41 }
 0x2b2   :  { %5941 = vmatprep.mubr.msk.bf16.mxu0 %vm7145_vm1, %v7143_v2 }
 0x2b5   :  { %5936 = vmatmul.mubr.bf16.vlgmr.msra.gmra.mxu1 %v1146_v43 }
 0x2b6   :  { %5947 = vmatprep.mubr.msk.bf16.mxu1 %vm7145_vm1, %v7143_v2 }
 0x2c5   :  { %v1093_v56 = vpop.f32.mrf.mxu0  ;;  %v1136_v57 = vpop.f32.mrf.mxu1 }
 0x2c6   :  { %v1094_v58 = vadd.f32 %v1093_v56, %v382_v49  ;;  %v7404_v59 = vadd.f32 %v1136_v57, %v390_v50 }
 0x2c7   :  { %v1095_v60 = vpop.f32.mrf.mxu0  ;;  %v1138_v61 = vpop.f32.mrf.mxu1 }
 0x2c8   :  { %v1149_v62 = vpack.c.bf16 %v1094_v58, %v1094_v58  ;;  %v7407_v63 = vadd.f32 %v1095_v60, %v7399_v54  ;;  %v7410_v1 = vadd.f32 %v1138_v61, %v7402_v55 }
 0x2c9   :  { %v1097_v4 = vpop.f32.mrf.mxu0  ;;  %v1140_v5 = vpop.f32.mrf.mxu1 }
 0x2ca   :  { %v1277_v8 = vsel %vm1275_vm2, %v1149_v62, 0  ;;  %v1098_v9 = vadd.f32 %v1097_v4, %v382_v49  ;;  %v7413_v11 = vadd.f32 %v1140_v5, %v390_v50 }
 0x2cb   :  { %5940 = vmatpush3.bf16.msra.mxu0 %v1277_v8  ;;  %v1099_v10 = vpop.f32.mrf.mxu0  ;;  %v7418_v23 = vpop.f32.mrf.mxu1 }
 0x2cc   :  { %5951 = vmatprep.subr.bf16.mxu0 %v7143_v2  ;;  %v1150_v12 = vpack.c.bf16 %v1098_v9, %v1098_v9 }
 0x2ce   :  { %v1323_v13 = vsel %vm1275_vm2, %v1150_v12, 0 }
 0x2cf   :  { %5946 = vmatpush3.bf16.msra.mxu1 %v1323_v13  ;;  %v369_v13 = vsub.s32 5, %v7332_v14 }
 0x2d0   :  { %5957 = vmatprep.subr.bf16.mxu1 %v7143_v2 }
 0x371   :  { %v1185_v19 = vpop.f32.mrf.mxu0 }
 0x372   :  { %v1231_v34 = vmul.f32 0.35355338, %v1185_v19  ;;  %v370_v19 = vrot.slane %v7337_v16, %v369_v13 }
 0x373   :  { %v5931_v25 = vpop.f32.mrf.mxu0 }
 0x374   :  { %v1245_v43 = vadd.f32 %v7422_v39, %v1231_v34 }
 0x375   :  { %v1188_v30 = vpop.f32.mrf.mxu0  ;;  %v1225_v31 = vpop.f32.mrf.mxu1 }
 0x376   :  { %v1232_v36 = vmul.f32 0.35355338, %v1225_v31  ;;  %v1248_v49 = vsel %vm1247_vm3, %v1245_v43, -inf  ;;  %v1014_v30 = vadd.f32 %v7394_v51, %v370_v19 }
 0x377   :  { %v5932_v37 = vpop.f32.mrf.mxu0  ;;  %v5937_v38 = vpop.f32.mrf.mxu1 }
 0x378   :  { %v1246_v40 = vadd.f32 %v7420_v32, %v1232_v36  ;;  %v1010_v37 = vadd.f32 %v7374_v35, %v370_v19  ;;  %v1385_v38 = vpack.c.bf16 %v1014_v30, %v1014_v30 }
 0x379   :  { %v1228_v41 = vpop.f32.mrf.mxu1 }
 0x37a   :  { %v1251_v42 = vsel %vm1247_vm3, %v1246_v40, -inf  ;;  %v1100_v41 = vadd.f32 %v1099_v10, %v7399_v54 }
 0x37b   :  { %v5938_v46 = vpop.f32.mrf.mxu1  ;;  %1252 = vmax.xlane.f32.xlu0 %v1251_v42 }
 0x37c   :  { %v1384_v46 = vpack.c.bf16 %v1010_v37, %v1010_v37  ;;  %v1387_v35 = vpack.c.bf16 %v1100_v41, %v1100_v41 }
 0x37f   :  { %1249 = vmax.xlane.f32.xlu0 %v1248_v49  ;;  %v1386_v49 = vpack.c.bf16 %v7407_v63, %v7407_v63 }
 0x404   :  { %v1253_v50 = vpop.xlane.xlu0 %1252 }
 0x405   :  { %v1255_v56 = vsub.f32 %v1246_v40, %v1253_v50  ;;  %v354_v40 = vrot.slane %v7337_v16, %v7387_v47 }
 0x407   :  { %v1258_v57 = vmul.f32 1.442695, %v1255_v56  ;;  %v928_v51 = vadd.f32 %v7365_v28, %v354_v40  ;;  %v924_v54 = vadd.f32 %v7346_v20, %v354_v40  ;;  %v1546_v28 = vsel %vm1275_vm2, %v1387_v35, 0 }
 0x408   :  { %v1250_v58 = vpop.xlane.xlu0 %1249  ;;  %v1500_v56 = vsel %vm1275_vm2, %v1386_v49, 0 }
 0x409   :  { %6799 = vpow2.f32 %v1258_v57  ;;  %v1254_v60 = vsub.f32 %v1245_v43, %v1250_v58  ;;  %v1383_v10 = vpack.c.bf16 %v928_v51, %v928_v51  ;;  %v1382_v50 = vpack.c.bf16 %v924_v54, %v924_v54 }
 0x40b   :  { %v1256_v61 = vmul.f32 1.442695, %v1254_v60 }
 0x40d   :  { %6801 = vpow2.f32 %v1256_v61 }
 0x416   :  { %v6800_v62 = vpop.eup %6799 }
 0x417   :  { %v1263_v4 = vsel %vm1247_vm3, %v6800_v62, 0.0 }
 0x418   :  { %1264 = vadd.xlane.f32.xlu1 %v1263_v4 }
 0x41a   :  { %v6802_v5 = vpop.eup %6801 }
 0x41b   :  { %v1260_v8 = vsel %vm1247_vm3, %v6802_v5, 0.0 }
 0x41c   :  { %1261 = vadd.xlane.f32.xlu1 %v1260_v8 }
 0x4a1   :  { %v1265_v9 = vpop.xlane.xlu1 %1264 }
 0x4a2   :  { %6803 = vrcp.f32 %v1265_v9 }
 0x4a5   :  { %v1262_v12 = vpop.xlane.xlu1 %1261 }
 0x4a6   :  { %6805 = vrcp.f32 %v1262_v12 }
 0x4af   :  { %v6804_v25 = vpop.eup %6803 }
 0x4b0   :  { %v1269_v31 = vmul.f32 %v6804_v25, %v6800_v62 }
 0x4b2   :  { %v1271_v34 = vpack.c.bf16 %v1269_v31, %v1269_v31 }
 0x4b3   :  { %v6806_v36 = vpop.eup %6805 }
 0x4b4   :  { %5948 = vmatmul.mubr.msk.bf16.vlgmr.msra.gmra.mxu1 %vm1247_vm3, %v1271_v34  ;;  %v1267_v42 = vmul.f32 %v6806_v36, %v6802_v5 }
 0x4b5   :  { %5958 = vmatpush3.bf16.xpose.msra.mxu1 %v1385_v38  ;;  %5959 = vmatprep.mubr.msk.bf16.mxu1 %vm7145_vm1, %v7143_v2 }
 0x4b6   :  { %v1270_v43 = vpack.c.bf16 %v1267_v42, %v1267_v42  ;;  %5969 = vmatprep.subr.bf16.mxu1 %v7143_v2 }
 0x4b8   :  { %5942 = vmatmul.mubr.msk.bf16.vlgmr.msra.gmra.mxu0 %vm1247_vm3, %v1270_v43 }
 0x4b9   :  { %5952 = vmatpush3.bf16.xpose.msra.mxu0 %v1384_v46  ;;  %5953 = vmatprep.mubr.msk.bf16.mxu0 %vm7145_vm1, %v7143_v2 }
 0x4ba   :  { %5963 = vmatprep.subr.bf16.mxu0 %v7143_v2 }
 0x4bc   :  { %5960 = vmatmul.mubr.bf16.vlgmr.msra.gmra.mxu1 %v1383_v10 }
 0x4bd   :  { %5970 = vmatpush3.bf16.msra.mxu1 %v1546_v28  ;;  %5971 = vmatprep.mubr.msk.bf16.mxu1 %vm7145_vm1, %v7143_v2 }
 0x4be   :  { %5995 = vmatprep.subr.bf16.mxu1 %v7143_v2 }
 0x4c0   :  { %5954 = vmatmul.mubr.bf16.vlgmr.msra.gmra.mxu0 %v1382_v50 }
 0x4c1   :  { %5964 = vmatpush3.bf16.msra.mxu0 %v1500_v56  ;;  %5965 = vmatprep.mubr.msk.bf16.mxu0 %vm7145_vm1, %v7143_v2 }
 0x4c2   :  { %5975 = vmatprep.subr.bf16.mxu0 %v7143_v2 }
 0x574   :  { %v7459_v20 = vpop.f32.mrf.mxu1 }
 0x576   :  { %v5949_v63 = vpop.f32.mrf.mxu1 }
 0x578   :  { %v7461_v57 = vpop.f32.mrf.mxu0  ;;  %v1362_v58 = vpop.f32.mrf.mxu1 }
 0x579   :  { %v1365_v60 = vpack.c.bf16 %v7459_v20, %v7461_v57  ;;  %v6562_v20 = vld [vmem:[#allocation13 + $0x40] sm:$0xff]  }
 0x57a   :  { %v5943_v61 = vpop.f32.mrf.mxu0  ;;  %v5950_v62 = vpop.f32.mrf.mxu1 }
 0x57c   :  { %v1316_v4 = vpop.f32.mrf.mxu0  ;;  %v1462_v5 = vpop.f32.mrf.mxu1 }
 0x57d   :  { %v1469_v8 = vmul.f32 0.35355338, %v1462_v5  ;;  %v6547_v4 = vld [vmem:[#allocation13 + $0x38] sm:$0xff]  }
 0x57e   :  { %v5944_v9 = vpop.f32.mrf.mxu0  ;;  %v5961_v12 = vpop.f32.mrf.mxu1 }
 0x57f   :  { %v1471_v19 = vadd.f32 %v7420_v32, %v1469_v8  ;;  %v6548_v12 = vld [vmem:[#allocation13 + $0x30] sm:$0xff]  }
 0x580   :  { %v1422_v25 = vpop.f32.mrf.mxu0  ;;  %v1465_v30 = vpop.f32.mrf.mxu1 }
 0x581   :  { %v1468_v31 = vmul.f32 0.35355338, %v1422_v25  ;;  %v1475_v34 = vsel %vm1247_vm3, %v1471_v19, -inf  ;;  %v6549_v30 = vld [vmem:[#allocation13 + $0x28] sm:$0xff]  }
 0x582   :  { %v5962_v36 = vpop.f32.mrf.mxu1  ;;  %1476 = vmax.xlane.f32.xlu0 %v1475_v34  ;;  %v5955_v37 = vpop.f32.mrf.mxu0  ;;  %v6550_v34 = vld [vmem:[#allocation13 + $0x20] sm:$0xff]  }
 0x583   :  { %v1470_v38 = vadd.f32 %v7422_v39, %v1468_v31  ;;  %v6556_v31 = vld [vmem:[#allocation13 + $0x70] sm:$0xff]   ;;  %v6557_v36 = vld [vmem:[#allocation13 + $0x68] sm:$0xff]   ;;  %v6551_v37 = vld [vmem:[#allocation13 + $0x18] sm:$0xff]  }
 0x584   :  { %v1425_v40 = vpop.f32.mrf.mxu0 }
 0x585   :  { %v1472_v41 = vsel %vm1247_vm3, %v1470_v38, -inf  ;;  %v6552_v40 = vld [vmem:[#allocation13 + $0x10] sm:$0xff]  }
 0x586   :  { %1473 = vmax.xlane.f32.xlu0 %v1472_v41  ;;  %v5956_v42 = vpop.f32.mrf.mxu0  ;;  %v6559_v41 = vld [vmem:[#allocation13 + $0x58] sm:$0xff]  }
 0x587   :  { %v6553_v42 = vld [vmem:[#allocation13 + $0x8] sm:$0xff]  }
 0x60b   :  { %v1477_v51 = vpop.xlane.xlu0 %1476 }
 0x60c   :  { %v1479_v43 = vsub.f32 %v1471_v19, %v1477_v51  ;;  %v6555_v19 = vld [vmem:[#allocation13 + $0x78] sm:$0xff]   ;;  %v6560_v51 = vld [vmem:[#allocation13 + $0x50] sm:$0xff]  }
 0x60e   :  { %v1482_v46 = vmul.f32 1.442695, %v1479_v43  ;;  %v6554_v43 = vld [vmem:[#allocation13] sm:$0xff]  }
 0x60f   :  { %v1474_v35 = vpop.xlane.xlu0 %1473 }
 0x610   :  { %6807 = vpow2.f32 %v1482_v46  ;;  %v1478_v54 = vsub.f32 %v1470_v38, %v1474_v35  ;;  %v6558_v38 = vld [vmem:[#allocation13 + $0x60] sm:$0xff]   ;;  %v6561_v46 = vld [vmem:[#allocation13 + $0x48] sm:$0xff]   ;;  %v1055_v35 = vadd.f32 %v7384_v45, %v7360_v26  ;;  %v1789_v26 = vpack.c.bf16 %v7413_v11, %v7413_v11 }
 0x611   :  { %v1786_v11 = vpack.c.bf16 %v7370_v33, %v7370_v33 }
 0x612   :  { %v1480_v10 = vmul.f32 1.442695, %v1478_v54  ;;  %v1787_v54 = vpack.c.bf16 %v1055_v35, %v1055_v35 }
 0x614   :  { %6809 = vpow2.f32 %v1480_v10  ;;  %v969_v10 = vadd.f32 %v7352_v24, %v7341_v17 }
 0x616   :  { %v1785_v45 = vpack.c.bf16 %v969_v10, %v969_v10 }
 0x61d   :  { %v6808_v49 = vpop.eup %6807 }
 0x61e   :  { %v1487_v28 = vsel %vm1247_vm3, %v6808_v49, 0.0 }
 0x61f   :  { %1488 = vadd.xlane.f32.xlu1 %v1487_v28 }
 0x621   :  { %v6810_v50 = vpop.eup %6809 }
 0x622   :  { %v1484_v56 = vsel %vm1247_vm3, %v6810_v50, 0.0 }
 0x623   :  { %1485 = vadd.xlane.f32.xlu1 %v1484_v56 }
 0x6a8   :  { %v1489_v63 = vpop.xlane.xlu1 %1488 }
 0x6a9   :  { %6811 = vrcp.f32 %v1489_v63 }
 0x6ac   :  { %v1486_v58 = vpop.xlane.xlu1 %1485 }
 0x6ad   :  { %6813 = vrcp.f32 %v1486_v58 }
 0x6b6   :  { %v6812_v61 = vpop.eup %6811 }
 0x6b7   :  { %v1493_v62 = vmul.f32 %v6812_v61, %v6808_v49  ;;  %v1948_v49 = vsel %vm1275_vm2, %v1789_v26, 0  ;;  %v1788_v61 = vpack.c.bf16 %v7404_v59, %v7404_v59 }
 0x6b9   :  { %v1495_v5 = vpack.c.bf16 %v1493_v62, %v1493_v62  ;;  %v1784_v62 = vpack.c.bf16 %v7344_v18, %v7344_v18 }
 0x6ba   :  { %v6814_v8 = vpop.eup %6813 }
 0x6bb   :  { %5972 = vmatmul.mubr.msk.bf16.vlgmr.msra.gmra.mxu1 %vm1247_vm3, %v1495_v5  ;;  %v1491_v9 = vmul.f32 %v6814_v8, %v6810_v50 }
 0x6bc   :  { %5996 = vmatpush3.bf16.msra.mxu1 %v6547_v4  ;;  %6011 = vmatprep.mubr.msk.bf16.mxu1 %vm7145_vm1, %v7143_v2  ;;  %v1902_v4 = vsel %vm1275_vm2, %v1788_v61, 0 }
 0x6bd   :  { %5997 = vmatprep.subr.bf16.mxu1 %v7143_v2  ;;  %v1494_v25 = vpack.c.bf16 %v1491_v9, %v1491_v9 }
 0x6bf   :  { %5966 = vmatmul.mubr.msk.bf16.vlgmr.msra.gmra.mxu0 %vm1247_vm3, %v1494_v25 }
 0x6c0   :  { %5998 = vmatpush3.bf16.msra.mxu1 %v6548_v12  ;;  %5976 = vmatpush3.bf16.msra.mxu0 %v6555_v19 }
 0x6c1   :  { %5999 = vmatprep.subr.bf16.mxu1 %v7143_v2  ;;  %5977 = vmatprep.subr.bf16.mxu0 %v7143_v2 }
 0x6c2   :  { %5991 = vmatprep.mubr.msk.bf16.mxu0 %vm7145_vm1, %v7143_v2 }
 0x6c4   :  { %6000 = vmatpush3.bf16.msra.mxu1 %v6549_v30  ;;  %5978 = vmatpush3.bf16.msra.mxu0 %v6556_v31 }
 0x6c5   :  { %6001 = vmatprep.subr.bf16.mxu1 %v7143_v2  ;;  %5979 = vmatprep.subr.bf16.mxu0 %v7143_v2 }
 0x6c8   :  { %6002 = vmatpush3.bf16.msra.mxu1 %v6550_v34  ;;  %5980 = vmatpush3.bf16.msra.mxu0 %v6557_v36 }
 0x6c9   :  { %6003 = vmatprep.subr.bf16.mxu1 %v7143_v2  ;;  %5981 = vmatprep.subr.bf16.mxu0 %v7143_v2 }
 0x6cc   :  { %6004 = vmatpush3.bf16.msra.mxu1 %v6551_v37  ;;  %5982 = vmatpush3.bf16.msra.mxu0 %v6558_v38 }
 0x6cd   :  { %6005 = vmatprep.subr.bf16.mxu1 %v7143_v2  ;;  %5983 = vmatprep.subr.bf16.mxu0 %v7143_v2 }
 0x6d0   :  { %6006 = vmatpush3.bf16.msra.mxu1 %v6552_v40  ;;  %5984 = vmatpush3.bf16.msra.mxu0 %v6559_v41 }
 0x6d1   :  { %6007 = vmatprep.subr.bf16.mxu1 %v7143_v2  ;;  %5985 = vmatprep.subr.bf16.mxu0 %v7143_v2 }
 0x6d4   :  { %6008 = vmatpush3.bf16.msra.mxu1 %v6553_v42  ;;  %5986 = vmatpush3.bf16.msra.mxu0 %v6560_v51 }
 0x6d5   :  { %6009 = vmatprep.subr.bf16.mxu1 %v7143_v2  ;;  %5987 = vmatprep.subr.bf16.mxu0 %v7143_v2 }
 0x6d8   :  { %6010 = vmatpush3.bf16.msra.mxu1 %v6554_v43  ;;  %5988 = vmatpush3.bf16.msra.mxu0 %v6561_v46 }
 0x6d9   :  { %6021 = vmatprep.subr.bf16.mxu1 %v7143_v2  ;;  %5989 = vmatprep.subr.bf16.mxu0 %v7143_v2 }
 0x6db   :  { %6012 = vmatmul.mubr.bf16.vlgmr.msra.gmra.mxu1 %v1365_v60 }
 0x6dc   :  { %6022 = vmatpush3.bf16.xpose.msra.mxu1 %v1787_v54  ;;  %6023 = vmatprep.mubr.msk.bf16.mxu1 %vm7145_vm1, %v7143_v2 }
 0x6dd   :  { %6033 = vmatprep.subr.bf16.mxu1 %v7143_v2  ;;  %5990 = vmatpush3.bf16.msra.mxu0 %v6562_v20 }
 0x6de   :  { %6015 = vmatprep.subr.bf16.mxu0 %v7143_v2 }
 0x6e3   :  { %6024 = vmatmul.mubr.bf16.vlgmr.msra.gmra.mxu1 %v1785_v45 }
 0x6e4   :  { %6034 = vmatpush3.bf16.msra.mxu1 %v1948_v49  ;;  %6035 = vmatprep.mubr.msk.bf16.mxu1 %vm7145_vm1, %v7143_v2 }
 0x6e5   :  { %6059 = vmatprep.subr.bf16.mxu1 %v7143_v2 }
 0x77b   :  { %v1582_v17 = vpop.f32.mrf.mxu1 }
 0x77d   :  { %v5973_v24 = vpop.f32.mrf.mxu1 }
 0x77f   :  { %v1536_v57 = vpop.f32.mrf.mxu0  ;;  %v1585_v60 = vpop.f32.mrf.mxu1 }
 0x780   :  { %v1588_v28 = vpack.c.bf16 %v1582_v17, %v1536_v57  ;;  %v377_v17 = vsub.s32 7, %v7332_v14 }
 0x781   :  { %v5967_v50 = vpop.f32.mrf.mxu0  ;;  %v5974_v56 = vpop.f32.mrf.mxu1 }
 0x782   :  { %5992 = vmatmul.mubr.bf16.vlgmr.msra.gmra.mxu0 %v1588_v28  ;;  %v378_v24 = vrot.slane %v7337_v16, %v377_v17 }
 0x783   :  { %6016 = vmatpush3.bf16.xpose.msra.mxu0 %v1786_v11  ;;  %v1539_v63 = vpop.f32.mrf.mxu0  ;;  %6017 = vmatprep.mubr.msk.bf16.mxu0 %vm7145_vm1, %v7143_v2  ;;  %v362_v11 = vrot.slane %v7337_v16, %v7390_v48 }
 0x784   :  { %6027 = vmatprep.subr.bf16.mxu0 %v7143_v2  ;;  %v1053_v60 = vadd.f32 %v7382_v44, %v378_v24 }
 0x785   :  { %v5968_v58 = vpop.f32.mrf.mxu0  ;;  %v967_v63 = vadd.f32 %v7348_v21, %v362_v11  ;;  %v971_v16 = vadd.f32 %v7367_v29, %v362_v11 }
 0x786   :  { %v2101_v56 = vpack.c.bf16 %v1053_v60, %v1053_v60  ;;  %v1057_v58 = vadd.f32 %v7396_v53, %v378_v24 }
 0x787   :  { %v2099_v61 = vpack.c.bf16 %v967_v63, %v967_v63 }
 0x788   :  { %v2102_v44 = vpack.c.bf16 %v1057_v58, %v1057_v58  ;;  %v6563_v58 = vld [vmem:[#allocation13 + $0xb8] sm:$0xff]  }
 0x78a   :  { %6018 = vmatmul.mubr.bf16.vlgmr.msra.gmra.mxu0 %v1784_v62  ;;  %v2103_v62 = vpack.c.bf16 %v7410_v1, %v7410_v1 }
 0x78b   :  { %6028 = vmatpush3.bf16.msra.mxu0 %v1902_v4  ;;  %6029 = vmatprep.mubr.msk.bf16.mxu0 %vm7145_vm1, %v7143_v2  ;;  %v2100_v4 = vpack.c.bf16 %v971_v16, %v971_v16  ;;  %v6566_v16 = vld [vmem:[#allocation13 + $0xa0] sm:$0xff]  }
 0x78c   :  { %6039 = vmatprep.subr.bf16.mxu0 %v7143_v2  ;;  %v2217_v21 = vsel %vm1275_vm2, %v2103_v62, 0  ;;  %v6567_v62 = vld [vmem:[#allocation13 + $0x98] sm:$0xff]  }
 0x79b   :  { %v7522_v33 = vpop.f32.mrf.mxu1 }
 0x79d   :  { %v6013_v5 = vpop.f32.mrf.mxu1 }
 0x79f   :  { %v7524_v8 = vpop.f32.mrf.mxu1 }
 0x7a1   :  { %v6014_v9 = vpop.f32.mrf.mxu1 }
 0x7a3   :  { %v1864_v12 = vpop.f32.mrf.mxu1 }
 0x7a4   :  { %v1871_v59 = vmul.f32 0.35355338, %v1864_v12 }
 0x7a5   :  { %v6025_v19 = vpop.f32.mrf.mxu1 }
 0x7a6   :  { %v1873_v18 = vadd.f32 %v7420_v32, %v1871_v59 }
 0x7a7   :  { %v1867_v25 = vpop.f32.mrf.mxu1 }
 0x7a8   :  { %v1877_v30 = vsel %vm1247_vm3, %v1873_v18, -inf }
 0x7a9   :  { %1878 = vmax.xlane.f32.xlu0 %v1877_v30  ;;  %v6026_v31 = vpop.f32.mrf.mxu1 }
 0x832   :  { %v1879_v34 = vpop.xlane.xlu0 %1878 }
 0x833   :  { %v1881_v36 = vsub.f32 %v1873_v18, %v1879_v34 }
 0x835   :  { %v1884_v37 = vmul.f32 1.442695, %v1881_v36 }
 0x837   :  { %6815 = vpow2.f32 %v1884_v37 }
 0x842   :  { %v7528_v38 = vpop.f32.mrf.mxu0 }
 0x844   :  { %v6816_v40 = vpop.eup %6815  ;;  %v5993_v41 = vpop.f32.mrf.mxu0 }
 0x845   :  { %v1889_v42 = vsel %vm1247_vm3, %v6816_v40, 0.0 }
 0x846   :  { %1890 = vadd.xlane.f32.xlu1 %v1889_v42  ;;  %v7531_v51 = vpop.f32.mrf.mxu0 }
 0x848   :  { %v5994_v43 = vpop.f32.mrf.mxu0 }
 0x84a   :  { %v1824_v46 = vpop.f32.mrf.mxu0 }
 0x84b   :  { %v1870_v35 = vmul.f32 0.35355338, %v1824_v46 }
 0x84c   :  { %v6019_v54 = vpop.f32.mrf.mxu0 }
 0x84d   :  { %v1872_v10 = vadd.f32 %v7422_v39, %v1870_v35 }
 0x84e   :  { %v1827_v26 = vpop.f32.mrf.mxu0 }
 0x84f   :  { %v1874_v45 = vsel %vm1247_vm3, %v1872_v10, -inf }
 0x850   :  { %1875 = vmax.xlane.f32.xlu0 %v1874_v45  ;;  %v6020_v49 = vpop.f32.mrf.mxu0 }
 0x8cf   :  { %v1891_v20 = vpop.xlane.xlu1 %1890 }
 0x8d0   :  { %6817 = vrcp.f32 %v1891_v20 }
 0x8d9   :  { %v1876_v53 = vpop.xlane.xlu0 %1875 }
 0x8da   :  { %v1880_v5 = vsub.f32 %v1872_v10, %v1876_v53  ;;  %v6570_v53 = vld [vmem:[#allocation13 + $0x80] sm:$0xff]  }
 0x8dc   :  { %v1882_v9 = vmul.f32 1.442695, %v1880_v5 }
 0x8dd   :  { %v6818_v57 = vpop.eup %6817 }
 0x8de   :  { %v1895_v28 = vmul.f32 %v6818_v57, %v6816_v40  ;;  %6819 = vpow2.f32 %v1882_v9 }
 0x8e0   :  { %v1897_v50 = vpack.c.bf16 %v1895_v28, %v1895_v28 }
 0x8e2   :  { %6036 = vmatmul.mubr.msk.bf16.vlgmr.msra.gmra.mxu1 %vm1247_vm3, %v1897_v50 }
 0x8e3   :  { %6060 = vmatpush3.bf16.xpose.msra.mxu1 %v2101_v56  ;;  %6061 = vmatprep.mubr.msk.bf16.mxu1 %vm7145_vm1, %v7143_v2 }
 0x8e4   :  { %6065 = vmatprep.subr.bf16.mxu1 %v7143_v2 }
 0x8ea   :  { %6062 = vmatmul.mubr.bf16.vlgmr.msra.gmra.mxu1 %v2099_v61  ;;  %v6564_v61 = vld [vmem:[#allocation13 + $0xb0] sm:$0xff]  }
 0x8eb   :  { %6066 = vmatpush3.bf16.xpose.msra.mxu1 %v2102_v44  ;;  %6067 = vmatprep.mubr.msk.bf16.mxu1 %vm7145_vm1, %v7143_v2  ;;  %v6820_v36 = vpop.eup %6819  ;;  %v6565_v44 = vld [vmem:[#allocation13 + $0xa8] sm:$0xff]  }
 0x8ec   :  { %6071 = vmatprep.subr.bf16.mxu1 %v7143_v2  ;;  %v1886_v42 = vsel %vm1247_vm3, %v6820_v36, 0.0 }
 0x8f2   :  { %6068 = vmatmul.mubr.bf16.vlgmr.msra.gmra.mxu1 %v2100_v4  ;;  %v6568_v4 = vld [vmem:[#allocation13 + $0x90] sm:$0xff]  }
 0x8f3   :  { %6072 = vmatpush3.bf16.msra.mxu1 %v2217_v21  ;;  %6073 = vmatprep.mubr.msk.bf16.mxu1 %vm7145_vm1, %v7143_v2  ;;  %v6569_v21 = vld [vmem:[#allocation13 + $0x88] sm:$0xff]  }
 0x8f4   :  { %6077 = vmatprep.subr.bf16.mxu1 %v7143_v2 }
 0x9a2   :  { %v7558_v12 = vpop.f32.mrf.mxu1 }
 0x9a4   :  { %v6037_v29 = vpop.f32.mrf.mxu1 }
 0x9a5   :  { %v1143_v29 = vadd.f32 %v7418_v23, %v7402_v55  ;;  %v6571_v23 = vld [vmem:[#allocation13 + $0xf8] sm:$0xff]  }
 0x9a6   :  { %v1987_v59 = vpop.f32.mrf.mxu1 }
 0x9a8   :  { %v6038_v19 = vpop.f32.mrf.mxu1 }
 0x9a9   :  { %v2104_v19 = vpack.c.bf16 %v1143_v29, %v1143_v29 }
 0x9aa   :  { %v2139_v1 = vpop.f32.mrf.mxu1 }
 0x9ab   :  { %v2185_v18 = vmul.f32 0.35355338, %v2139_v1 }
 0x9ac   :  { %v6063_v25 = vpop.f32.mrf.mxu1 }
 0x9ad   :  { %v2187_v30 = vadd.f32 %v7422_v39, %v2185_v18  ;;  %v2263_v25 = vsel %vm1275_vm2, %v2104_v19, 0  ;;  %v6579_v19 = vld [vmem:[#allocation14 + $0x38] sm:$0xff]  }
 0x9ae   :  { %v2142_v31 = vpop.f32.mrf.mxu1 }
 0x9af   :  { %v2189_v34 = vsel %vm1247_vm3, %v2187_v30, -inf }
 0x9b0   :  { %2190 = vmax.xlane.f32.xlu1 %v2189_v34  ;;  %v6064_v37 = vpop.f32.mrf.mxu1 }
 0x9b2   :  { %v2179_v40 = vpop.f32.mrf.mxu1 }
 0x9b3   :  { %v2186_v41 = vmul.f32 0.35355338, %v2179_v40 }
 0x9b4   :  { %v6069_v43 = vpop.f32.mrf.mxu1  ;;  %1887 = vadd.xlane.f32.xlu1 %v1886_v42 }
 0x9b5   :  { %v2188_v46 = vadd.f32 %v7420_v32, %v2186_v41  ;;  %v6572_v41 = vld [vmem:[#allocation13 + $0xf0] sm:$0xff]   ;;  %v6573_v43 = vld [vmem:[#allocation13 + $0xe8] sm:$0xff]  }
 0x9b6   :  { %v2182_v35 = vpop.f32.mrf.mxu1 }
 0x9b7   :  { %v2192_v54 = vsel %vm1247_vm3, %v2188_v46, -inf  ;;  %v6576_v35 = vld [vmem:[#allocation13 + $0xd0] sm:$0xff]  }
 0x9b8   :  { %2193 = vmax.xlane.f32.xlu0 %v2192_v54  ;;  %v6070_v10 = vpop.f32.mrf.mxu1  ;;  %v6577_v54 = vld [vmem:[#allocation13 + $0xc8] sm:$0xff]  }
 0x9b9   :  { %v6578_v10 = vld [vmem:[#allocation13 + $0xc0] sm:$0xff]  }
 0xa39   :  { %v2191_v39 = vpop.xlane.xlu1 %2190 }
 0xa3a   :  { %v2195_v26 = vsub.f32 %v2187_v30, %v2191_v39 }
 0xa3c   :  { %v2197_v45 = vmul.f32 1.442695, %v2195_v26 }
 0xa3d   :  { %v1888_v49 = vpop.xlane.xlu1 %1887 }
 0xa3e   :  { %6821 = vpow2.f32 %v2197_v45 }
 0xa3f   :  { %6823 = vrcp.f32 %v1888_v49 }
 0xa41   :  { %v2194_v20 = vpop.xlane.xlu0 %2193 }
 0xa42   :  { %v2196_v24 = vsub.f32 %v2188_v46, %v2194_v20  ;;  %v6574_v46 = vld [vmem:[#allocation13 + $0xe0] sm:$0xff]  }
 0xa44   :  { %v2199_v57 = vmul.f32 1.442695, %v2196_v24 }
 0xa46   :  { %6825 = vpow2.f32 %v2199_v57 }
 0xa4b   :  { %v6822_v60 = vpop.eup %6821 }
 0xa4c   :  { %v6824_v28 = vpop.eup %6823  ;;  %v2201_v11 = vsel %vm1247_vm3, %v6822_v60, 0.0 }
 0xa4d   :  { %2202 = vadd.xlane.f32.xlu0 %v2201_v11  ;;  %v1893_v32 = vmul.f32 %v6824_v28, %v6820_v36  ;;  %v1778_v11 = vadd.f32 %v7522_v33, %v7528_v38 }
 0xa4f   :  { %v1896_v50 = vpack.c.bf16 %v1893_v32, %v1893_v32 }
 0xa51   :  { %6030 = vmatmul.mubr.msk.bf16.vlgmr.msra.gmra.mxu0 %vm1247_vm3, %v1896_v50 }
 0xa52   :  { %6055 = vmatprep.mubr.msk.bf16.mxu0 %vm7145_vm1, %v7143_v2  ;;  %6040 = vmatpush3.bf16.msra.mxu0 %v6563_v58 }
 0xa53   :  { %v6826_v56 = vpop.eup %6825  ;;  %6041 = vmatprep.subr.bf16.mxu0 %v7143_v2 }
 0xa54   :  { %v2204_v63 = vsel %vm1247_vm3, %v6826_v56, 0.0 }
 0xa55   :  { %2205 = vadd.xlane.f32.xlu1 %v2204_v63  ;;  %v1781_v63 = vadd.f32 %v7524_v8, %v7531_v51 }
 0xa56   :  { %6042 = vmatpush3.bf16.msra.mxu0 %v6564_v61 }
 0xa57   :  { %6043 = vmatprep.subr.bf16.mxu0 %v7143_v2 }
 0xa5a   :  { %6044 = vmatpush3.bf16.msra.mxu0 %v6565_v44 }
 0xa5b   :  { %6045 = vmatprep.subr.bf16.mxu0 %v7143_v2 }
 0xa5e   :  { %6046 = vmatpush3.bf16.msra.mxu0 %v6566_v16 }
 0xa5f   :  { %6047 = vmatprep.subr.bf16.mxu0 %v7143_v2 }
 0xa62   :  { %6048 = vmatpush3.bf16.msra.mxu0 %v6567_v62  ;;  %v5548_v62 = vld [vmem:[%s8015_s7] ss:$0 sm:$0xff] }
 0xa63   :  { %6049 = vmatprep.subr.bf16.mxu0 %v7143_v2 }
 0xa66   :  { %6050 = vmatpush3.bf16.msra.mxu0 %v6568_v4 }
 0xa67   :  { %6051 = vmatprep.subr.bf16.mxu0 %v7143_v2 }
 0xa6a   :  { %6052 = vmatpush3.bf16.msra.mxu0 %v6569_v21 }
 0xa6b   :  { %6053 = vmatprep.subr.bf16.mxu0 %v7143_v2 }
 0xa6e   :  { %6054 = vmatpush3.bf16.msra.mxu0 %v6570_v53 }
 0xa6f   :  { %6083 = vmatprep.subr.bf16.mxu0 %v7143_v2 }
 0xad6   :  { %v2203_v5 = vpop.xlane.xlu0 %2202 }
 0xad7   :  { %6827 = vrcp.f32 %v2203_v5 }
 0xade   :  { %v2206_v9 = vpop.xlane.xlu1 %2205 }
 0xadf   :  { %6829 = vrcp.f32 %v2206_v9 }
 0xae4   :  { %v6828_v59 = vpop.eup %6827 }
 0xae5   :  { %v2208_v1 = vmul.f32 %v6828_v59, %v6822_v60 }
 0xae7   :  { %v2211_v18 = vpack.c.bf16 %v2208_v1, %v2208_v1 }
 0xae9   :  { %6074 = vmatmul.mubr.msk.bf16.vlgmr.msra.gmra.mxu1 %vm1247_vm3, %v2211_v18 }
 0xaea   :  { %6078 = vmatpush3.bf16.msra.mxu1 %v2263_v25  ;;  %6079 = vmatprep.mubr.msk.bf16.mxu1 %vm7145_vm1, %v7143_v2 }
 0xaeb   :  { %6103 = vmatprep.subr.bf16.mxu1 %v7143_v2 }
 0xaec   :  { %v6830_v30 = vpop.eup %6829 }
 0xaed   :  { %v2210_v31 = vmul.f32 %v6830_v30, %v6826_v56 }
 0xaef   :  { %v2212_v34 = vpack.c.bf16 %v2210_v31, %v2210_v31 }
 0xaf1   :  { %6080 = vmatmul.mubr.msk.bf16.vlgmr.msra.gmra.mxu1 %vm1247_vm3, %v2212_v34 }
 0xaf2   :  { %6119 = vmatprep.mubr.msk.bf16.mxu1 %vm7145_vm1, %v7143_v2  ;;  %6104 = vmatpush3.bf16.msra.mxu1 %v6579_v19 }
 0xaf3   :  { %6105 = vmatprep.subr.bf16.mxu1 %v7143_v2 }
 0xb11   :  { %v1938_v55 = vpop.f32.mrf.mxu0 }
 0xb12   :  { %v1990_v36 = vpack.c.bf16 %v7558_v12, %v1938_v55  ;;  %v6575_v12 = vld [vmem:[#allocation13 + $0xd8] sm:$0xff]  }
 0xb13   :  { %v6031_v37 = vpop.f32.mrf.mxu0 }
 0xb14   :  { %6056 = vmatmul.mubr.bf16.vlgmr.msra.gmra.mxu0 %v1990_v36  ;;  %v6580_v36 = vld [vmem:[#allocation14 + $0x30] sm:$0xff]   ;;  %v6581_v37 = vld [vmem:[#allocation14 + $0x28] sm:$0xff]  }
 0xb15   :  { %v1941_v40 = vpop.f32.mrf.mxu0  ;;  %6084 = vmatpush3.bf16.msra.mxu0 %v6571_v23  ;;  %6099 = vmatprep.mubr.msk.bf16.mxu0 %vm7145_vm1, %v7143_v2 }
 0xb16   :  { %6085 = vmatprep.subr.bf16.mxu0 %v7143_v2  ;;  %6106 = vmatpush3.bf16.msra.mxu1 %v6580_v36  ;;  %v6582_v40 = vld [vmem:[#allocation14 + $0x20] sm:$0xff]  }
 0xb17   :  { %v6032_v42 = vpop.f32.mrf.mxu0  ;;  %6107 = vmatprep.subr.bf16.mxu1 %v7143_v2 }
 0xb18   :  { %v6584_v42 = vld [vmem:[#allocation14 + $0x10] sm:$0xff]  }
 0xb19   :  { %6086 = vmatpush3.bf16.msra.mxu0 %v6572_v41  ;;  %v6583_v41 = vld [vmem:[#allocation14 + $0x18] sm:$0xff]  }
 0xb1a   :  { %6087 = vmatprep.subr.bf16.mxu0 %v7143_v2  ;;  %6108 = vmatpush3.bf16.msra.mxu1 %v6581_v37 }
 0xb1b   :  { %6109 = vmatprep.subr.bf16.mxu1 %v7143_v2 }
 0xb1d   :  { %6088 = vmatpush3.bf16.msra.mxu0 %v6573_v43  ;;  %v6585_v43 = vld [vmem:[#allocation14 + $0x8] sm:$0xff]  }
 0xb1e   :  { %6089 = vmatprep.subr.bf16.mxu0 %v7143_v2  ;;  %6110 = vmatpush3.bf16.msra.mxu1 %v6582_v40 }
 0xb1f   :  { %6111 = vmatprep.subr.bf16.mxu1 %v7143_v2 }
 0xb21   :  { %6090 = vmatpush3.bf16.msra.mxu0 %v6574_v46  ;;  %v6586_v46 = vld [vmem:[#allocation14] sm:$0xff]  }
 0xb22   :  { %6091 = vmatprep.subr.bf16.mxu0 %v7143_v2  ;;  %6112 = vmatpush3.bf16.msra.mxu1 %v6583_v41 }
 0xb23   :  { %6113 = vmatprep.subr.bf16.mxu1 %v7143_v2 }
 0xb25   :  { %6092 = vmatpush3.bf16.msra.mxu0 %v6575_v12 }
 0xb26   :  { %6093 = vmatprep.subr.bf16.mxu0 %v7143_v2  ;;  %6114 = vmatpush3.bf16.msra.mxu1 %v6584_v42 }
 0xb27   :  { %6115 = vmatprep.subr.bf16.mxu1 %v7143_v2 }
 0xb29   :  { %6094 = vmatpush3.bf16.msra.mxu0 %v6576_v35 }
 0xb2a   :  { %6095 = vmatprep.subr.bf16.mxu0 %v7143_v2  ;;  %6116 = vmatpush3.bf16.msra.mxu1 %v6585_v43 }
 0xb2b   :  { %6117 = vmatprep.subr.bf16.mxu1 %v7143_v2 }
 0xb2d   :  { %6096 = vmatpush3.bf16.msra.mxu0 %v6577_v54 }
 0xb2e   :  { %6097 = vmatprep.subr.bf16.mxu0 %v7143_v2  ;;  %6118 = vmatpush3.bf16.msra.mxu1 %v6586_v46  ;;  %v5560_v46 = vld [vmem:[%s8021_s13] ss:$0 sm:$0xff] }
 0xb31   :  { %6098 = vmatpush3.bf16.msra.mxu0 %v6578_v10 }
 0xb32   :  { %6123 = vmatprep.subr.bf16.mxu0 %v7143_v2 }
 0xba9   :  { %v2253_v39 = vpop.f32.mrf.mxu1 }
 0xbab   :  { %v6075_v26 = vpop.f32.mrf.mxu1 }
 0xbad   :  { %v2256_v45 = vpop.f32.mrf.mxu1 }
 0xbaf   :  { %v6076_v49 = vpop.f32.mrf.mxu1 }
 0xbb1   :  { %v2299_v20 = vpop.f32.mrf.mxu1 }
 0xbb2   :  { %v2305_v24 = vpack.c.bf16 %v2299_v20, %v2253_v39  ;;  %v5549_v20 = vld [vmem:[%s8016_s8] ss:$0 sm:$0xff] }
 0xbb3   :  { %v6081_v57 = vpop.f32.mrf.mxu1 }
 0xbb4   :  { %6100 = vmatmul.mubr.bf16.vlgmr.msra.gmra.mxu0 %v2305_v24 }
 0xbb5   :  { %v2302_v60 = vpop.f32.mrf.mxu1  ;;  %6139 = vmatprep.mubr.msk.bf16.mxu0 %vm7145_vm1, %v7143_v2 }
 0xbb7   :  { %v6082_v28 = vpop.f32.mrf.mxu1 }
 0xbb8   :  { %v5550_v28 = vld [vmem:[%s8017_s9] ss:$0 sm:$0xff] }
 0xbd4   :  { %v2090_v32 = vpop.f32.mrf.mxu0 }
 0xbd5   :  { %v2097_v50 = vadd.f32 %v2090_v32, %v1778_v11 }
 0xbd6   :  { %v6057_v56 = vpop.f32.mrf.mxu0 }
 0xbd8   :  { %v2093_v58 = vpop.f32.mrf.mxu0 }
 0xbd9   :  { %v2098_v61 = vadd.f32 %v2093_v58, %v1781_v63  ;;  %v6587_v63 = vld [vmem:[#allocation16 + $0x38] sm:$0xff]   ;;  %v6588_v58 = vld [vmem:[#allocation16 + $0x30] sm:$0xff]  }
 0xbda   :  { %v6058_v44 = vpop.f32.mrf.mxu0  ;;  %6124 = vmatpush3.bf16.msra.mxu0 %v6587_v63 }
 0xbdb   :  { %6125 = vmatprep.subr.bf16.mxu0 %v7143_v2  ;;  %v6590_v44 = vld [vmem:[#allocation16 + $0x20] sm:$0xff]  }
 0xbde   :  { %6126 = vmatpush3.bf16.msra.mxu0 %v6588_v58 }
 0xbdf   :  { %6127 = vmatprep.subr.bf16.mxu0 %v7143_v2 }
 0xc74   :  { %v2405_v16 = vpop.f32.mrf.mxu0 }
 0xc75   :  { %v2412_v4 = vadd.f32 %v2405_v16, %v2097_v50  ;;  %v6591_v16 = vld [vmem:[#allocation16 + $0x18] sm:$0xff]  }
 0xc76   :  { %v6101_v21 = vpop.f32.mrf.mxu0 }
 0xc77   :  { %v2421_v53 = vadd.f32 %v5548_v62, %v2412_v4  ;;  %v6593_v4 = vld [vmem:[#allocation16 + $0x8] sm:$0xff]   ;;  %v6594_v21 = vld [vmem:[#allocation16] sm:$0xff]  }
 0xc78   :  { %v2408_v5 = vpop.f32.mrf.mxu0 }
 0xc79   :  { %v2413_v9 = vadd.f32 %v2408_v5, %v2098_v61  ;;  %v2423_v33 = vadd.f32 %v2421_v53, %v7307_v6  ;;  %v6589_v61 = vld [vmem:[#allocation16 + $0x28] sm:$0xff]   ;;  %v5551_v53 = vld [vmem:[%s8019_s11] ss:$0 sm:$0xff] }
 0xc7a   :  { %v6102_v38 = vpop.f32.mrf.mxu0  ;;  %6128 = vmatpush3.bf16.msra.mxu0 %v6589_v61 }
 0xc7b   :  { %v2422_v29 = vadd.f32 %v5548_v62, %v2413_v9  ;;  %v2427_v59 = vmul.f32 %v7289_v3, %v2423_v33  ;;  %6129 = vmatprep.subr.bf16.mxu0 %v7143_v2  ;;  %v6592_v62 = vld [vmem:[#allocation16 + $0x10] sm:$0xff]  }
 0xc7d   :  { %2429 = vadd.xlane.f32.xlu0 %v2427_v59  ;;  %v2424_v8 = vadd.f32 %v2422_v29, %v7309_v7 }
 0xc7e   :  { %6130 = vmatpush3.bf16.msra.mxu0 %v6590_v44 }
 0xc7f   :  { %v2428_v51 = vmul.f32 %v7289_v3, %v2424_v8  ;;  %6131 = vmatprep.subr.bf16.mxu0 %v7143_v2 }
 0xc81   :  { %2431 = vadd.xlane.f32.xlu1 %v2428_v51 }
 0xc82   :  { %6132 = vmatpush3.bf16.msra.mxu0 %v6591_v16 }
 0xc83   :  { %6133 = vmatprep.subr.bf16.mxu0 %v7143_v2 }
 0xc86   :  { %6134 = vmatpush3.bf16.msra.mxu0 %v6592_v62 }
 0xc87   :  { %6135 = vmatprep.subr.bf16.mxu0 %v7143_v2 }
 0xc8a   :  { %6136 = vmatpush3.bf16.msra.mxu0 %v6593_v4 }
 0xc8b   :  { %6137 = vmatprep.subr.bf16.mxu0 %v7143_v2 }
 0xc8e   :  { %6138 = vmatpush3.bf16.msra.mxu0 %v6594_v21  ;;  %v6603_v21 = vld [vmem:[#allocation10 + $0x544] ss:$48 sps:$4 sm:$0xff]  }
 0xd06   :  { %v2430_v1 = vpop.xlane.xlu0 %2429 }
 0xd07   :  { %v2433_v18 = vmul.f32 0.03125, %v2430_v1 }
 0xd09   :  { %v2435_v25 = vsub.f32 %v2423_v33, %v2433_v18 }
 0xd0a   :  { %v2432_v30 = vpop.xlane.xlu1 %2431 }
 0xd0b   :  { %v2434_v31 = vmul.f32 0.03125, %v2432_v30  ;;  %v2437_v6 = vmul.f32 %v7289_v3, %v2435_v25 }
 0xd0d   :  { %v2436_v34 = vsub.f32 %v2424_v8, %v2434_v31  ;;  %v2439_v55 = vmul.f32 %v2437_v6, %v2437_v6 }
 0xd0f   :  { %2441 = vadd.xlane.f32.xlu0 %v2439_v55  ;;  %v2438_v23 = vmul.f32 %v7289_v3, %v2436_v34 }
 0xd11   :  { %v2440_v7 = vmul.f32 %v2438_v23, %v2438_v23 }
 0xd13   :  { %2443 = vadd.xlane.f32.xlu1 %v2440_v7 }
 0xd98   :  { %v2442_v12 = vpop.xlane.xlu0 %2441 }
 0xd99   :  { %v2445_v35 = vmul.f32 0.03125, %v2442_v12 }
 0xd9b   :  { %v2447_v54 = vadd.f32 1e-12, %v2445_v35 }
 0xd9c   :  { %v2444_v10 = vpop.xlane.xlu1 %2443 }
 0xd9d   :  { %6831 = vrsqrt.f32 %v2447_v54  ;;  %v2446_v39 = vmul.f32 0.03125, %v2444_v10 }
 0xd9f   :  { %v2448_v26 = vadd.f32 1e-12, %v2446_v39 }
 0xda1   :  { %6833 = vrsqrt.f32 %v2448_v26 }
 0xdaa   :  { %v6832_v45 = vpop.eup %6831 }
 0xdab   :  { %v2451_v49 = vmul.f32 %v6832_v45, %v2437_v6 }
 0xdad   :  { %v2459_v60 = vmul.f32 %v5549_v20, %v2451_v49 }
 0xdae   :  { %v6834_v24 = vpop.eup %6833 }
 0xdaf   :  { %v2452_v57 = vmul.f32 %v6834_v24, %v2438_v23  ;;  %v2467_v32 = vadd.f32 %v5550_v28, %v2459_v60  ;;  %v6597_v60 = vld [vmem:[#allocation10 + $0x5a4] ss:$48 sps:$4 sm:$0xff]  }
 0xdb0   :  { %3402 = vmatprep.subr.bf16.mxu1 %v6597_v60 }
 0xdb1   :  { %v2460_v11 = vmul.f32 %v5549_v20, %v2452_v57  ;;  %v6595_v57 = vld [vmem:[#allocation10 + $0x5a0] ss:$48 sps:$4 sm:$0xff]  }
 0xdb3   :  { %v7627_v50 = vadd.f32 %v5550_v28, %v2460_v11  ;;  %v6598_v28 = vld [vmem:[#allocation10 + $0x5a8] ss:$48 sps:$4 sm:$0xff]   ;;  %v6600_v11 = vld [vmem:[#allocation10 + $0x5ac] ss:$48 sps:$4 sm:$0xff]  }
 0xdb4   :  { %3445 = vmatprep.subr.bf16.mxu0 %v6600_v11 }
 0xdb5   :  { %v2469_v56 = vpack.c.bf16 %v7627_v50, %v2467_v32 }
 0xdb7   :  { %6120 = vmatmul.mubr.bf16.vlgmr.msra.gmra.mxu1 %v2469_v56 }
 0xdb8   :  { %3434 = vmatprep.mubr.bf16.mxu1 %v7144_v52  ;;  %3403 = vmatpush1.bf16.msra.mxu1 %v6595_v57  ;;  %v5569_v57 = vld [vmem:[%s8022_s14] ss:$0 sm:$0xff] }
 0xdb9   :  { %3404 = vmatprep.subr.bf16.mxu1 %v6603_v21  ;;  %v6652_v21 = vld [vmem:[#allocation10 + $0x558] ss:$48 sps:$4 sm:$0xff]  }
 0xe77   :  { %v2575_v5 = vpop.f32.mrf.mxu1 }
 0xe78   :  { %v2576_v9 = vadd.f32 %v5551_v53, %v2575_v5  ;;  %v6601_v5 = vld [vmem:[#allocation10 + $0x540] ss:$48 sps:$4 sm:$0xff]  }
 0xe79   :  { %v6121_v33 = vpop.f32.mrf.mxu1  ;;  %3405 = vmatpush1.bf16.msra.mxu1 %v6601_v5  ;;  %v6660_v5 = vld [vmem:[#allocation10 + $0x4fc] ss:$48 sps:$4 sm:$0xff]  }
 0xe7a   :  { %v2582_v38 = vmul.f32 %v2576_v9, %v2576_v9  ;;  %v6609_v33 = vld [vmem:[#allocation10 + $0x4e4] ss:$48 sps:$4 sm:$0xff]  }
 0xe7b   :  { %v2578_v29 = vpop.f32.mrf.mxu1  ;;  %3406 = vmatprep.subr.bf16.mxu1 %v6609_v33  ;;  %v6658_v33 = vld [vmem:[#allocation10 + $0x4f8] ss:$48 sps:$4 sm:$0xff]  }
 0xe7c   :  { %v2584_v59 = vmul.f32 %v2582_v38, %v2576_v9  ;;  %v2579_v8 = vadd.f32 %v5551_v53, %v2578_v29  ;;  %v6606_v53 = vld [vmem:[#allocation10 + $0x54c] ss:$48 sps:$4 sm:$0xff]   ;;  %v6607_v29 = vld [vmem:[#allocation10 + $0x4e0] ss:$48 sps:$4 sm:$0xff]  }
 0xe7d   :  { %v6122_v51 = vpop.f32.mrf.mxu1  ;;  %v6612_v38 = vld [vmem:[#allocation10 + $0x4ec] ss:$48 sps:$4 sm:$0xff]   ;;  %3407 = vmatpush1.bf16.msra.mxu1 %v6607_v29 }
 0xe7e   :  { %v2586_v19 = vmul.f32 0.044715, %v2584_v59  ;;  %v2583_v1 = vmul.f32 %v2579_v8, %v2579_v8  ;;  %v6610_v59 = vld [vmem:[#allocation10 + $0x4e8] ss:$48 sps:$4 sm:$0xff]   ;;  %v6618_v51 = vld [vmem:[#allocation10 + $0x48c] ss:$48 sps:$4 sm:$0xff]  }
 0xe7f   :  { %v6666_v29 = vld [vmem:[#allocation10 + $0x49c] ss:$48 sps:$4 sm:$0xff]  }
 0xe80   :  { %v2588_v18 = vadd.f32 %v2586_v19, %v2576_v9  ;;  %v2585_v25 = vmul.f32 %v2583_v1, %v2579_v8  ;;  %v6613_v19 = vld [vmem:[#allocation10 + $0x480] ss:$48 sps:$4 sm:$0xff]   ;;  %v6616_v1 = vld [vmem:[#allocation10 + $0x488] ss:$48 sps:$4 sm:$0xff]  }
 0xe82   :  { %v2590_v30 = vmul.f32 0.7978846, %v2588_v18  ;;  %v2587_v31 = vmul.f32 0.044715, %v2585_v25  ;;  %v6621_v18 = vld [vmem:[#allocation10 + $0x424] ss:$48 sps:$4 sm:$0xff]  }
 0xe83   :  { %v6624_v25 = vld [vmem:[#allocation10 + $0x42c] ss:$48 sps:$4 sm:$0xff]  }
 0xe84   :  { %6835 = vtanh.f32 %v2590_v30  ;;  %v2589_v6 = vadd.f32 %v2587_v31, %v2579_v8  ;;  %v6619_v30 = vld [vmem:[#allocation10 + $0x420] ss:$48 sps:$4 sm:$0xff]   ;;  %v6622_v31 = vld [vmem:[#allocation10 + $0x428] ss:$48 sps:$4 sm:$0xff]  }
 0xe86   :  { %v2591_v34 = vmul.f32 0.7978846, %v2589_v6  ;;  %v6627_v6 = vld [vmem:[#allocation10 + $0x3c4] ss:$48 sps:$4 sm:$0xff]  }
 0xe88   :  { %6837 = vtanh.f32 %v2591_v34  ;;  %v6630_v34 = vld [vmem:[#allocation10 + $0x3cc] ss:$48 sps:$4 sm:$0xff]  }
 0xe91   :  { %v6836_v55 = vpop.eup %6835 }
 0xe92   :  { %v2594_v23 = vadd.f32 1.0, %v6836_v55  ;;  %v6625_v55 = vld [vmem:[#allocation10 + $0x3c0] ss:$48 sps:$4 sm:$0xff]  }
 0xe94   :  { %v2596_v36 = vmul.f32 0.5, %v2594_v23  ;;  %v6628_v23 = vld [vmem:[#allocation10 + $0x3c8] ss:$48 sps:$4 sm:$0xff]  }
 0xe95   :  { %v6838_v7 = vpop.eup %6837 }
 0xe96   :  { %v2595_v37 = vadd.f32 1.0, %v6838_v7  ;;  %v2598_v41 = vmul.f32 %v2596_v36, %v2576_v9  ;;  %v6604_v9 = vld [vmem:[#allocation10 + $0x548] ss:$48 sps:$4 sm:$0xff]   ;;  %v6633_v7 = vld [vmem:[#allocation10 + $0x364] ss:$48 sps:$4 sm:$0xff]  }
 0xe97   :  { %v6636_v36 = vld [vmem:[#allocation10 + $0x36c] ss:$48 sps:$4 sm:$0xff]  }
 0xe98   :  { %v2597_v40 = vmul.f32 0.5, %v2595_v37  ;;  %v6631_v37 = vld [vmem:[#allocation10 + $0x360] ss:$48 sps:$4 sm:$0xff]  }
 0xe9a   :  { %v2599_v42 = vmul.f32 %v2597_v40, %v2579_v8  ;;  %v6615_v8 = vld [vmem:[#allocation10 + $0x484] ss:$48 sps:$4 sm:$0xff]   ;;  %v6634_v40 = vld [vmem:[#allocation10 + $0x368] ss:$48 sps:$4 sm:$0xff]  }
 0xe9b   :  { %3408 = vmatprep.subr.bf16.mxu1 %v6615_v8  ;;  %v6664_v8 = vld [vmem:[#allocation10 + $0x498] ss:$48 sps:$4 sm:$0xff]  }
 0xe9c   :  { %v2600_v43 = vpack.c.bf16 %v2599_v42, %v2598_v41  ;;  %3409 = vmatpush1.bf16.msra.mxu1 %v6613_v19  ;;  %v6637_v41 = vld [vmem:[#allocation10 + $0x300] ss:$48 sps:$4 sm:$0xff]   ;;  %v6639_v42 = vld [vmem:[#allocation10 + $0x304] ss:$48 sps:$4 sm:$0xff]   ;;  %v6672_v19 = vld [vmem:[#allocation10 + $0x43c] ss:$48 sps:$4 sm:$0xff]  }
 0xe9d   :  { %3410 = vmatprep.subr.bf16.mxu1 %v6621_v18  ;;  %v6670_v18 = vld [vmem:[#allocation10 + $0x438] ss:$48 sps:$4 sm:$0xff]  }
 0xe9e   :  { %6140 = vmatmul.mubr.bf16.vlgmr.msra.gmra.mxu0 %v2600_v43  ;;  %v6640_v43 = vld [vmem:[#allocation10 + $0x308] ss:$48 sps:$4 sm:$0xff]  }
 0xe9f   :  { %3477 = vmatprep.mubr.bf16.mxu0 %v7144_v52  ;;  %3446 = vmatpush1.bf16.msra.mxu0 %v6598_v28 }
 0xea0   :  { %3447 = vmatprep.subr.bf16.mxu0 %v6606_v53  ;;  %3411 = vmatpush1.bf16.msra.mxu1 %v6619_v30  ;;  %v6657_v53 = vld [vmem:[#allocation10 + $0x4f4] ss:$48 sps:$4 sm:$0xff]   ;;  %v6678_v30 = vld [vmem:[#allocation10 + $0x3dc] ss:$48 sps:$4 sm:$0xff]  }
 0xea1   :  { %3412 = vmatprep.subr.bf16.mxu1 %v6627_v6  ;;  %v6676_v6 = vld [vmem:[#allocation10 + $0x3d8] ss:$48 sps:$4 sm:$0xff]  }
 0xea3   :  { %3448 = vmatpush1.bf16.msra.mxu0 %v6604_v9  ;;  %v6655_v9 = vld [vmem:[#allocation10 + $0x4f0] ss:$48 sps:$4 sm:$0xff]  }
 0xea4   :  { %3449 = vmatprep.subr.bf16.mxu0 %v6612_v38  ;;  %3413 = vmatpush1.bf16.msra.mxu1 %v6625_v55  ;;  %v6663_v38 = vld [vmem:[#allocation10 + $0x494] ss:$48 sps:$4 sm:$0xff]   ;;  %v6684_v55 = vld [vmem:[#allocation10 + $0x37c] ss:$48 sps:$4 sm:$0xff]  }
 0xea5   :  { %3414 = vmatprep.subr.bf16.mxu1 %v6633_v7  ;;  %v6682_v7 = vld [vmem:[#allocation10 + $0x378] ss:$48 sps:$4 sm:$0xff]  }
 0xea7   :  { %3450 = vmatpush1.bf16.msra.mxu0 %v6610_v59  ;;  %v6661_v59 = vld [vmem:[#allocation10 + $0x490] ss:$48 sps:$4 sm:$0xff]  }
 0xea8   :  { %3451 = vmatprep.subr.bf16.mxu0 %v6618_v51  ;;  %3415 = vmatpush1.bf16.msra.mxu1 %v6631_v37  ;;  %v6669_v51 = vld [vmem:[#allocation10 + $0x434] ss:$48 sps:$4 sm:$0xff]   ;;  %v6690_v37 = vld [vmem:[#allocation10 + $0x31c] ss:$48 sps:$4 sm:$0xff]  }
 0xea9   :  { %3416 = vmatprep.subr.bf16.mxu1 %v6639_v42  ;;  %v6693_v42 = vld [vmem:[#allocation10 + $0x5c4] ss:$48 sps:$4 sm:$0xff]  }
 0xeab   :  { %3452 = vmatpush1.bf16.msra.mxu0 %v6616_v1  ;;  %v6667_v1 = vld [vmem:[#allocation10 + $0x430] ss:$48 sps:$4 sm:$0xff]  }
 0xeac   :  { %3453 = vmatprep.subr.bf16.mxu0 %v6624_v25  ;;  %3417 = vmatpush1.bf16.msra.mxu1 %v6637_v41  ;;  %v6675_v25 = vld [vmem:[#allocation10 + $0x3d4] ss:$48 sps:$4 sm:$0xff]   ;;  %v6688_v41 = vld [vmem:[#allocation10 + $0x318] ss:$48 sps:$4 sm:$0xff]  }
 0xeaf   :  { %3454 = vmatpush1.bf16.msra.mxu0 %v6622_v31  ;;  %v6673_v31 = vld [vmem:[#allocation10 + $0x3d0] ss:$48 sps:$4 sm:$0xff]  }
 0xeb0   :  { %3455 = vmatprep.subr.bf16.mxu0 %v6630_v34  ;;  %v6681_v34 = vld [vmem:[#allocation10 + $0x374] ss:$48 sps:$4 sm:$0xff]  }
 0xeb3   :  { %3456 = vmatpush1.bf16.msra.mxu0 %v6628_v23  ;;  %v6679_v23 = vld [vmem:[#allocation10 + $0x370] ss:$48 sps:$4 sm:$0xff]  }
 0xeb4   :  { %3457 = vmatprep.subr.bf16.mxu0 %v6636_v36  ;;  %v6687_v36 = vld [vmem:[#allocation10 + $0x314] ss:$48 sps:$4 sm:$0xff]  }
 0xeb7   :  { %3458 = vmatpush1.bf16.msra.mxu0 %v6634_v40  ;;  %v6685_v40 = vld [vmem:[#allocation10 + $0x310] ss:$48 sps:$4 sm:$0xff]  }
 0xf5e   :  { %v2706_v12 = vpop.f32.mrf.mxu0 }
 0xf5f   :  { %v2707_v35 = vadd.f32 %v5560_v46, %v2706_v12  ;;  %v6645_v12 = vld [vmem:[#allocation10 + $0x5b4] ss:$48 sps:$4 sm:$0xff]  }
 0xf60   :  { %v6141_v54 = vpop.f32.mrf.mxu0  ;;  %3488 = vmatprep.subr.bf16.mxu1 %v6645_v12  ;;  %v6694_v12 = vld [vmem:[#allocation10 + $0x5c8] ss:$48 sps:$4 sm:$0xff]  }
 0xf61   :  { %v2713_v10 = vadd.f32 %v2707_v35, %v2467_v32  ;;  %v6648_v35 = vld [vmem:[#allocation10 + $0x5bc] ss:$48 sps:$4 sm:$0xff]  }
 0xf62   :  { %v2709_v39 = vpop.f32.mrf.mxu0 }
 0xf63   :  { %v2710_v26 = vadd.f32 %v5560_v46, %v2709_v39  ;;  %v2717_v45 = vmul.f32 %v7289_v3, %v2713_v10  ;;  %v6642_v46 = vld [vmem:[#allocation10 + $0x30c] ss:$48 sps:$4 sm:$0xff]  }
 0xf64   :  { %v6142_v49 = vpop.f32.mrf.mxu0  ;;  %3459 = vmatprep.subr.bf16.mxu0 %v6642_v46  ;;  %v6691_v46 = vld [vmem:[#allocation10 + $0x5c0] ss:$48 sps:$4 sm:$0xff]  }
 0xf65   :  { %v2714_v20 = vadd.f32 %v2710_v26, %v7627_v50  ;;  %2719 = vadd.xlane.f32.xlu0 %v2717_v45  ;;  %3460 = vmatpush1.bf16.msra.mxu0 %v6640_v43  ;;  %v6696_v43 = vld [vmem:[#allocation10 + $0x5cc] ss:$48 sps:$4 sm:$0xff]  }
 0xf66   :  { %3531 = vmatprep.subr.bf16.mxu0 %v6648_v35  ;;  %v6699_v35 = vld [vmem:[#allocation10 + $0x564] ss:$48 sps:$4 sm:$0xff]  }
 0xf67   :  { %v2718_v24 = vmul.f32 %v7289_v3, %v2714_v20 }
 0xf69   :  { %2721 = vadd.xlane.f32.xlu1 %v2718_v24 }
 0xfee   :  { %v2720_v32 = vpop.xlane.xlu0 %2719 }
 0xfef   :  { %v2723_v56 = vmul.f32 0.03125, %v2720_v32  ;;  %v5570_v32 = vld [vmem:[%s8023_s15] ss:$0 sm:$0xff] }
 0xff1   :  { %v2725_v63 = vsub.f32 %v2713_v10, %v2723_v56 }
 0xff2   :  { %v2722_v58 = vpop.xlane.xlu1 %2721 }
 0xff3   :  { %v2724_v61 = vmul.f32 0.03125, %v2722_v58  ;;  %v7649_v44 = vmul.f32 %v7289_v3, %v2725_v63 }
 0xff5   :  { %v2726_v50 = vsub.f32 %v2714_v20, %v2724_v61  ;;  %v2729_v16 = vmul.f32 %v7649_v44, %v7649_v44  ;;  %v6643_v61 = vld [vmem:[#allocation10 + $0x5b0] ss:$48 sps:$4 sm:$0xff]  }
 0xff7   :  { %2731 = vadd.xlane.f32.xlu0 %v2729_v16  ;;  %v7654_v62 = vmul.f32 %v7289_v3, %v2726_v50  ;;  %v6646_v50 = vld [vmem:[#allocation10 + $0x5b8] ss:$48 sps:$4 sm:$0xff]   ;;  %v6651_v16 = vld [vmem:[#allocation10 + $0x554] ss:$48 sps:$4 sm:$0xff]  }
 0xff9   :  { %v2730_v4 = vmul.f32 %v7654_v62, %v7654_v62 }
 0xffb   :  { %2733 = vadd.xlane.f32.xlu1 %v2730_v4  ;;  %v6654_v4 = vld [vmem:[#allocation10 + $0x55c] ss:$48 sps:$4 sm:$0xff]  }
0x1080   :  { %v2732_v54 = vpop.xlane.xlu0 %2731 }
0x1081   :  { %v2735_v10 = vmul.f32 0.03125, %v2732_v54  ;;  %v6702_v54 = vld [vmem:[#allocation10 + $0x56c] ss:$48 sps:$4 sm:$0xff]  }
0x1083   :  { %v2737_v39 = vadd.f32 1e-12, %v2735_v10  ;;  %v6697_v10 = vld [vmem:[#allocation10 + $0x560] ss:$48 sps:$4 sm:$0xff]  }
0x1084   :  { %v2734_v26 = vpop.xlane.xlu1 %2733 }
0x1085   :  { %6839 = vrsqrt.f32 %v2737_v39  ;;  %v2736_v45 = vmul.f32 0.03125, %v2734_v26  ;;  %v6700_v39 = vld [vmem:[#allocation10 + $0x568] ss:$48 sps:$4 sm:$0xff]   ;;  %v6705_v26 = vld [vmem:[#allocation10 + $0x504] ss:$48 sps:$4 sm:$0xff]  }
0x1087   :  { %v2738_v49 = vadd.f32 1e-12, %v2736_v45  ;;  %v6708_v45 = vld [vmem:[#allocation10 + $0x50c] ss:$48 sps:$4 sm:$0xff]  }
0x1089   :  { %6841 = vrsqrt.f32 %v2738_v49  ;;  %v6703_v49 = vld [vmem:[#allocation10 + $0x500] ss:$48 sps:$4 sm:$0xff]  }
0x1092   :  { %v6840_v20 = vpop.eup %6839 }
0x1093   :  { %v2741_v24 = vmul.f32 %v6840_v20, %v7649_v44  ;;  %v6706_v20 = vld [vmem:[#allocation10 + $0x508] ss:$48 sps:$4 sm:$0xff]  }
0x1095   :  { %v2749_v28 = vmul.f32 %v5569_v57, %v2741_v24  ;;  %v6711_v24 = vld [vmem:[#allocation10 + $0x4a4] ss:$48 sps:$4 sm:$0xff]  }
0x1096   :  { %v6842_v60 = vpop.eup %6841 }
0x1097   :  { %v2742_v11 = vmul.f32 %v6842_v60, %v7654_v62  ;;  %v7666_v63 = vadd.f32 %v5570_v32, %v2749_v28  ;;  %v6649_v62 = vld [vmem:[#allocation10 + $0x550] ss:$48 sps:$4 sm:$0xff]   ;;  %v6712_v28 = vld [vmem:[#allocation10 + $0x4a8] ss:$48 sps:$4 sm:$0xff]  }
0x1098   :  { %v6709_v60 = vld [vmem:[#allocation10 + $0x4a0] ss:$48 sps:$4 sm:$0xff]  }
0x1099   :  { %v2750_v56 = vmul.f32 %v5569_v57, %v2742_v11  ;;  %v6714_v57 = vld [vmem:[#allocation10 + $0x4ac] ss:$48 sps:$4 sm:$0xff]   ;;  %v6717_v11 = vld [vmem:[#allocation10 + $0x444] ss:$48 sps:$4 sm:$0xff]  }
0x109b   :  { %v7668_v58 = vadd.f32 %v5570_v32, %v2750_v56  ;;  %v6720_v32 = vld [vmem:[#allocation10 + $0x44c] ss:$48 sps:$4 sm:$0xff]   ;;  %v6715_v56 = vld [vmem:[#allocation10 + $0x440] ss:$48 sps:$4 sm:$0xff]  }
0x109d   :  { %v7672_v44 = vpack.c.bf16 %v7668_v58, %v7666_v63 }
0x109f   :  { %3435 = vmatmul.mubr.bf16.vlgmr.msra.gmra.mxu1 %v7672_v44  ;;  %3478 = vmatmul.mubr.bf16.vlgmr.msra.gmra.mxu0 %v7672_v44 }
0x10a0   :  { %3489 = vmatpush1.bf16.msra.mxu1 %v6643_v61  ;;  %3532 = vmatpush1.bf16.msra.mxu0 %v6646_v50  ;;  %v6723_v61 = vld [vmem:[#allocation10 + $0x3e4] ss:$48 sps:$4 sm:$0xff]   ;;  %v6726_v50 = vld [vmem:[#allocation10 + $0x3ec] ss:$48 sps:$4 sm:$0xff]  }
0x10a1   :  { %3490 = vmatprep.subr.bf16.mxu1 %v6651_v16  ;;  %3533 = vmatprep.subr.bf16.mxu0 %v6654_v4  ;;  %v6721_v16 = vld [vmem:[#allocation10 + $0x3e0] ss:$48 sps:$4 sm:$0xff]   ;;  %v6724_v4 = vld [vmem:[#allocation10 + $0x3e8] ss:$48 sps:$4 sm:$0xff]  }
0x10a2   :  { %3520 = vmatprep.mubr.bf16.mxu1 %v7144_v52  ;;  %3563 = vmatprep.mubr.bf16.mxu0 %v7144_v52 }
0x10a4   :  { %3491 = vmatpush1.bf16.msra.mxu1 %v6649_v62  ;;  %3534 = vmatpush1.bf16.msra.mxu0 %v6652_v21  ;;  %v6729_v62 = vld [vmem:[#allocation10 + $0x384] ss:$48 sps:$4 sm:$0xff]   ;;  %v6732_v21 = vld [vmem:[#allocation10 + $0x38c] ss:$48 sps:$4 sm:$0xff]  }
0x10a5   :  { %3492 = vmatprep.subr.bf16.mxu1 %v6657_v53  ;;  %3535 = vmatprep.subr.bf16.mxu0 %v6660_v5  ;;  %v6727_v53 = vld [vmem:[#allocation10 + $0x380] ss:$48 sps:$4 sm:$0xff]   ;;  %v6730_v5 = vld [vmem:[#allocation10 + $0x388] ss:$48 sps:$4 sm:$0xff]  }
0x10a8   :  { %3493 = vmatpush1.bf16.msra.mxu1 %v6655_v9  ;;  %3536 = vmatpush1.bf16.msra.mxu0 %v6658_v33  ;;  %v6735_v9 = vld [vmem:[#allocation10 + $0x324] ss:$48 sps:$4 sm:$0xff]   ;;  %v6738_v33 = vld [vmem:[#allocation10 + $0x32c] ss:$48 sps:$4 sm:$0xff]  }
0x10a9   :  { %3494 = vmatprep.subr.bf16.mxu1 %v6663_v38  ;;  %3537 = vmatprep.subr.bf16.mxu0 %v6666_v29  ;;  %v6733_v38 = vld [vmem:[#allocation10 + $0x320] ss:$48 sps:$4 sm:$0xff]   ;;  %v6736_v29 = vld [vmem:[#allocation10 + $0x328] ss:$48 sps:$4 sm:$0xff]  }
0x10ac   :  { %3495 = vmatpush1.bf16.msra.mxu1 %v6661_v59  ;;  %3538 = vmatpush1.bf16.msra.mxu0 %v6664_v8  ;;  %v7690_v59 = vld [vmem:[#allocation11 + $0xc] sm:$0xff] }
0x10ad   :  { %3496 = vmatprep.subr.bf16.mxu1 %v6669_v51  ;;  %3539 = vmatprep.subr.bf16.mxu0 %v6672_v19  ;;  %v7694_v8 = vrot.slane %v7690_v59, %v7335_v15 }
0x10b0   :  { %3497 = vmatpush1.bf16.msra.mxu1 %v6667_v1  ;;  %3540 = vmatpush1.bf16.msra.mxu0 %v6670_v18 }
0x10b1   :  { %3498 = vmatprep.subr.bf16.mxu1 %v6675_v25  ;;  %3541 = vmatprep.subr.bf16.mxu0 %v6678_v30 }
0x10b4   :  { %3499 = vmatpush1.bf16.msra.mxu1 %v6673_v31  ;;  %3542 = vmatpush1.bf16.msra.mxu0 %v6676_v6 }
0x10b5   :  { %3500 = vmatprep.subr.bf16.mxu1 %v6681_v34  ;;  %3543 = vmatprep.subr.bf16.mxu0 %v6684_v55  ;;  %v2881_v55 = vrot.slane %v7690_v59, %v365_v0  ;;  %v2865_v0 = vrot.slane %v7690_v59, %v7363_v27 }
0x10b8   :  { %3501 = vmatpush1.bf16.msra.mxu1 %v6679_v23  ;;  %3544 = vmatpush1.bf16.msra.mxu0 %v6682_v7  ;;  %v7713_v23 = vrot.slane %v7690_v59, %v373_v22 }
0x10b9   :  { %3502 = vmatprep.subr.bf16.mxu1 %v6687_v36  ;;  %3545 = vmatprep.subr.bf16.mxu0 %v6690_v37  ;;  %v2885_v36 = vrot.slane %v7690_v59, %v369_v13 }
0x10bc   :  { %3503 = vmatpush1.bf16.msra.mxu1 %v6685_v40  ;;  %3546 = vmatpush1.bf16.msra.mxu0 %v6688_v41 }
0x10bd   :  { %3574 = vmatprep.subr.bf16.mxu1 %v6693_v42  ;;  %3617 = vmatprep.subr.bf16.mxu0 %v6696_v43 }
0x10bf   :  { %3521 = vmatmul.mubr.bf16.vlgmr.msra.gmra.mxu1 %v7672_v44  ;;  %3564 = vmatmul.mubr.bf16.vlgmr.msra.gmra.mxu0 %v7672_v44 }
0x10c0   :  { %3575 = vmatpush1.bf16.msra.mxu1 %v6691_v46  ;;  %3618 = vmatpush1.bf16.msra.mxu0 %v6694_v12 }
0x10c1   :  { %3576 = vmatprep.subr.bf16.mxu1 %v6699_v35  ;;  %3619 = vmatprep.subr.bf16.mxu0 %v6702_v54 }
0x10c2   :  { %3606 = vmatprep.mubr.bf16.mxu1 %v7144_v52  ;;  %3649 = vmatprep.mubr.bf16.mxu0 %v7144_v52  ;;  %v6718_v52 = vld [vmem:[#allocation10 + $0x448] ss:$48 sps:$4 sm:$0xff]  }
0x10c4   :  { %3577 = vmatpush1.bf16.msra.mxu1 %v6697_v10  ;;  %3620 = vmatpush1.bf16.msra.mxu0 %v6700_v39 }
0x10c5   :  { %3578 = vmatprep.subr.bf16.mxu1 %v6705_v26  ;;  %3621 = vmatprep.subr.bf16.mxu0 %v6708_v45 }
0x10c8   :  { %3579 = vmatpush1.bf16.msra.mxu1 %v6703_v49  ;;  %3622 = vmatpush1.bf16.msra.mxu0 %v6706_v20 }
0x10c9   :  { %3580 = vmatprep.subr.bf16.mxu1 %v6711_v24  ;;  %3623 = vmatprep.subr.bf16.mxu0 %v6714_v57 }
0x10cc   :  { %3581 = vmatpush1.bf16.msra.mxu1 %v6709_v60  ;;  %3624 = vmatpush1.bf16.msra.mxu0 %v6712_v28 }
0x10cd   :  { %3582 = vmatprep.subr.bf16.mxu1 %v6717_v11  ;;  %3625 = vmatprep.subr.bf16.mxu0 %v6720_v32  ;;  %v2859_v11 = vld [vmem:[#allocation11 + $0x14] sm:$0xf] }
0x10ce   :  { %v2897_v32 = vrot.slane %v2859_v11, %v7363_v27 }
0x10d0   :  { %3583 = vmatpush1.bf16.msra.mxu1 %v6715_v56  ;;  %3626 = vmatpush1.bf16.msra.mxu0 %v6718_v52  ;;  %v2905_v56 = vrot.slane %v2859_v11, %v7335_v15 }
0x10d1   :  { %3584 = vmatprep.subr.bf16.mxu1 %v6723_v61  ;;  %3627 = vmatprep.subr.bf16.mxu0 %v6726_v50  ;;  %v7745_v61 = vrot.slane %v2859_v11, %v7387_v47  ;;  %v7748_v50 = vrot.slane %v2859_v11, %v7390_v48 }
0x10d4   :  { %3585 = vmatpush1.bf16.msra.mxu1 %v6721_v16  ;;  %3628 = vmatpush1.bf16.msra.mxu0 %v6724_v4 }
0x10d5   :  { %3586 = vmatprep.subr.bf16.mxu1 %v6729_v62  ;;  %3629 = vmatprep.subr.bf16.mxu0 %v6732_v21 }
0x10d8   :  { %3587 = vmatpush1.bf16.msra.mxu1 %v6727_v53  ;;  %3630 = vmatpush1.bf16.msra.mxu0 %v6730_v5 }
0x10d9   :  { %3588 = vmatprep.subr.bf16.mxu1 %v6735_v9  ;;  %3631 = vmatprep.subr.bf16.mxu0 %v6738_v33 }
0x10dc   :  { %3589 = vmatpush1.bf16.msra.mxu1 %v6733_v38  ;;  %3632 = vmatpush1.bf16.msra.mxu0 %v6736_v29 }
0x10dd   :  { %6143 = vmatprep.subr.bf16.mxu1 %v7143_v2  ;;  %6167 = vmatprep.subr.bf16.mxu0 %v7143_v2 }
0x10df   :  { %3607 = vmatmul.mubr.bf16.vlgmr.msra.gmra.mxu1 %v7672_v44  ;;  %3650 = vmatmul.mubr.bf16.vlgmr.msra.gmra.mxu0 %v7672_v44  ;;  %v2869_v44 = vrot.slane %v7690_v59, %v7387_v47 }
0x10e0   :  { %6145 = vmatprep.mubr.msk.bf16.mxu1 %vm7145_vm1, %v7143_v2  ;;  %6169 = vmatprep.mubr.msk.bf16.mxu0 %vm7145_vm1, %v7143_v2 }
0x115f   :  { %v3436_v51 = vpop.f32.mrf.mxu1  ;;  %v3479_v19 = vpop.f32.mrf.mxu0 }
0x1160   :  { %v7697_v1 = vadd.f32 %v3479_v19, %v7694_v8  ;;  %v3437_v54 = vadd.f32 %v3436_v51, %v2865_v0 }
0x1161   :  { %v3438_v18 = vpop.f32.mrf.mxu1  ;;  %v7703_v6 = vpop.f32.mrf.mxu0 }
0x1162   :  { %v3439_v26 = vadd.f32 %v3438_v18, %v2869_v44  ;;  %v3660_v45 = vpack.c.bf16 %v3437_v54, %v3437_v54 }
0x1163   :  { %v3440_v25 = vpop.f32.mrf.mxu1  ;;  %v7705_v34 = vpop.f32.mrf.mxu0 }
0x1164   :  { %v3884_v20 = vpack.c.bf16 %v3439_v26, %v3439_v26  ;;  %v3441_v24 = vadd.f32 %v3440_v25, %v2865_v0  ;;  %v7770_v26 = vld [vmem:[#allocation5 + $0x1] ss:$0 sm:$0xff] }
0x1165   :  { %v3442_v30 = vpop.f32.mrf.mxu1  ;;  %v7715_v7 = vpop.f32.mrf.mxu0 }
0x1166   :  { %v7701_v31 = vadd.f32 %v3442_v30, %v2869_v44  ;;  %v3661_v57 = vpack.c.bf16 %v3441_v24, %v3441_v24 }
0x117f   :  { %v3522_v37 = vpop.f32.mrf.mxu1  ;;  %v3565_v40 = vpop.f32.mrf.mxu0 }
0x1180   :  { %v3523_v41 = vadd.f32 %v3522_v37, %v2881_v55  ;;  %v7721_v42 = vadd.f32 %v3565_v40, %v7713_v23  ;;  %v7766_v40 = vld [vmem:[#allocation5] ss:$0 sm:$0xff] }
0x1181   :  { %v3524_v43 = vpop.f32.mrf.mxu1  ;;  %v7736_v60 = vpop.f32.mrf.mxu0 }
0x1182   :  { %v3662_v46 = vpack.c.bf16 %v3523_v41, %v3523_v41  ;;  %v3525_v12 = vadd.f32 %v3524_v43, %v2885_v36 }
0x1183   :  { %v3526_v22 = vpop.f32.mrf.mxu1  ;;  %v7738_v28 = vpop.f32.mrf.mxu0 }
0x1184   :  { %v3886_v35 = vpack.c.bf16 %v3525_v12, %v3525_v12  ;;  %6144 = vmatpush3.bf16.xpose.msra.mxu1 %v3662_v46  ;;  %v3527_v13 = vadd.f32 %v3526_v22, %v2881_v55 }
0x1185   :  { %v3528_v10 = vpop.f32.mrf.mxu1  ;;  %6149 = vmatprep.subr.bf16.mxu1 %v7143_v2  ;;  %v7742_v52 = vpop.f32.mrf.mxu0 }
0x1186   :  { %v7726_v39 = vadd.f32 %v3528_v10, %v2885_v36  ;;  %6168 = vmatpush3.bf16.xpose.msra.mxu0 %v3886_v35  ;;  %v3663_v49 = vpack.c.bf16 %v3527_v13, %v3527_v13 }
0x1187   :  { %6179 = vmatprep.subr.bf16.mxu0 %v7143_v2 }
0x118b   :  { %6146 = vmatmul.mubr.bf16.vlgmr.msra.gmra.mxu1 %v3660_v45 }
0x118c   :  { %6150 = vmatpush3.bf16.xpose.msra.mxu1 %v3663_v49  ;;  %6151 = vmatprep.mubr.msk.bf16.mxu1 %vm7145_vm1, %v7143_v2 }
0x118d   :  { %6170 = vmatmul.mubr.bf16.vlgmr.msra.gmra.mxu0 %v3884_v20  ;;  %6155 = vmatprep.subr.bf16.mxu1 %v7143_v2 }
0x118e   :  { %6181 = vmatprep.mubr.msk.bf16.mxu0 %vm7145_vm1, %v7143_v2 }
0x1193   :  { %6152 = vmatmul.mubr.bf16.vlgmr.msra.gmra.mxu1 %v3661_v57 }
0x1194   :  { %6157 = vmatprep.mubr.msk.bf16.mxu1 %vm7145_vm1, %v7143_v2 }
0x119f   :  { %v3608_v16 = vpop.f32.mrf.mxu1  ;;  %v3651_v4 = vpop.f32.mrf.mxu0 }
0x11a0   :  { %v3609_v62 = vadd.f32 %v3608_v16, %v2897_v32  ;;  %v7750_v21 = vadd.f32 %v3651_v4, %v2905_v56 }
0x11a1   :  { %v3610_v53 = vpop.f32.mrf.mxu1  ;;  %v3653_v5 = vpop.f32.mrf.mxu0 }
0x11a2   :  { %v3664_v9 = vpack.c.bf16 %v3609_v62, %v3609_v62  ;;  %v3611_v27 = vadd.f32 %v3610_v53, %v7745_v61  ;;  %v7754_v15 = vadd.f32 %v3653_v5, %v7748_v50 }
0x11a3   :  { %v3612_v33 = vpop.f32.mrf.mxu1  ;;  %v3655_v38 = vpop.f32.mrf.mxu0 }
0x11a4   :  { %v3778_v47 = vsel %vm1275_vm2, %v3664_v9, 0  ;;  %v3888_v29 = vpack.c.bf16 %v3611_v27, %v3611_v27  ;;  %v3613_v51 = vadd.f32 %v3612_v33, %v2897_v32  ;;  %v7757_v19 = vadd.f32 %v3655_v38, %v2905_v56 }
0x11a5   :  { %6156 = vmatpush3.bf16.msra.mxu1 %v3778_v47  ;;  %v3614_v25 = vpop.f32.mrf.mxu1  ;;  %v7762_v44 = vpop.f32.mrf.mxu0 }
0x11a6   :  { %v4002_v18 = vsel %vm1275_vm2, %v3888_v29, 0  ;;  %6161 = vmatprep.subr.bf16.mxu1 %v7143_v2  ;;  %v3665_v47 = vpack.c.bf16 %v3613_v51, %v3613_v51  ;;  %v3615_v51 = vadd.f32 %v3614_v25, %v7745_v61 }
0x11a7   :  { %6180 = vmatpush3.bf16.msra.mxu0 %v4002_v18 }
0x11a8   :  { %6191 = vmatprep.subr.bf16.mxu0 %v7143_v2 }
0x124b   :  { %v3700_v30 = vpop.f32.mrf.mxu1 }
0x124c   :  { %v3746_v55 = vmul.f32 0.35355338, %v3700_v30  ;;  %v3824_v30 = vsel %vm1275_vm2, %v3665_v47, 0 }
0x124d   :  { %v6147_v36 = vpop.f32.mrf.mxu1  ;;  %v7764_v37 = vpop.f32.mrf.mxu0 }
0x124e   :  { %v3748_v41 = vadd.f32 %v7766_v40, %v3746_v55 }
0x124f   :  { %v3703_v0 = vpop.f32.mrf.mxu1  ;;  %v6171_v43 = vpop.f32.mrf.mxu0 }
0x1250   :  { %v3750_v46 = vsel %vm1247_vm3, %v3748_v41, -inf  ;;  %v3887_v0 = vpack.c.bf16 %v7726_v39, %v7726_v39  ;;  %v3889_v43 = vpack.c.bf16 %v3615_v51, %v3615_v51 }
0x1251   :  { %v3927_v12 = vpop.f32.mrf.mxu0  ;;  %3751 = vmax.xlane.f32.xlu0 %v3750_v46  ;;  %v6148_v22 = vpop.f32.mrf.mxu1  ;;  %v3885_v46 = vpack.c.bf16 %v7701_v31, %v7701_v31 }
0x1252   :  { %v4048_v12 = vsel %vm1275_vm2, %v3889_v43, 0 }
0x1253   :  { %v3740_v35 = vpop.f32.mrf.mxu1  ;;  %v6172_v54 = vpop.f32.mrf.mxu0 }
0x1254   :  { %v3747_v10 = vmul.f32 0.35355338, %v3740_v35 }
0x1255   :  { %v6153_v13 = vpop.f32.mrf.mxu1 }
0x1256   :  { %v3749_v45 = vadd.f32 %v7770_v26, %v3747_v10 }
0x1257   :  { %v3743_v49 = vpop.f32.mrf.mxu1 }
0x1258   :  { %v3753_v20 = vsel %vm1247_vm3, %v3749_v45, -inf  ;;  %v3970_v49 = vmul.f32 0.35355338, %v7764_v37 }
0x1259   :  { %3754 = vmax.xlane.f32.xlu1 %v3753_v20  ;;  %v6154_v24 = vpop.f32.mrf.mxu1 }
0x12da   :  { %v3752_v57 = vpop.xlane.xlu0 %3751 }
0x12db   :  { %v3756_v11 = vsub.f32 %v3748_v41, %v3752_v57 }
0x12dd   :  { %v3758_v32 = vmul.f32 1.442695, %v3756_v11 }
0x12df   :  { %6843 = vpow2.f32 %v3758_v32 }
0x12e2   :  { %v3755_v56 = vpop.xlane.xlu1 %3754 }
0x12e3   :  { %v3757_v16 = vsub.f32 %v3749_v45, %v3755_v56  ;;  %v3972_v56 = vadd.f32 %v7766_v40, %v3970_v49  ;;  %v6744_v49 = vld [vmem:[#allocation13 + $0x110] sm:$0xff]  }
0x12e5   :  { %v3760_v4 = vmul.f32 1.442695, %v3757_v16 }
0x12e7   :  { %6845 = vpow2.f32 %v3760_v4  ;;  %v3974_v4 = vsel %vm1247_vm3, %v3972_v56, -inf }
0x12ec   :  { %v6844_v62 = vpop.eup %6843 }
0x12ed   :  { %v3762_v53 = vsel %vm1247_vm3, %v6844_v62, 0.0 }
0x12ee   :  { %3763 = vadd.xlane.f32.xlu0 %v3762_v53 }
0x12f4   :  { %v6846_v5 = vpop.eup %6845 }
0x12f5   :  { %v3765_v9 = vsel %vm1247_vm3, %v6846_v5, 0.0 }
0x12f6   :  { %3766 = vadd.xlane.f32.xlu1 %v3765_v9 }
0x1377   :  { %v3764_v27 = vpop.xlane.xlu0 %3763 }
0x1378   :  { %6847 = vrcp.f32 %v3764_v27 }
0x137f   :  { %v3767_v33 = vpop.xlane.xlu1 %3766 }
0x1380   :  { %6849 = vrcp.f32 %v3767_v33 }
0x1385   :  { %v6848_v38 = vpop.eup %6847 }
0x1386   :  { %v3769_v29 = vmul.f32 %v6848_v38, %v6844_v62 }
0x1388   :  { %v3772_v18 = vpack.c.bf16 %v3769_v29, %v3769_v29 }
0x138a   :  { %6158 = vmatmul.mubr.msk.bf16.vlgmr.msra.gmra.mxu1 %vm1247_vm3, %v3772_v18 }
0x138b   :  { %6162 = vmatpush3.bf16.msra.mxu1 %v3824_v30  ;;  %6163 = vmatprep.mubr.msk.bf16.mxu1 %vm7145_vm1, %v7143_v2 }
0x138c   :  { %6173 = vmatprep.subr.bf16.mxu1 %v7143_v2 }
0x138d   :  { %v6850_v55 = vpop.eup %6849 }
0x138e   :  { %v3771_v36 = vmul.f32 %v6850_v55, %v6846_v5 }
0x1390   :  { %v3773_v41 = vpack.c.bf16 %v3771_v36, %v3771_v36 }
0x1392   :  { %6164 = vmatmul.mubr.msk.bf16.vlgmr.msra.gmra.mxu1 %vm1247_vm3, %v3773_v41  ;;  %v6739_v41 = vld [vmem:[#allocation13 + $0x138] sm:$0xff]  }
0x1393   :  { %6174 = vmatpush3.bf16.xpose.msra.mxu1 %v3887_v0  ;;  %6175 = vmatprep.mubr.msk.bf16.mxu1 %vm7145_vm1, %v7143_v2 }
0x1394   :  { %6185 = vmatprep.subr.bf16.mxu1 %v7143_v2 }
0x139a   :  { %6176 = vmatmul.mubr.bf16.vlgmr.msra.gmra.mxu1 %v3885_v46  ;;  %v6740_v46 = vld [vmem:[#allocation13 + $0x130] sm:$0xff]  }
0x139b   :  { %6186 = vmatpush3.bf16.msra.mxu1 %v4048_v12  ;;  %6187 = vmatprep.mubr.msk.bf16.mxu1 %vm7145_vm1, %v7143_v2  ;;  %v6747_v12 = vld [vmem:[#allocation13 + $0x178] sm:$0xff]  }
0x139c   :  { %6211 = vmatprep.subr.bf16.mxu1 %v7143_v2 }
0x144a   :  { %v7794_v39 = vpop.f32.mrf.mxu1 }
0x144c   :  { %v6159_v61 = vpop.f32.mrf.mxu1 }
0x144e   :  { %v3817_v25 = vpop.f32.mrf.mxu1 }
0x144f   :  { %v6741_v25 = vld [vmem:[#allocation13 + $0x128] sm:$0xff]  }
0x1450   :  { %v6160_v22 = vpop.f32.mrf.mxu1 }
0x1451   :  { %v6748_v22 = vld [vmem:[#allocation13 + $0x170] sm:$0xff]  }
0x1452   :  { %v7796_v35 = vpop.f32.mrf.mxu1 }
0x1453   :  { %v3866_v54 = vpack.c.bf16 %v7796_v35, %v7794_v39  ;;  %v6754_v39 = vld [vmem:[#allocation13 + $0x140] sm:$0xff]  }
0x1454   :  { %v6165_v31 = vpop.f32.mrf.mxu1 }
0x1455   :  { %v6742_v31 = vld [vmem:[#allocation13 + $0x120] sm:$0xff]  }
0x1456   :  { %v3863_v10 = vpop.f32.mrf.mxu1 }
0x1457   :  { %v6749_v10 = vld [vmem:[#allocation13 + $0x168] sm:$0xff]  }
0x1458   :  { %v6166_v13 = vpop.f32.mrf.mxu1 }
0x1459   :  { %v6743_v13 = vld [vmem:[#allocation13 + $0x118] sm:$0xff]  }
0x145a   :  { %v3964_v45 = vpop.f32.mrf.mxu1 }
0x145b   :  { %v3971_v20 = vmul.f32 0.35355338, %v3964_v45  ;;  %v6750_v45 = vld [vmem:[#allocation13 + $0x160] sm:$0xff]  }
0x145c   :  { %v6177_v24 = vpop.f32.mrf.mxu1 }
0x145d   :  { %v3973_v57 = vadd.f32 %v7770_v26, %v3971_v20  ;;  %v6751_v20 = vld [vmem:[#allocation13 + $0x158] sm:$0xff]   ;;  %v6745_v24 = vld [vmem:[#allocation13 + $0x108] sm:$0xff]  }
0x145e   :  { %v3967_v11 = vpop.f32.mrf.mxu1 }
0x145f   :  { %v3977_v32 = vsel %vm1247_vm3, %v3973_v57, -inf  ;;  %v6746_v11 = vld [vmem:[#allocation13 + $0x100] sm:$0xff]  }
0x1460   :  { %3978 = vmax.xlane.f32.xlu0 %v3977_v32  ;;  %v6178_v16 = vpop.f32.mrf.mxu1  ;;  %v6753_v32 = vld [vmem:[#allocation13 + $0x148] sm:$0xff]  }
0x1464   :  { %3975 = vmax.xlane.f32.xlu0 %v3974_v4  ;;  %v3484_v4 = vadd.f32 %v7705_v34, %v7694_v8 }
0x14e9   :  { %v3979_v62 = vpop.xlane.xlu0 %3978 }
0x14ea   :  { %v3981_v53 = vsub.f32 %v3973_v57, %v3979_v62  ;;  %v6752_v57 = vld [vmem:[#allocation13 + $0x150] sm:$0xff]  }
0x14ec   :  { %v3984_v5 = vmul.f32 1.442695, %v3981_v53 }
0x14ed   :  { %v3976_v9 = vpop.xlane.xlu0 %3975 }
0x14ee   :  { %6851 = vpow2.f32 %v3984_v5  ;;  %v3980_v37 = vsub.f32 %v3972_v56, %v3976_v9  ;;  %v3570_v56 = vadd.f32 %v7738_v28, %v7713_v23  ;;  %v4291_v23 = vpack.c.bf16 %v7757_v19, %v7757_v19 }
0x14ef   :  { %v4287_v28 = vpack.c.bf16 %v3484_v4, %v3484_v4  ;;  %v4288_v19 = vpack.c.bf16 %v7721_v42, %v7721_v42 }
0x14f0   :  { %v3982_v27 = vmul.f32 1.442695, %v3980_v37  ;;  %v4289_v16 = vpack.c.bf16 %v3570_v56, %v3570_v56  ;;  %v4450_v62 = vsel %vm1275_vm2, %v4291_v23, 0 }
0x14f2   :  { %6853 = vpow2.f32 %v3982_v27 }
0x14fb   :  { %v6852_v33 = vpop.eup %6851 }
0x14fc   :  { %v3989_v38 = vsel %vm1247_vm3, %v6852_v33, 0.0 }
0x14fd   :  { %3990 = vadd.xlane.f32.xlu1 %v3989_v38  ;;  %v4286_v38 = vpack.c.bf16 %v7697_v1, %v7697_v1 }
0x14ff   :  { %v6854_v47 = vpop.eup %6853 }
0x1500   :  { %v3986_v29 = vsel %vm1247_vm3, %v6854_v47, 0.0 }
0x1501   :  { %3987 = vadd.xlane.f32.xlu1 %v3986_v29 }
0x1586   :  { %v3991_v18 = vpop.xlane.xlu1 %3990 }
0x1587   :  { %6855 = vrcp.f32 %v3991_v18 }
0x158a   :  { %v3988_v30 = vpop.xlane.xlu1 %3987 }
0x158b   :  { %6857 = vrcp.f32 %v3988_v30 }
0x1594   :  { %v6856_v55 = vpop.eup %6855 }
0x1595   :  { %v3995_v36 = vmul.f32 %v6856_v55, %v6852_v33  ;;  %v4290_v33 = vpack.c.bf16 %v7750_v21, %v7750_v21 }
0x1597   :  { %v3997_v0 = vpack.c.bf16 %v3995_v36, %v3995_v36 }
0x1598   :  { %v6858_v51 = vpop.eup %6857 }
0x1599   :  { %6188 = vmatmul.mubr.msk.bf16.vlgmr.msra.gmra.mxu1 %vm1247_vm3, %v3997_v0  ;;  %v3993_v43 = vmul.f32 %v6858_v51, %v6854_v47  ;;  %v4404_v47 = vsel %vm1275_vm2, %v4290_v33, 0 }
0x159a   :  { %6212 = vmatpush3.bf16.msra.mxu1 %v6739_v41  ;;  %6227 = vmatprep.mubr.msk.bf16.mxu1 %vm7145_vm1, %v7143_v2 }
0x159b   :  { %6213 = vmatprep.subr.bf16.mxu1 %v7143_v2  ;;  %v3996_v61 = vpack.c.bf16 %v3993_v43, %v3993_v43 }
0x159d   :  { %6182 = vmatmul.mubr.msk.bf16.vlgmr.msra.gmra.mxu0 %vm1247_vm3, %v3996_v61 }
0x159e   :  { %6214 = vmatpush3.bf16.msra.mxu1 %v6740_v46  ;;  %6192 = vmatpush3.bf16.msra.mxu0 %v6747_v12 }
0x159f   :  { %6215 = vmatprep.subr.bf16.mxu1 %v7143_v2  ;;  %6193 = vmatprep.subr.bf16.mxu0 %v7143_v2 }
0x15a0   :  { %6207 = vmatprep.mubr.msk.bf16.mxu0 %vm7145_vm1, %v7143_v2 }
0x15a2   :  { %6216 = vmatpush3.bf16.msra.mxu1 %v6741_v25  ;;  %6194 = vmatpush3.bf16.msra.mxu0 %v6748_v22 }
0x15a3   :  { %6217 = vmatprep.subr.bf16.mxu1 %v7143_v2  ;;  %6195 = vmatprep.subr.bf16.mxu0 %v7143_v2 }
0x15a6   :  { %6218 = vmatpush3.bf16.msra.mxu1 %v6742_v31  ;;  %6196 = vmatpush3.bf16.msra.mxu0 %v6749_v10 }
0x15a7   :  { %6219 = vmatprep.subr.bf16.mxu1 %v7143_v2  ;;  %6197 = vmatprep.subr.bf16.mxu0 %v7143_v2 }
0x15aa   :  { %6220 = vmatpush3.bf16.msra.mxu1 %v6743_v13  ;;  %6198 = vmatpush3.bf16.msra.mxu0 %v6750_v45 }
0x15ab   :  { %6221 = vmatprep.subr.bf16.mxu1 %v7143_v2  ;;  %6199 = vmatprep.subr.bf16.mxu0 %v7143_v2 }
0x15ae   :  { %6222 = vmatpush3.bf16.msra.mxu1 %v6744_v49  ;;  %6200 = vmatpush3.bf16.msra.mxu0 %v6751_v20 }
0x15af   :  { %6223 = vmatprep.subr.bf16.mxu1 %v7143_v2  ;;  %6201 = vmatprep.subr.bf16.mxu0 %v7143_v2 }
0x15b2   :  { %6224 = vmatpush3.bf16.msra.mxu1 %v6745_v24  ;;  %6202 = vmatpush3.bf16.msra.mxu0 %v6752_v57 }
0x15b3   :  { %6225 = vmatprep.subr.bf16.mxu1 %v7143_v2  ;;  %6203 = vmatprep.subr.bf16.mxu0 %v7143_v2 }
0x15b6   :  { %6226 = vmatpush3.bf16.msra.mxu1 %v6746_v11  ;;  %6204 = vmatpush3.bf16.msra.mxu0 %v6753_v32 }
0x15b7   :  { %6237 = vmatprep.subr.bf16.mxu1 %v7143_v2  ;;  %6205 = vmatprep.subr.bf16.mxu0 %v7143_v2 }
0x15b9   :  { %6228 = vmatmul.mubr.bf16.vlgmr.msra.gmra.mxu1 %v3866_v54 }
0x15ba   :  { %6238 = vmatpush3.bf16.xpose.msra.mxu1 %v4289_v16  ;;  %6239 = vmatprep.mubr.msk.bf16.mxu1 %vm7145_vm1, %v7143_v2  ;;  %v2893_v16 = vrot.slane %v7690_v59, %v377_v17 }
0x15bb   :  { %6249 = vmatprep.subr.bf16.mxu1 %v7143_v2  ;;  %6206 = vmatpush3.bf16.msra.mxu0 %v6754_v39 }
0x15bc   :  { %6231 = vmatprep.subr.bf16.mxu0 %v7143_v2  ;;  %v3568_v23 = vadd.f32 %v7736_v60, %v2893_v16  ;;  %v3572_v14 = vadd.f32 %v7742_v52, %v2893_v16  ;;  %v6757_v16 = vld [vmem:[#allocation13 + $0x1a8] sm:$0xff]  }
0x15be   :  { %v4604_v60 = vpack.c.bf16 %v3572_v14, %v3572_v14  ;;  %v3658_v14 = vadd.f32 %v7762_v44, %v7748_v50  ;;  %v6763_v44 = vld [vmem:[#allocation13 + $0x1f8] sm:$0xff]  }
0x15c1   :  { %6240 = vmatmul.mubr.bf16.vlgmr.msra.gmra.mxu1 %v4287_v28 }
0x15c2   :  { %6250 = vmatpush3.bf16.msra.mxu1 %v4450_v62  ;;  %6251 = vmatprep.mubr.msk.bf16.mxu1 %vm7145_vm1, %v7143_v2  ;;  %v2877_v62 = vrot.slane %v7690_v59, %v7390_v48  ;;  %v4605_v59 = vpack.c.bf16 %v7754_v15, %v7754_v15 }
0x15c3   :  { %6275 = vmatprep.subr.bf16.mxu1 %v7143_v2 }
0x15c4   :  { %v3486_v48 = vadd.f32 %v7715_v7, %v2877_v62 }
0x1659   :  { %v4084_v8 = vpop.f32.mrf.mxu1 }
0x165b   :  { %v6189_v34 = vpop.f32.mrf.mxu1 }
0x165c   :  { %v3482_v34 = vadd.f32 %v7703_v6, %v2877_v62  ;;  %v4719_v6 = vsel %vm1275_vm2, %v4605_v59, 0  ;;  %v6761_v62 = vld [vmem:[#allocation13 + $0x188] sm:$0xff]  }
0x165d   :  { %v4038_v35 = vpop.f32.mrf.mxu0  ;;  %v4087_v54 = vpop.f32.mrf.mxu1 }
0x165e   :  { %v4090_v53 = vpack.c.bf16 %v4084_v8, %v4038_v35  ;;  %v4603_v8 = vpack.c.bf16 %v3568_v23, %v3568_v23  ;;  %v4601_v17 = vpack.c.bf16 %v3482_v34, %v3482_v34  ;;  %v4602_v35 = vpack.c.bf16 %v3486_v48, %v3486_v48  ;;  %v6759_v23 = vld [vmem:[#allocation13 + $0x198] sm:$0xff]  }
0x165f   :  { %v6183_v5 = vpop.f32.mrf.mxu0  ;;  %v6190_v9 = vpop.f32.mrf.mxu1 }
0x1660   :  { %6208 = vmatmul.mubr.bf16.vlgmr.msra.gmra.mxu0 %v4090_v53 }
0x1661   :  { %6232 = vmatpush3.bf16.xpose.msra.mxu0 %v4288_v19  ;;  %v4041_v37 = vpop.f32.mrf.mxu0  ;;  %6233 = vmatprep.mubr.msk.bf16.mxu0 %vm7145_vm1, %v7143_v2 }
0x1662   :  { %6243 = vmatprep.subr.bf16.mxu0 %v7143_v2 }
0x1663   :  { %v6184_v27 = vpop.f32.mrf.mxu0 }
0x1668   :  { %6234 = vmatmul.mubr.bf16.vlgmr.msra.gmra.mxu0 %v4286_v38 }
0x1669   :  { %6244 = vmatpush3.bf16.msra.mxu0 %v4404_v47  ;;  %6245 = vmatprep.mubr.msk.bf16.mxu0 %vm7145_vm1, %v7143_v2 }
0x166a   :  { %6255 = vmatprep.subr.bf16.mxu0 %v7143_v2 }
0x1679   :  { %v7858_v42 = vpop.f32.mrf.mxu1 }
0x167b   :  { %v6229_v29 = vpop.f32.mrf.mxu1 }
0x167d   :  { %v7860_v18 = vpop.f32.mrf.mxu1 }
0x167f   :  { %v6230_v30 = vpop.f32.mrf.mxu1 }
0x1681   :  { %v4366_v55 = vpop.f32.mrf.mxu1 }
0x1682   :  { %v4373_v21 = vmul.f32 0.35355338, %v4366_v55 }
0x1683   :  { %v6241_v36 = vpop.f32.mrf.mxu1 }
0x1684   :  { %v4375_v1 = vadd.f32 %v7770_v26, %v4373_v21 }
0x1685   :  { %v4369_v41 = vpop.f32.mrf.mxu1 }
0x1686   :  { %v4379_v0 = vsel %vm1247_vm3, %v4375_v1, -inf }
0x1687   :  { %4380 = vmax.xlane.f32.xlu0 %v4379_v0  ;;  %v6242_v51 = vpop.f32.mrf.mxu1 }
0x1710   :  { %v4381_v43 = vpop.xlane.xlu0 %4380 }
0x1711   :  { %v4383_v46 = vsub.f32 %v4375_v1, %v4381_v43 }
0x1713   :  { %v4386_v12 = vmul.f32 1.442695, %v4383_v46 }
0x1715   :  { %6859 = vpow2.f32 %v4386_v12 }
0x1720   :  { %v7864_v61 = vpop.f32.mrf.mxu0 }
0x1722   :  { %v6860_v25 = vpop.eup %6859  ;;  %v6209_v22 = vpop.f32.mrf.mxu0 }
0x1723   :  { %v4391_v31 = vsel %vm1247_vm3, %v6860_v25, 0.0 }
0x1724   :  { %4392 = vadd.xlane.f32.xlu1 %v4391_v31  ;;  %v7867_v10 = vpop.f32.mrf.mxu0 }
0x1726   :  { %v6210_v13 = vpop.f32.mrf.mxu0 }
0x1728   :  { %v4326_v45 = vpop.f32.mrf.mxu0 }
0x1729   :  { %v4372_v49 = vmul.f32 0.35355338, %v4326_v45 }
0x172a   :  { %v6235_v20 = vpop.f32.mrf.mxu0 }
0x172b   :  { %v4374_v24 = vadd.f32 %v7766_v40, %v4372_v49 }
0x172c   :  { %v4329_v57 = vpop.f32.mrf.mxu0 }
0x172d   :  { %v4376_v11 = vsel %vm1247_vm3, %v4374_v24, -inf }
0x172e   :  { %v6236_v32 = vpop.f32.mrf.mxu0  ;;  %4377 = vmax.xlane.f32.xlu0 %v4376_v11 }
0x172f   :  { %v6755_v32 = vld [vmem:[#allocation13 + $0x1b8] sm:$0xff]  }
0x17ad   :  { %v4393_v56 = vpop.xlane.xlu1 %4392 }
0x17ae   :  { %6861 = vrcp.f32 %v4393_v56  ;;  %v6756_v56 = vld [vmem:[#allocation13 + $0x1b0] sm:$0xff]  }
0x17b7   :  { %v4378_v52 = vpop.xlane.xlu0 %4377 }
0x17b8   :  { %v4382_v54 = vsub.f32 %v4374_v24, %v4378_v52 }
0x17ba   :  { %v4384_v53 = vmul.f32 1.442695, %v4382_v54 }
0x17bb   :  { %v6862_v4 = vpop.eup %6861 }
0x17bc   :  { %v4397_v28 = vmul.f32 %v6862_v4, %v6860_v25  ;;  %6863 = vpow2.f32 %v4384_v53  ;;  %v6758_v4 = vld [vmem:[#allocation13 + $0x1a0] sm:$0xff]  }
0x17be   :  { %v4399_v39 = vpack.c.bf16 %v4397_v28, %v4397_v28  ;;  %v6760_v28 = vld [vmem:[#allocation13 + $0x190] sm:$0xff]  }
0x17c0   :  { %6252 = vmatmul.mubr.msk.bf16.vlgmr.msra.gmra.mxu1 %vm1247_vm3, %v4399_v39  ;;  %v6762_v39 = vld [vmem:[#allocation13 + $0x180] sm:$0xff]  }
0x17c1   :  { %6276 = vmatpush3.bf16.xpose.msra.mxu1 %v4603_v8  ;;  %6277 = vmatprep.mubr.msk.bf16.mxu1 %vm7145_vm1, %v7143_v2 }
0x17c2   :  { %6281 = vmatprep.subr.bf16.mxu1 %v7143_v2 }
0x17c8   :  { %6278 = vmatmul.mubr.bf16.vlgmr.msra.gmra.mxu1 %v4601_v17 }
0x17c9   :  { %6282 = vmatpush3.bf16.xpose.msra.mxu1 %v4604_v60  ;;  %6283 = vmatprep.mubr.msk.bf16.mxu1 %vm7145_vm1, %v7143_v2  ;;  %v6864_v29 = vpop.eup %6863  ;;  %v4606_v60 = vpack.c.bf16 %v3658_v14, %v3658_v14 }
0x17ca   :  { %6287 = vmatprep.subr.bf16.mxu1 %v7143_v2  ;;  %v4388_v36 = vsel %vm1247_vm3, %v6864_v29, 0.0 }
0x17d0   :  { %6284 = vmatmul.mubr.bf16.vlgmr.msra.gmra.mxu1 %v4602_v35  ;;  %v4765_v35 = vsel %vm1275_vm2, %v4606_v60, 0  ;;  %v6773_v60 = vld [vmem:[#allocation14 + $0x68] sm:$0xff]  }
0x17d1   :  { %6288 = vmatpush3.bf16.msra.mxu1 %v4719_v6  ;;  %6289 = vmatprep.mubr.msk.bf16.mxu1 %vm7145_vm1, %v7143_v2 }
0x17d2   :  { %6293 = vmatprep.subr.bf16.mxu1 %v7143_v2 }
0x1880   :  { %v7893_v19 = vpop.f32.mrf.mxu1 }
0x1882   :  { %v6253_v7 = vpop.f32.mrf.mxu1 }
0x1884   :  { %v4489_v5 = vpop.f32.mrf.mxu1 }
0x1886   :  { %v6254_v9 = vpop.f32.mrf.mxu1 }
0x1887   :  { %v6764_v9 = vld [vmem:[#allocation13 + $0x1f0] sm:$0xff]  }
0x1888   :  { %v4641_v15 = vpop.f32.mrf.mxu1 }
0x1889   :  { %v4687_v37 = vmul.f32 0.35355338, %v4641_v15 }
0x188a   :  { %v6279_v27 = vpop.f32.mrf.mxu1 }
0x188b   :  { %v4689_v33 = vadd.f32 %v7766_v40, %v4687_v37  ;;  %v6765_v37 = vld [vmem:[#allocation13 + $0x1e8] sm:$0xff]   ;;  %v6766_v27 = vld [vmem:[#allocation13 + $0x1e0] sm:$0xff]  }
0x188c   :  { %v4644_v38 = vpop.f32.mrf.mxu1 }
0x188d   :  { %v4691_v47 = vsel %vm1247_vm3, %v4689_v33, -inf  ;;  %v6769_v38 = vld [vmem:[#allocation13 + $0x1c8] sm:$0xff]  }
0x188e   :  { %4692 = vmax.xlane.f32.xlu1 %v4691_v47  ;;  %v6280_v30 = vpop.f32.mrf.mxu1  ;;  %v6770_v47 = vld [vmem:[#allocation13 + $0x1c0] sm:$0xff]  }
0x1890   :  { %v4681_v55 = vpop.f32.mrf.mxu1 }
0x1891   :  { %v4688_v21 = vmul.f32 0.35355338, %v4681_v55 }
0x1892   :  { %4389 = vadd.xlane.f32.xlu1 %v4388_v36  ;;  %v6285_v1 = vpop.f32.mrf.mxu1 }
0x1893   :  { %v4690_v41 = vadd.f32 %v7770_v26, %v4688_v21 }
0x1894   :  { %v4684_v0 = vpop.f32.mrf.mxu1 }
0x1895   :  { %v4694_v51 = vsel %vm1247_vm3, %v4690_v41, -inf }
0x1896   :  { %4695 = vmax.xlane.f32.xlu0 %v4694_v51  ;;  %v6286_v43 = vpop.f32.mrf.mxu1 }
0x1897   :  { %v4280_v43 = vadd.f32 %v7858_v42, %v7864_v61 }
0x1917   :  { %v4693_v40 = vpop.xlane.xlu1 %4692 }
0x1918   :  { %v4697_v46 = vsub.f32 %v4689_v33, %v4693_v40  ;;  %v6768_v33 = vld [vmem:[#allocation13 + $0x1d0] sm:$0xff]  }
0x191a   :  { %v4699_v12 = vmul.f32 1.442695, %v4697_v46 }
0x191b   :  { %v4390_v25 = vpop.xlane.xlu1 %4389 }
0x191c   :  { %6865 = vpow2.f32 %v4699_v12 }
0x191d   :  { %6867 = vrcp.f32 %v4390_v25  ;;  %v4283_v25 = vadd.f32 %v7860_v18, %v7867_v10 }
0x191f   :  { %v4696_v22 = vpop.xlane.xlu0 %4695 }
0x1920   :  { %v4698_v31 = vsub.f32 %v4690_v41, %v4696_v22 }
0x1922   :  { %v4701_v13 = vmul.f32 1.442695, %v4698_v31 }
0x1924   :  { %6869 = vpow2.f32 %v4701_v13 }
0x1929   :  { %v6866_v45 = vpop.eup %6865 }
0x192a   :  { %v6868_v49 = vpop.eup %6867  ;;  %v4703_v20 = vsel %vm1247_vm3, %v6866_v45, 0.0 }
0x192b   :  { %4704 = vadd.xlane.f32.xlu0 %v4703_v20  ;;  %v4395_v26 = vmul.f32 %v6868_v49, %v6864_v29  ;;  %v5708_v49 = vld [vmem:[%s8015_s7 + $0x1] ss:$0 sm:$0xff] }
0x192d   :  { %v4398_v24 = vpack.c.bf16 %v4395_v26, %v4395_v26 }
0x192f   :  { %6246 = vmatmul.mubr.msk.bf16.vlgmr.msra.gmra.mxu0 %vm1247_vm3, %v4398_v24 }
0x1930   :  { %6271 = vmatprep.mubr.msk.bf16.mxu0 %vm7145_vm1, %v7143_v2  ;;  %6256 = vmatpush3.bf16.msra.mxu0 %v6755_v32 }
0x1931   :  { %v6870_v57 = vpop.eup %6869  ;;  %6257 = vmatprep.subr.bf16.mxu0 %v7143_v2 }
0x1932   :  { %v4706_v11 = vsel %vm1247_vm3, %v6870_v57, 0.0 }
0x1933   :  { %4707 = vadd.xlane.f32.xlu1 %v4706_v11 }
0x1934   :  { %6258 = vmatpush3.bf16.msra.mxu0 %v6756_v56 }
0x1935   :  { %6259 = vmatprep.subr.bf16.mxu0 %v7143_v2 }
0x1938   :  { %6260 = vmatpush3.bf16.msra.mxu0 %v6757_v16  ;;  %v6771_v16 = vld [vmem:[#allocation14 + $0x78] sm:$0xff]  }
0x1939   :  { %6261 = vmatprep.subr.bf16.mxu0 %v7143_v2 }
0x193c   :  { %6262 = vmatpush3.bf16.msra.mxu0 %v6758_v4 }
0x193d   :  { %6263 = vmatprep.subr.bf16.mxu0 %v7143_v2 }
0x1940   :  { %6264 = vmatpush3.bf16.msra.mxu0 %v6759_v23 }
0x1941   :  { %6265 = vmatprep.subr.bf16.mxu0 %v7143_v2 }
0x1944   :  { %6266 = vmatpush3.bf16.msra.mxu0 %v6760_v28 }
0x1945   :  { %6267 = vmatprep.subr.bf16.mxu0 %v7143_v2 }
0x1948   :  { %6268 = vmatpush3.bf16.msra.mxu0 %v6761_v62 }
0x1949   :  { %6269 = vmatprep.subr.bf16.mxu0 %v7143_v2 }
0x194c   :  { %6270 = vmatpush3.bf16.msra.mxu0 %v6762_v39 }
0x194d   :  { %6299 = vmatprep.subr.bf16.mxu0 %v7143_v2 }
0x19b4   :  { %v4705_v8 = vpop.xlane.xlu0 %4704 }
0x19b5   :  { %6871 = vrcp.f32 %v4705_v8 }
0x19bc   :  { %v4708_v34 = vpop.xlane.xlu1 %4707 }
0x19bd   :  { %6873 = vrcp.f32 %v4708_v34 }
0x19c2   :  { %v6872_v17 = vpop.eup %6871 }
0x19c3   :  { %v4710_v48 = vmul.f32 %v6872_v17, %v6866_v45  ;;  %v6772_v17 = vld [vmem:[#allocation14 + $0x70] sm:$0xff]  }
0x19c5   :  { %v4713_v59 = vpack.c.bf16 %v4710_v48, %v4710_v48  ;;  %v6774_v48 = vld [vmem:[#allocation14 + $0x60] sm:$0xff]  }
0x19c7   :  { %6290 = vmatmul.mubr.msk.bf16.vlgmr.msra.gmra.mxu1 %vm1247_vm3, %v4713_v59  ;;  %v6775_v59 = vld [vmem:[#allocation14 + $0x58] sm:$0xff]  }
0x19c8   :  { %6294 = vmatpush3.bf16.msra.mxu1 %v4765_v35  ;;  %6295 = vmatprep.mubr.msk.bf16.mxu1 %vm7145_vm1, %v7143_v2  ;;  %v6776_v35 = vld [vmem:[#allocation14 + $0x50] sm:$0xff]  }
0x19c9   :  { %6319 = vmatprep.subr.bf16.mxu1 %v7143_v2 }
0x19ca   :  { %v6874_v6 = vpop.eup %6873 }
0x19cb   :  { %v4712_v52 = vmul.f32 %v6874_v6, %v6870_v57  ;;  %v6777_v6 = vld [vmem:[#allocation14 + $0x48] sm:$0xff]  }
0x19cd   :  { %v4714_v54 = vpack.c.bf16 %v4712_v52, %v4712_v52  ;;  %v6778_v52 = vld [vmem:[#allocation14 + $0x40] sm:$0xff]  }
0x19cf   :  { %6296 = vmatmul.mubr.msk.bf16.vlgmr.msra.gmra.mxu1 %vm1247_vm3, %v4714_v54 }
0x19d0   :  { %6335 = vmatprep.mubr.msk.bf16.mxu1 %vm7145_vm1, %v7143_v2  ;;  %6320 = vmatpush3.bf16.msra.mxu1 %v6771_v16 }
0x19d1   :  { %6321 = vmatprep.subr.bf16.mxu1 %v7143_v2 }
0x19d4   :  { %6322 = vmatpush3.bf16.msra.mxu1 %v6772_v17 }
0x19d5   :  { %6323 = vmatprep.subr.bf16.mxu1 %v7143_v2 }
0x19d8   :  { %6324 = vmatpush3.bf16.msra.mxu1 %v6773_v60 }
0x19d9   :  { %6325 = vmatprep.subr.bf16.mxu1 %v7143_v2 }
0x19dc   :  { %6326 = vmatpush3.bf16.msra.mxu1 %v6774_v48 }
0x19dd   :  { %6327 = vmatprep.subr.bf16.mxu1 %v7143_v2 }
0x19e0   :  { %6328 = vmatpush3.bf16.msra.mxu1 %v6775_v59 }
0x19e1   :  { %6329 = vmatprep.subr.bf16.mxu1 %v7143_v2 }
0x19e4   :  { %6330 = vmatpush3.bf16.msra.mxu1 %v6776_v35 }
0x19e5   :  { %6331 = vmatprep.subr.bf16.mxu1 %v7143_v2 }
0x19e8   :  { %6332 = vmatpush3.bf16.msra.mxu1 %v6777_v6 }
0x19e9   :  { %6333 = vmatprep.subr.bf16.mxu1 %v7143_v2 }
0x19ec   :  { %6334 = vmatpush3.bf16.msra.mxu1 %v6778_v52 }
0x19ed   :  { %6359 = vmatprep.subr.bf16.mxu1 %v7143_v2 }
0x19ef   :  { %v4440_v50 = vpop.f32.mrf.mxu0 }
0x19f0   :  { %v4492_v53 = vpack.c.bf16 %v7893_v19, %v4440_v50  ;;  %v6767_v19 = vld [vmem:[#allocation13 + $0x1d8] sm:$0xff]  }
0x19f1   :  { %v6247_v7 = vpop.f32.mrf.mxu0 }
0x19f2   :  { %6272 = vmatmul.mubr.bf16.vlgmr.msra.gmra.mxu0 %v4492_v53 }
0x19f3   :  { %v4443_v5 = vpop.f32.mrf.mxu0  ;;  %6300 = vmatpush3.bf16.msra.mxu0 %v6763_v44  ;;  %6315 = vmatprep.mubr.msk.bf16.mxu0 %vm7145_vm1, %v7143_v2 }
0x19f4   :  { %6301 = vmatprep.subr.bf16.mxu0 %v7143_v2 }
0x19f5   :  { %v6248_v15 = vpop.f32.mrf.mxu0 }
0x19f7   :  { %6302 = vmatpush3.bf16.msra.mxu0 %v6764_v9 }
0x19f8   :  { %6303 = vmatprep.subr.bf16.mxu0 %v7143_v2 }
0x19fb   :  { %6304 = vmatpush3.bf16.msra.mxu0 %v6765_v37  ;;  %v5711_v37 = vld [vmem:[%s8016_s8 + $0x1] ss:$0 sm:$0xff] }
0x19fc   :  { %6305 = vmatprep.subr.bf16.mxu0 %v7143_v2 }
0x19ff   :  { %6306 = vmatpush3.bf16.msra.mxu0 %v6766_v27 }
0x1a00   :  { %6307 = vmatprep.subr.bf16.mxu0 %v7143_v2 }
0x1a03   :  { %6308 = vmatpush3.bf16.msra.mxu0 %v6767_v19 }
0x1a04   :  { %6309 = vmatprep.subr.bf16.mxu0 %v7143_v2 }
0x1a07   :  { %6310 = vmatpush3.bf16.msra.mxu0 %v6768_v33 }
0x1a08   :  { %6311 = vmatprep.subr.bf16.mxu0 %v7143_v2 }
0x1a0b   :  { %6312 = vmatpush3.bf16.msra.mxu0 %v6769_v38  ;;  %v5712_v38 = vld [vmem:[%s8017_s9 + $0x1] ss:$0 sm:$0xff] }
0x1a0c   :  { %6313 = vmatprep.subr.bf16.mxu0 %v7143_v2 }
0x1a0f   :  { %6314 = vmatpush3.bf16.msra.mxu0 %v6770_v47 }
0x1a10   :  { %6339 = vmatprep.subr.bf16.mxu0 %v7143_v2 }
0x1a87   :  { %v4755_v29 = vpop.f32.mrf.mxu1 }
0x1a89   :  { %v6291_v30 = vpop.f32.mrf.mxu1 }
0x1a8b   :  { %v4758_v55 = vpop.f32.mrf.mxu1 }
0x1a8d   :  { %v6292_v21 = vpop.f32.mrf.mxu1 }
0x1a8e   :  { %v6779_v21 = vld [vmem:[#allocation16 + $0x78] sm:$0xff]  }
0x1a8f   :  { %v4801_v36 = vpop.f32.mrf.mxu1 }
0x1a90   :  { %v4807_v1 = vpack.c.bf16 %v4801_v36, %v4755_v29  ;;  %v6780_v36 = vld [vmem:[#allocation16 + $0x70] sm:$0xff]  }
0x1a91   :  { %v6297_v41 = vpop.f32.mrf.mxu1 }
0x1a92   :  { %6316 = vmatmul.mubr.bf16.vlgmr.msra.gmra.mxu0 %v4807_v1  ;;  %v6781_v1 = vld [vmem:[#allocation16 + $0x68] sm:$0xff]   ;;  %v6782_v41 = vld [vmem:[#allocation16 + $0x60] sm:$0xff]  }
0x1a93   :  { %v4804_v0 = vpop.f32.mrf.mxu1  ;;  %6355 = vmatprep.mubr.msk.bf16.mxu0 %vm7145_vm1, %v7143_v2  ;;  %6340 = vmatpush3.bf16.msra.mxu0 %v6779_v21 }
0x1a94   :  { %6341 = vmatprep.subr.bf16.mxu0 %v7143_v2  ;;  %v6783_v0 = vld [vmem:[#allocation16 + $0x58] sm:$0xff]  }
0x1a95   :  { %v6298_v51 = vpop.f32.mrf.mxu1 }
0x1a96   :  { %v6784_v51 = vld [vmem:[#allocation16 + $0x50] sm:$0xff]  }
0x1a97   :  { %6342 = vmatpush3.bf16.msra.mxu0 %v6780_v36 }
0x1a98   :  { %6343 = vmatprep.subr.bf16.mxu0 %v7143_v2 }
0x1a9b   :  { %6344 = vmatpush3.bf16.msra.mxu0 %v6781_v1 }
0x1a9c   :  { %6345 = vmatprep.subr.bf16.mxu0 %v7143_v2 }
0x1a9f   :  { %6346 = vmatpush3.bf16.msra.mxu0 %v6782_v41 }
0x1aa0   :  { %6347 = vmatprep.subr.bf16.mxu0 %v7143_v2 }
0x1aa3   :  { %6348 = vmatpush3.bf16.msra.mxu0 %v6783_v0 }
0x1aa4   :  { %6349 = vmatprep.subr.bf16.mxu0 %v7143_v2 }
0x1aa7   :  { %6350 = vmatpush3.bf16.msra.mxu0 %v6784_v51 }
0x1aa8   :  { %6351 = vmatprep.subr.bf16.mxu0 %v7143_v2 }
0x1ab2   :  { %v4592_v40 = vpop.f32.mrf.mxu0 }
0x1ab3   :  { %v4599_v46 = vadd.f32 %v4592_v40, %v4280_v43  ;;  %v6785_v43 = vld [vmem:[#allocation16 + $0x48] sm:$0xff]   ;;  %v6786_v40 = vld [vmem:[#allocation16 + $0x40] sm:$0xff]  }
0x1ab4   :  { %v6273_v12 = vpop.f32.mrf.mxu0  ;;  %6352 = vmatpush3.bf16.msra.mxu0 %v6785_v43 }
0x1ab5   :  { %6353 = vmatprep.subr.bf16.mxu0 %v7143_v2 }
0x1ab6   :  { %v4595_v22 = vpop.f32.mrf.mxu0 }
0x1ab7   :  { %v4600_v31 = vadd.f32 %v4595_v22, %v4283_v25 }
0x1ab8   :  { %v6274_v13 = vpop.f32.mrf.mxu0  ;;  %6354 = vmatpush3.bf16.msra.mxu0 %v6786_v40 }
0x1b52   :  { %v4907_v45 = vpop.f32.mrf.mxu0 }
0x1b53   :  { %v4914_v20 = vadd.f32 %v4907_v45, %v4599_v46  ;;  %v5714_v46 = vld [vmem:[%s8019_s11 + $0x1] ss:$0 sm:$0xff] }
0x1b54   :  { %v6317_v26 = vpop.f32.mrf.mxu0 }
0x1b55   :  { %v4924_v24 = vadd.f32 %v5708_v49, %v4914_v20 }
0x1b56   :  { %v4910_v57 = vpop.f32.mrf.mxu0 }
0x1b57   :  { %v4915_v11 = vadd.f32 %v4910_v57, %v4600_v31  ;;  %v4926_v42 = vadd.f32 %v4924_v24, %v7666_v63 }
0x1b58   :  { %v6318_v61 = vpop.f32.mrf.mxu0 }
0x1b59   :  { %v4925_v32 = vadd.f32 %v5708_v49, %v4915_v11  ;;  %v4932_v56 = vmul.f32 %v7289_v3, %v4926_v42 }
0x1b5b   :  { %4934 = vadd.xlane.f32.xlu0 %v4932_v56  ;;  %v4927_v18 = vadd.f32 %v4925_v32, %v7668_v58 }
0x1b5d   :  { %v4933_v10 = vmul.f32 %v7289_v3, %v4927_v18 }
0x1b5f   :  { %4936 = vadd.xlane.f32.xlu1 %v4933_v10 }
0x1be4   :  { %v4935_v4 = vpop.xlane.xlu0 %4934 }
0x1be5   :  { %v4938_v23 = vmul.f32 0.03125, %v4935_v4 }
0x1be7   :  { %v4940_v28 = vsub.f32 %v4926_v42, %v4938_v23 }
0x1be8   :  { %v4937_v62 = vpop.xlane.xlu1 %4936 }
0x1be9   :  { %v4939_v39 = vmul.f32 0.03125, %v4937_v62  ;;  %v4942_v63 = vmul.f32 %v7289_v3, %v4940_v28 }
0x1beb   :  { %v4941_v8 = vsub.f32 %v4927_v18, %v4939_v39  ;;  %v4944_v34 = vmul.f32 %v4942_v63, %v4942_v63 }
0x1bed   :  { %4946 = vadd.xlane.f32.xlu0 %v4944_v34  ;;  %v4943_v14 = vmul.f32 %v7289_v3, %v4941_v8  ;;  %v5724_v8 = vld [vmem:[%s8021_s13 + $0x1] ss:$0 sm:$0xff] }
0x1bef   :  { %v4945_v58 = vmul.f32 %v4943_v14, %v4943_v14 }
0x1bf1   :  { %4948 = vadd.xlane.f32.xlu1 %v4945_v58 }
0x1c76   :  { %v4947_v54 = vpop.xlane.xlu0 %4946 }
0x1c77   :  { %v4950_v50 = vmul.f32 0.03125, %v4947_v54  ;;  %v6787_v54 = vld [vmem:[#allocation17 + $0x38] sm:$0xff]  }
0x1c79   :  { %v4952_v44 = vadd.f32 1e-12, %v4950_v50 }
0x1c7a   :  { %v4949_v53 = vpop.xlane.xlu1 %4948 }
0x1c7b   :  { %6875 = vrsqrt.f32 %v4952_v44  ;;  %v4951_v7 = vmul.f32 0.03125, %v4949_v53 }
0x1c7d   :  { %v4953_v5 = vadd.f32 1e-12, %v4951_v7 }
0x1c7f   :  { %6877 = vrsqrt.f32 %v4953_v5 }
0x1c88   :  { %v6876_v9 = vpop.eup %6875 }
0x1c89   :  { %v4956_v15 = vmul.f32 %v6876_v9, %v4942_v63 }
0x1c8b   :  { %v4964_v33 = vmul.f32 %v5711_v37, %v4956_v15 }
0x1c8c   :  { %v6878_v27 = vpop.eup %6877 }
0x1c8d   :  { %v4957_v19 = vmul.f32 %v6878_v27, %v4943_v14  ;;  %v4972_v29 = vadd.f32 %v5712_v38, %v4964_v33  ;;  %v6788_v33 = vld [vmem:[#allocation17 + $0x30] sm:$0xff]  }
0x1c8f   :  { %v4965_v47 = vmul.f32 %v5711_v37, %v4957_v19 }
0x1c91   :  { %v7963_v30 = vadd.f32 %v5712_v38, %v4965_v47  ;;  %v6789_v38 = vld [vmem:[#allocation17 + $0x28] sm:$0xff]   ;;  %v6790_v47 = vld [vmem:[#allocation17 + $0x20] sm:$0xff]  }
0x1c93   :  { %v4974_v55 = vpack.c.bf16 %v7963_v30, %v4972_v29 }
0x1c95   :  { %6336 = vmatmul.mubr.bf16.vlgmr.msra.gmra.mxu1 %v4974_v55  ;;  %v6794_v55 = vld [vmem:[#allocation17] sm:$0xff]  }
0x1c96   :  { %6375 = vmatprep.mubr.msk.bf16.mxu1 %vm7145_vm1, %v7143_v2  ;;  %6360 = vmatpush3.bf16.msra.mxu1 %v6787_v54 }
0x1c97   :  { %6361 = vmatprep.subr.bf16.mxu1 %v7143_v2 }
0x1c9a   :  { %6362 = vmatpush3.bf16.msra.mxu1 %v6788_v33 }
0x1c9b   :  { %6363 = vmatprep.subr.bf16.mxu1 %v7143_v2 }
0x1c9e   :  { %6364 = vmatpush3.bf16.msra.mxu1 %v6789_v38 }
0x1c9f   :  { %6365 = vmatprep.subr.bf16.mxu1 %v7143_v2 }
0x1ca2   :  { %6366 = vmatpush3.bf16.msra.mxu1 %v6790_v47 }
0x1ca3   :  { %6367 = vmatprep.subr.bf16.mxu1 %v7143_v2 }
0x1d55   :  { %v5082_v12 = vpop.f32.mrf.mxu1 }
0x1d56   :  { %v5083_v25 = vadd.f32 %v5714_v46, %v5082_v12 }
0x1d57   :  { %v6337_v22 = vpop.f32.mrf.mxu1 }
0x1d58   :  { %v5089_v31 = vmul.f32 %v5083_v25, %v5083_v25 }
0x1d59   :  { %v5085_v13 = vpop.f32.mrf.mxu1 }
0x1d5a   :  { %v5091_v45 = vmul.f32 %v5089_v31, %v5083_v25  ;;  %v5086_v49 = vadd.f32 %v5714_v46, %v5085_v13  ;;  %v5735_v46 = vld [vmem:[%s8022_s14 + $0x1] ss:$0 sm:$0xff]  ;;  %s7146_s14 = smov [#allocation19]  }
0x1d5b   :  { %v6338_v20 = vpop.f32.mrf.mxu1  ;;  %s5390_s0 = sshll.u32 %s7146_s14, 4  ;;  %s5391_s0 = int_to_ptr.vmem [resolvable:$true] %s5390_s0 }
0x1d5c   :  { %v5093_v26 = vmul.f32 0.044715, %v5091_v45  ;;  %v5090_v24 = vmul.f32 %v5086_v49, %v5086_v49  ;;  %v5737_v20 = vld [vmem:[%s8025_s17] ss:$0 sm:$0xff]  ;;  %p7094_p9 = scmp.lt.s32.totalorder %s5391_s0, %s5391_s0 }
0x1d5e   :  { %v5095_v57 = vadd.f32 %v5093_v26, %v5083_v25  ;;  %v5092_v11 = vmul.f32 %v5090_v24, %v5086_v49 }
0x1d60   :  { %v5097_v42 = vmul.f32 0.7978846, %v5095_v57  ;;  %v5094_v61 = vmul.f32 0.044715, %v5092_v11 }
0x1d62   :  { %6879 = vtanh.f32 %v5097_v42  ;;  %v5096_v32 = vadd.f32 %v5094_v61, %v5086_v49 }
0x1d64   :  { %v5098_v56 = vmul.f32 0.7978846, %v5096_v32 }
0x1d66   :  { %6881 = vtanh.f32 %v5098_v56 }
0x1d6f   :  { %v6880_v18 = vpop.eup %6879 }
0x1d70   :  { %v5101_v10 = vadd.f32 1.0, %v6880_v18 }
0x1d72   :  { %v5103_v4 = vmul.f32 0.5, %v5101_v10 }
0x1d73   :  { %v6882_v16 = vpop.eup %6881 }
0x1d74   :  { %v5102_v23 = vadd.f32 1.0, %v6882_v16  ;;  %v5105_v62 = vmul.f32 %v5103_v4, %v5083_v25 }
0x1d76   :  { %v5104_v28 = vmul.f32 0.5, %v5102_v23 }
0x1d78   :  { %v5106_v39 = vmul.f32 %v5104_v28, %v5086_v49 }
0x1d7a   :  { %v5107_v63 = vpack.c.bf16 %v5106_v39, %v5105_v62 }
0x1d7c   :  { %6356 = vmatmul.mubr.bf16.vlgmr.msra.gmra.mxu0 %v5107_v63 }
0x1e3c   :  { %v5215_v34 = vpop.f32.mrf.mxu0 }
0x1e3d   :  { %v5216_v14 = vadd.f32 %v5724_v8, %v5215_v34 }
0x1e3e   :  { %v6357_v58 = vpop.f32.mrf.mxu0 }
0x1e3f   :  { %v5222_v17 = vadd.f32 %v5216_v14, %v4972_v29  ;;  %v6791_v29 = vld [vmem:[#allocation17 + $0x18] sm:$0xff]  }
0x1e40   :  { %v5218_v60 = vpop.f32.mrf.mxu0  ;;  %6368 = vmatpush3.bf16.msra.mxu1 %v6791_v29 }
0x1e41   :  { %v5219_v48 = vadd.f32 %v5724_v8, %v5218_v60  ;;  %v5228_v59 = vmul.f32 %v7289_v3, %v5222_v17  ;;  %6369 = vmatprep.subr.bf16.mxu1 %v7143_v2 }
0x1e42   :  { %v6358_v35 = vpop.f32.mrf.mxu0 }
0x1e43   :  { %v5223_v6 = vadd.f32 %v5219_v48, %v7963_v30  ;;  %5230 = vadd.xlane.f32.xlu0 %v5228_v59  ;;  %v6792_v30 = vld [vmem:[#allocation17 + $0x10] sm:$0xff]  }
0x1e44   :  { %6370 = vmatpush3.bf16.msra.mxu1 %v6792_v30 }
0x1e45   :  { %v5229_v52 = vmul.f32 %v7289_v3, %v5223_v6  ;;  %6371 = vmatprep.subr.bf16.mxu1 %v7143_v2 }
0x1e47   :  { %5232 = vadd.xlane.f32.xlu1 %v5229_v52 }
0x1ecc   :  { %v5231_v50 = vpop.xlane.xlu0 %5230 }
0x1ecd   :  { %v5234_v44 = vmul.f32 0.03125, %v5231_v50 }
0x1ecf   :  { %v5236_v53 = vsub.f32 %v5222_v17, %v5234_v44 }
0x1ed0   :  { %v5233_v7 = vpop.xlane.xlu1 %5232 }
0x1ed1   :  { %v5235_v5 = vmul.f32 0.03125, %v5233_v7  ;;  %v5238_v9 = vmul.f32 %v7289_v3, %v5236_v53 }
0x1ed3   :  { %v5237_v15 = vsub.f32 %v5223_v6, %v5235_v5  ;;  %v5240_v37 = vmul.f32 %v5238_v9, %v5238_v9 }
0x1ed5   :  { %5242 = vadd.xlane.f32.xlu0 %v5240_v37  ;;  %v5239_v27 = vmul.f32 %v7289_v3, %v5237_v15  ;;  %v6793_v3 = vld [vmem:[#allocation17 + $0x8] sm:$0xff]  }
0x1ed6   :  { %6372 = vmatpush3.bf16.msra.mxu1 %v6793_v3 }
0x1ed7   :  { %v5241_v19 = vmul.f32 %v5239_v27, %v5239_v27  ;;  %6373 = vmatprep.subr.bf16.mxu1 %v7143_v2  ;;  %v5736_v2 = vld [vmem:[%s8023_s15 + $0x1] ss:$0 sm:$0xff]  ;;  %s7089_s15 = scalar_lea.vmem %s5391_s0, 256 }
0x1ed8   :  { %p7090_p8 = scmp.ne.s32.totalorder %s5391_s0, %s7089_s15  ;;  %p7095_p10 = scmp.lt.s32.totalorder %s7089_s15, %s7089_s15 }
0x1ed9   :  { %5244 = vadd.xlane.f32.xlu1 %v5241_v19 }
0x1eda   :  { %6374 = vmatpush3.bf16.msra.mxu1 %v6794_v55  ;;  %p7096_p11 = por %p7095_p10, %p7094_p9 }
0x1edc   :  { %p7097_p12 = pnand %p7096_p11, %p7090_p8 }
0x1f5e   :  { %v5243_v21 = vpop.xlane.xlu0 %5242 }
0x1f5f   :  { %v5246_v36 = vmul.f32 0.03125, %v5243_v21 }
0x1f61   :  { %v5248_v1 = vadd.f32 1e-12, %v5246_v36 }
0x1f62   :  { %v5245_v41 = vpop.xlane.xlu1 %5244 }
0x1f63   :  { %6883 = vrsqrt.f32 %v5248_v1  ;;  %v5247_v0 = vmul.f32 0.03125, %v5245_v41 }
0x1f65   :  { %v5249_v51 = vadd.f32 1e-12, %v5247_v0 }
0x1f67   :  { %6885 = vrsqrt.f32 %v5249_v51 }
0x1f70   :  { %v6884_v43 = vpop.eup %6883 }
0x1f71   :  { %v5252_v40 = vmul.f32 %v6884_v43, %v5238_v9 }
0x1f73   :  { %v5260_v22 = vmul.f32 %v5735_v46, %v5252_v40 }
0x1f74   :  { %v6886_v12 = vpop.eup %6885 }
0x1f75   :  { %v5253_v25 = vmul.f32 %v6886_v12, %v5239_v27  ;;  %v5268_v13 = vadd.f32 %v5736_v2, %v5260_v22 }
0x1f77   :  { %v5261_v31 = vmul.f32 %v5735_v46, %v5253_v25 }
0x1f79   :  { %v5269_v45 = vadd.f32 %v5736_v2, %v5261_v31 }
0x1f7b   :  { %v5270_v49 = vpack.c.bf16 %v5269_v45, %v5268_v13 }
0x1f7d   :  { %6376 = vmatmul.mubr.bf16.vlgmr.msra.gmra.mxu1 %v5270_v49 }
0x203d   :  { %v5376_v26 = vpop.f32.mrf.mxu1 }
0x203e   :  { %v5377_v24 = vadd.f32 %v5737_v20, %v5376_v26 }
0x203f   :  { %v6377_v57 = vpop.f32.mrf.mxu1 }
0x2040   :  { %5383 = vst [vmem:[#allocation19] sm:$0xff] %v5377_v24 }
0x2041   :  { %v5379_v11 = vpop.f32.mrf.mxu1 }
0x2042   :  { %v5380_v42 = vadd.f32 %v5737_v20, %v5379_v11 }
0x2043   :  { %v6378_v61 = vpop.f32.mrf.mxu1 }
0x2044   :  { %5384 = vst [vmem:[#allocation19 + $0x8] sm:$0xff] %v5380_v42 }
0x2045   :  { %7100 = shalt.err (!%p7097_p12)
}
0x2046   :  { %5396 = dma.vmem_to_hbm [thread:$0]  %s5391_s0, 256, %s8026_s18, [#allocation4], %s7134_s23, %s7134_s23, %s7135_s27  }
0x2047   :  { %7121 = dma.done.wait [#allocation4], 256  }
0x2048   :  { %7122 = vsyncadd [#allocation4], 4294967040 }
0x2049   :  { %5400 = vsyncpa [#allocation3], 1 }
0x204a   :  { %5401 = vsyncpa [#allocation6], 1 }
0x204b   :  { %5402 = vsyncpa [#allocation9], 1 }
0x204c   :  { %5403 = vsyncpa [#allocation12], 1 }
0x204d   :  { %5404 = vsyncpa [#allocation15], 1 }
0x204e   :  { %5405 = vsyncpa [#allocation18], 1 }
0x204f   :  { %5406 = vsyncpa [#allocation4], 1 }

</bundles_post_ra>
